<compile_context>
chip_gen: v6e
topology: v6e:2x2x1
jax: 0.10.0
libtpu: 0.0.40
codegen_flags: <defaults>
</compile_context>

<pallas_src>
from functools import partial

import jax
import jax.numpy as jnp
from jax import lax
from jax.experimental import pallas as pl
from jax.experimental.pallas import tpu as pltpu


# ----------------------------- fused Pallas kernel ------------------------------

def _fused_lstm_kernel(x_ref,
                       wih0_ref, whh0_ref, b0_ref,
                       wih1_ref, whh1_ref, b1_ref,
                       wih2_ref, whh2_ref, b2_ref,
                       wih3_ref, whh3_ref, b3_ref,
                       w_out_ref, b_out_ref,
                       out_ref,
                       pg0_ref):
    """4 stacked LSTM layers (wavefront schedule) + lane-padded Linear + Sigmoid.

    x_ref    : (T*TB, E)  time-major, batch padded to TB (multiple of 8), pre-flattened
    wihL_ref : (in, 4H)   pre-transposed, PyTorch gate column order (i, f, g, o)
    whhL_ref : (H, 4H)    pre-transposed
    bL_ref   : (1, 4H)    b_ih + b_hh
    w_out_ref: (H, OUT_PAD) zero-padded to 128 lanes, b_out_ref: (1, OUT_PAD)
    out_ref  : (TB, OUT_PAD)
    pg0_ref  : VMEM (T*TB, 4H) scratch — layer-0 pre-gates (hoisted input projection)
    """
    TB = out_ref.shape[0]
    TTB, _ = x_ref.shape
    T = TTB // TB
    H = whh0_ref.shape[0]
    L = 4
    f32 = jnp.float32

    # ---- layer 0: hoisted input projection — ONE MXU slab matmul for all T steps ----
    pg0_ref[...] = (jnp.dot(x_ref[...], wih0_ref[...], preferred_element_type=f32)
                    + b0_ref[...])

    # Read weights / biases once, hoisted out of the (fully unrolled) wavefront loop.
    whh = [whh0_ref[...], whh1_ref[...], whh2_ref[...], whh3_ref[...]]
    wih = [None, wih1_ref[...], wih2_ref[...], wih3_ref[...]]
    bias = [None,
            jnp.broadcast_to(b1_ref[...], (TB, 4 * H)),
            jnp.broadcast_to(b2_ref[...], (TB, 4 * H)),
            jnp.broadcast_to(b3_ref[...], (TB, 4 * H))]

    h = [jnp.zeros((TB, H), f32) for _ in range(L)]
    c = [jnp.zeros((TB, H), f32) for _ in range(L)]

    def cell(gates, c_prev):
        # Full-width EUP (idle slot); gate quarters extracted afterwards.
        sg = jax.nn.sigmoid(gates)                 # (TB, 4H)
        th = jnp.tanh(gates)                       # (TB, 4H)
        i_g = sg[:, 0:H]
        f_g = sg[:, H:2 * H]
        g_g = th[:, 2 * H:3 * H]
        o_g = sg[:, 3 * H:4 * H]
        c_new = f_g * c_prev + i_g * g_g
        h_new = o_g * jnp.tanh(c_new)
        return h_new, c_new

    # ---- cross-layer wavefront: at wavefront w, layer l runs timestep t = w - l. ----
    # The (up to) 4 active layer-steps of a wavefront are mutually independent; processing
    # layers top-down means layer l reads layer l-1's step-t output (in registers) before
    # layer l-1 overwrites it with step t+1 in the same wavefront.
    for w in range(T + L - 1):
        for l in reversed(range(L)):
            t = w - l
            if not (0 <= t < T):
                continue
            if l == 0:
                # Static, sublane-aligned (TB multiple of 8) slab read — no relayout.
                gates = (pg0_ref[t * TB:(t + 1) * TB, :]
                         + jnp.dot(h[0], whh[0], preferred_element_type=f32))
            else:
                gates = (jnp.dot(h[l - 1], wih[l], preferred_element_type=f32)
                         + jnp.dot(h[l], whh[l], preferred_element_type=f32)
                         + bias[l])
            h[l], c[l] = cell(gates, c[l])

    # ---- lane-dense head: Linear(H, 5) zero-padded to OUT_PAD lanes + Sigmoid ----
    logits = jnp.dot(h[L - 1], w_out_ref[...], preferred_element_type=f32) + b_out_ref[...]
    out_ref[...] = jax.nn.sigmoid(logits)


# --------------------------------- wrapper --------------------------------------

@partial(jax.jit, static_argnames=("out_dim",))
def lstm_classifier_forward(x, kparams, out_dim=5):
    """x: (B, T, E) batch-first (PyTorch layout). kparams: kernel-ready params."""
    B, T, E = x.shape
    H = kparams["w_hh"][0].shape[0]
    L = len(kparams["w_ih"])
    out_pad = kparams["w_out"].shape[1]
    assert L == 4, "kernel is specialized to num_layers=4"

    # Sublane-dense batch tile: pad batch to a multiple of 8 (f32 sublanes).
    TB = max(8, ((B + 7) // 8) * 8)
    if TB != B:
        x = jnp.pad(x, ((0, TB - B), (0, 0), (0, 0)))

    # Time-major, pre-flattened (T*TB, E): row index = t*TB + b (no in-kernel reshape).
    x_flat = jnp.swapaxes(x, 0, 1).reshape(T * TB, E)

    flat_inputs = [x_flat]
    in_specs = [pl.BlockSpec((T * TB, E), lambda i: (0, 0))]
    for layer in range(L):
        for arr in (kparams["w_ih"][layer], kparams["w_hh"][layer], kparams["b"][layer]):
            in_specs.append(pl.BlockSpec(arr.shape, lambda i: (0, 0)))
            flat_inputs.append(arr)
    for arr in (kparams["w_out"], kparams["b_out"]):
        in_specs.append(pl.BlockSpec(arr.shape, lambda i: (0, 0)))
        flat_inputs.append(arr)

    out_spec = pl.BlockSpec((TB, out_pad), lambda i: (0, 0))

    # Advisory cost estimate.
    flops = 2 * T * TB * E * 4 * H                      # layer-0 hoisted projection
    flops += T * 2 * TB * H * 4 * H                     # layer-0 recurrence
    flops += (L - 1) * T * 2 * (2 * TB * H * 4 * H)     # layers 1-3: input + recurrent
    flops += 2 * TB * H * out_pad                       # head
    transcendentals = T * L * TB * (4 * H + 4 * H + H) + TB * out_pad
    bytes_accessed = 4 * (sum(int(a.size) for a in flat_inputs) + TB * out_pad)

    # VMEM budget from actual buffer sizes (double-buffered I/O + scratch) + headroom.
    scratch_bytes = 4 * T * TB * 4 * H
    vmem_limit = max(8 << 20, 2 * bytes_accessed + scratch_bytes + (1 << 20))

    out = pl.pallas_call(
        _fused_lstm_kernel,
        out_shape=jax.ShapeDtypeStruct((TB, out_pad), jnp.float32),
        grid=(1,),
        in_specs=in_specs,
        out_specs=out_spec,
        scratch_shapes=[
            pltpu.VMEM((T * TB, 4 * H), jnp.float32),   # layer-0 pre-gates (flat)
        ],
        compiler_params=pltpu.CompilerParams(
            dimension_semantics=("arbitrary",),
            vmem_limit_bytes=int(vmem_limit),
        ),
        cost_estimate=pl.CostEstimate(
            flops=flops,
            transcendentals=transcendentals,
            bytes_accessed=bytes_accessed,
        ),
    )(*flat_inputs)

    return out[:B, :out_dim]


# ------------------------------ parameter prep ----------------------------------

def init_params(key, embedding_dim, hidden_dim, num_layers=4, out_dim=5):
    """PyTorch-layout params: W_ih (4H,in), W_hh (4H,H), gate rows (i,f,g,o);
    U(-1/sqrt(H), 1/sqrt(H)) init like nn.LSTM / nn.Linear."""
    H = hidden_dim
    k = 1.0 / jnp.sqrt(jnp.float32(H))
    layers = []
    for layer in range(num_layers):
        in_dim = embedding_dim if layer == 0 else H
        key, k1, k2, k3, k4 = jax.random.split(key, 5)
        w_ih = jax.random.uniform(k1, (4 * H, in_dim), jnp.float32, -k, k)
        w_hh = jax.random.uniform(k2, (4 * H, H), jnp.float32, -k, k)
        b_ih = jax.random.uniform(k3, (4 * H,), jnp.float32, -k, k)
        b_hh = jax.random.uniform(k4, (4 * H,), jnp.float32, -k, k)
        b = (b_ih + b_hh).reshape(1, 4 * H)
        layers.append((w_ih, w_hh, b))
    key, k5, k6 = jax.random.split(key, 3)
    w_out = jax.random.uniform(k5, (out_dim, H), jnp.float32, -k, k)
    b_out = jax.random.uniform(k6, (1, out_dim), jnp.float32, -k, k)
    return {"layers": layers, "w_out": w_out, "b_out": b_out}


def prep_params_for_kernel(params, lane=128):
    """Host-side, one-time: transpose weights (MXU-friendly), fuse biases, zero-pad the
    head to a lane-dense (H, 128) / (1, 128) so the output store is unmasked."""
    H = params["layers"][0][1].shape[1]           # W_hh is (4H, H)
    out_dim = params["w_out"].shape[0]
    out_pad = ((out_dim + lane - 1) // lane) * lane

    w_ih, w_hh, b = [], [], []
    for (wi, wh, bb) in params["layers"]:
        w_ih.append(jnp.asarray(wi.T))            # (in, 4H), gate cols (i,f,g,o)
        w_hh.append(jnp.asarray(wh.T))            # (H, 4H)
        b.append(jnp.asarray(bb))                 # (1, 4H) = b_ih + b_hh

    w_out = jnp.zeros((H, out_pad), jnp.float32).at[:, :out_dim].set(params["w_out"].T)
    b_out = jnp.zeros((1, out_pad), jnp.float32).at[:, :out_dim].set(params["b_out"])
    return {"w_ih": tuple(w_ih), "w_hh": tuple(w_hh), "b": tuple(b),
            "w_out": w_out, "b_out": b_out}


# ----------------------------- pure-JAX reference --------------------------------

def ref_forward(x, params):
    """Reference with PyTorch semantics (gate order i,f,g,o; batch_first)."""
    seq = x
    for (w_ih, w_hh, b) in params["layers"]:
        B, T, _ = seq.shape
        H = w_hh.shape[1]

        def step(carry, x_t):
            h, c = carry
            gates = x_t @ w_ih.T + h @ w_hh.T + b
            i = jax.nn.sigmoid(gates[:, 0:H])
            f = jax.nn.sigmoid(gates[:, H:2 * H])
            g = jnp.tanh(gates[:, 2 * H:3 * H])
            o = jax.nn.sigmoid(gates[:, 3 * H:4 * H])
            c = f * c + i * g
            h = o * jnp.tanh(c)
            return (h, c), h

        init = (jnp.zeros((B, H), jnp.float32), jnp.zeros((B, H), jnp.float32))
        _, hs = lax.scan(step, init, jnp.swapaxes(seq, 0, 1))
        seq = jnp.swapaxes(hs, 0, 1)
    logits = seq[:, -1, :] @ params["w_out"].T + params["b_out"]
    return jax.nn.sigmoid(logits)


# ------------------------------------ main ---------------------------------------

if __name__ == "__main__":
    B, T, E, H = 2, 8, 16, 32

    key = jax.random.PRNGKey(0)
    key, kx, kp = jax.random.split(key, 3)
    x = jax.random.normal(kx, (B, T, E), jnp.float32)
    params = init_params(kp, embedding_dim=E, hidden_dim=H, num_layers=4, out_dim=5)
    kparams = prep_params_for_kernel(params)

    out = lstm_classifier_forward(x, kparams, out_dim=5)
    out = jax.block_until_ready(out)

    ref = ref_forward(x, params)
    assert out.shape == (B, 5), out.shape
    assert jnp.allclose(out, ref, rtol=1e-3, atol=1e-4), (
        f"max abs diff {jnp.max(jnp.abs(out - ref))}")

    print("KERNEL_OK")
</pallas_src>

<mosaic_0001>
module attributes {stable_mosaic.version = 11 : i64} {
  func.func @_fused_lstm_kernel(%arg0: i32, %arg1: memref<64x16xf32, #tpu.memory_space<vmem>>, %arg2: memref<16x128xf32, #tpu.memory_space<vmem>>, %arg3: memref<32x128xf32, #tpu.memory_space<vmem>>, %arg4: memref<1x128xf32, #tpu.memory_space<vmem>>, %arg5: memref<32x128xf32, #tpu.memory_space<vmem>>, %arg6: memref<32x128xf32, #tpu.memory_space<vmem>>, %arg7: memref<1x128xf32, #tpu.memory_space<vmem>>, %arg8: memref<32x128xf32, #tpu.memory_space<vmem>>, %arg9: memref<32x128xf32, #tpu.memory_space<vmem>>, %arg10: memref<1x128xf32, #tpu.memory_space<vmem>>, %arg11: memref<32x128xf32, #tpu.memory_space<vmem>>, %arg12: memref<32x128xf32, #tpu.memory_space<vmem>>, %arg13: memref<1x128xf32, #tpu.memory_space<vmem>>, %arg14: memref<32x128xf32, #tpu.memory_space<vmem>>, %arg15: memref<1x128xf32, #tpu.memory_space<vmem>>, %arg16: memref<8x128xf32, #tpu.memory_space<vmem>>, %arg17: memref<64x128xf32, #tpu.memory_space<vmem>>) attributes {dimension_semantics = [#tpu.dimension_semantics<arbitrary>], iteration_bounds = array<i64: 1>, scalar_prefetch = 0 : i64, scratch_operands = 1 : i64, tpu.core_type = #tpu.core_type<tc>, window_params = [{pipeline_mode = #tpu.pipeline_mode<synchronous>, transform_indices = @transform_0, window_bounds = array<i64: 64, 16>}, {pipeline_mode = #tpu.pipeline_mode<synchronous>, transform_indices = @transform_1, window_bounds = array<i64: 16, 128>}, {pipeline_mode = #tpu.pipeline_mode<synchronous>, transform_indices = @transform_2, window_bounds = array<i64: 32, 128>}, {pipeline_mode = #tpu.pipeline_mode<synchronous>, transform_indices = @transform_3, window_bounds = array<i64: 1, 128>}, {pipeline_mode = #tpu.pipeline_mode<synchronous>, transform_indices = @transform_4, window_bounds = array<i64: 32, 128>}, {pipeline_mode = #tpu.pipeline_mode<synchronous>, transform_indices = @transform_5, window_bounds = array<i64: 32, 128>}, {pipeline_mode = #tpu.pipeline_mode<synchronous>, transform_indices = @transform_6, window_bounds = array<i64: 1, 128>}, {pipeline_mode = #tpu.pipeline_mode<synchronous>, transform_indices = @transform_7, window_bounds = array<i64: 32, 128>}, {pipeline_mode = #tpu.pipeline_mode<synchronous>, transform_indices = @transform_8, window_bounds = array<i64: 32, 128>}, {pipeline_mode = #tpu.pipeline_mode<synchronous>, transform_indices = @transform_9, window_bounds = array<i64: 1, 128>}, {pipeline_mode = #tpu.pipeline_mode<synchronous>, transform_indices = @transform_10, window_bounds = array<i64: 32, 128>}, {pipeline_mode = #tpu.pipeline_mode<synchronous>, transform_indices = @transform_11, window_bounds = array<i64: 32, 128>}, {pipeline_mode = #tpu.pipeline_mode<synchronous>, transform_indices = @transform_12, window_bounds = array<i64: 1, 128>}, {pipeline_mode = #tpu.pipeline_mode<synchronous>, transform_indices = @transform_13, window_bounds = array<i64: 32, 128>}, {pipeline_mode = #tpu.pipeline_mode<synchronous>, transform_indices = @transform_14, window_bounds = array<i64: 1, 128>}, {pipeline_mode = #tpu.pipeline_mode<synchronous>, transform_indices = @transform_15, window_bounds = array<i64: 8, 128>}]} {
    %c0 = arith.constant 0 : index
    %c0_0 = arith.constant 0 : index
    %0 = vector.load %arg1[%c0, %c0_0] : memref<64x16xf32, #tpu.memory_space<vmem>>, vector<64x16xf32>
    %c0_1 = arith.constant 0 : index
    %c0_2 = arith.constant 0 : index
    %1 = vector.load %arg2[%c0_1, %c0_2] : memref<16x128xf32, #tpu.memory_space<vmem>>, vector<16x128xf32>
    %cst = arith.constant dense<0.000000e+00> : vector<64x128xf32>
    %2 = tpu.matmul %0, %1, %cst {dimension_numbers = #tpu.dot_dimension_numbers<[1], [0], [0], [1], [0, 0, 1, 1], [], []>} : vector<64x16xf32>, vector<16x128xf32>, vector<64x128xf32> -> vector<64x128xf32>
    %c0_3 = arith.constant 0 : index
    %c0_4 = arith.constant 0 : index
    %3 = vector.load %arg4[%c0_3, %c0_4] : memref<1x128xf32, #tpu.memory_space<vmem>>, vector<1x128xf32>
    %4 = vector.broadcast %3 : vector<1x128xf32> to vector<64x128xf32>
    %5 = arith.addf %2, %4 : vector<64x128xf32>
    %c0_5 = arith.constant 0 : index
    %c0_6 = arith.constant 0 : index
    %6 = vector.load %arg17[%c0_5, %c0_6] : memref<64x128xf32, #tpu.memory_space<vmem>>, vector<64x128xf32>
    tpu.vector_store %arg17[%c0_5, %c0_6], %5 {strides = array<i32>} : memref<64x128xf32, #tpu.memory_space<vmem>>, vector<64x128xf32>,
    %c0_7 = arith.constant 0 : index
    %c0_8 = arith.constant 0 : index
    %7 = vector.load %arg3[%c0_7, %c0_8] : memref<32x128xf32, #tpu.memory_space<vmem>>, vector<32x128xf32>
    %c0_9 = arith.constant 0 : index
    %c0_10 = arith.constant 0 : index
    %8 = vector.load %arg6[%c0_9, %c0_10] : memref<32x128xf32, #tpu.memory_space<vmem>>, vector<32x128xf32>
    %c0_11 = arith.constant 0 : index
    %c0_12 = arith.constant 0 : index
    %9 = vector.load %arg9[%c0_11, %c0_12] : memref<32x128xf32, #tpu.memory_space<vmem>>, vector<32x128xf32>
    %c0_13 = arith.constant 0 : index
    %c0_14 = arith.constant 0 : index
    %10 = vector.load %arg12[%c0_13, %c0_14] : memref<32x128xf32, #tpu.memory_space<vmem>>, vector<32x128xf32>
    %c0_15 = arith.constant 0 : index
    %c0_16 = arith.constant 0 : index
    %11 = vector.load %arg5[%c0_15, %c0_16] : memref<32x128xf32, #tpu.memory_space<vmem>>, vector<32x128xf32>
    %c0_17 = arith.constant 0 : index
    %c0_18 = arith.constant 0 : index
    %12 = vector.load %arg8[%c0_17, %c0_18] : memref<32x128xf32, #tpu.memory_space<vmem>>, vector<32x128xf32>
    %c0_19 = arith.constant 0 : index
    %c0_20 = arith.constant 0 : index
    %13 = vector.load %arg11[%c0_19, %c0_20] : memref<32x128xf32, #tpu.memory_space<vmem>>, vector<32x128xf32>
    %c0_21 = arith.constant 0 : index
    %c0_22 = arith.constant 0 : index
    %14 = vector.load %arg7[%c0_21, %c0_22] : memref<1x128xf32, #tpu.memory_space<vmem>>, vector<1x128xf32>
    %15 = vector.shape_cast %14 : vector<1x128xf32> to vector<1x128xf32>
    %16 = vector.broadcast %15 : vector<1x128xf32> to vector<8x128xf32>
    %c0_23 = arith.constant 0 : index
    %c0_24 = arith.constant 0 : index
    %17 = vector.load %arg10[%c0_23, %c0_24] : memref<1x128xf32, #tpu.memory_space<vmem>>, vector<1x128xf32>
    %18 = vector.shape_cast %17 : vector<1x128xf32> to vector<1x128xf32>
    %19 = vector.broadcast %18 : vector<1x128xf32> to vector<8x128xf32>
    %c0_25 = arith.constant 0 : index
    %c0_26 = arith.constant 0 : index
    %20 = vector.load %arg13[%c0_25, %c0_26] : memref<1x128xf32, #tpu.memory_space<vmem>>, vector<1x128xf32>
    %21 = vector.shape_cast %20 : vector<1x128xf32> to vector<1x128xf32>
    %22 = vector.broadcast %21 : vector<1x128xf32> to vector<8x128xf32>
    %cst_27 = arith.constant 0.000000e+00 : f32
    %23 = vector.broadcast %cst_27 : f32 to vector<8x32xf32>
    %cst_28 = arith.constant 0.000000e+00 : f32
    %24 = vector.broadcast %cst_28 : f32 to vector<8x32xf32>
    %cst_29 = arith.constant 0.000000e+00 : f32
    %25 = vector.broadcast %cst_29 : f32 to vector<8x32xf32>
    %cst_30 = arith.constant 0.000000e+00 : f32
    %26 = vector.broadcast %cst_30 : f32 to vector<8x32xf32>
    %cst_31 = arith.constant 0.000000e+00 : f32
    %27 = vector.broadcast %cst_31 : f32 to vector<8x32xf32>
    %cst_32 = arith.constant 0.000000e+00 : f32
    %28 = vector.broadcast %cst_32 : f32 to vector<8x32xf32>
    %cst_33 = arith.constant 0.000000e+00 : f32
    %29 = vector.broadcast %cst_33 : f32 to vector<8x32xf32>
    %cst_34 = arith.constant 0.000000e+00 : f32
    %30 = vector.broadcast %cst_34 : f32 to vector<8x32xf32>
    %c0_35 = arith.constant 0 : index
    %c0_36 = arith.constant 0 : index
    %31 = vector.load %arg17[%c0_35, %c0_36] : memref<64x128xf32, #tpu.memory_space<vmem>>, vector<8x128xf32>
    %cst_37 = arith.constant dense<0.000000e+00> : vector<8x128xf32>
    %32 = tpu.matmul %23, %7, %cst_37 {dimension_numbers = #tpu.dot_dimension_numbers<[1], [0], [0], [1], [0, 0, 1, 1], [], []>} : vector<8x32xf32>, vector<32x128xf32>, vector<8x128xf32> -> vector<8x128xf32>
    %33 = arith.addf %31, %32 : vector<8x128xf32>
    %34 = arith.negf %33 : vector<8x128xf32>
    %35 = math.exp %34 : vector<8x128xf32>
    %cst_38 = arith.constant 1.000000e+00 : f32
    %36 = vector.broadcast %cst_38 : f32 to vector<8x128xf32>
    %37 = arith.addf %36, %35 : vector<8x128xf32>
    %38 = arith.divf %36, %37 : vector<8x128xf32>
    %39 = math.tanh %33 : vector<8x128xf32>
    %40 = vector.extract_strided_slice %38 {offsets = [0, 0], sizes = [8, 32], strides = [1, 1]} : vector<8x128xf32> to vector<8x32xf32>
    %41 = vector.extract_strided_slice %38 {offsets = [0, 32], sizes = [8, 32], strides = [1, 1]} : vector<8x128xf32> to vector<8x32xf32>
    %42 = vector.extract_strided_slice %39 {offsets = [0, 64], sizes = [8, 32], strides = [1, 1]} : vector<8x128xf32> to vector<8x32xf32>
    %43 = vector.extract_strided_slice %38 {offsets = [0, 96], sizes = [8, 32], strides = [1, 1]} : vector<8x128xf32> to vector<8x32xf32>
    %44 = arith.mulf %41, %27 : vector<8x32xf32>
    %45 = arith.mulf %40, %42 : vector<8x32xf32>
    %46 = arith.addf %44, %45 : vector<8x32xf32>
    %47 = math.tanh %46 : vector<8x32xf32>
    %48 = arith.mulf %43, %47 : vector<8x32xf32>
    %cst_39 = arith.constant dense<0.000000e+00> : vector<8x128xf32>
    %49 = tpu.matmul %48, %11, %cst_39 {dimension_numbers = #tpu.dot_dimension_numbers<[1], [0], [0], [1], [0, 0, 1, 1], [], []>} : vector<8x32xf32>, vector<32x128xf32>, vector<8x128xf32> -> vector<8x128xf32>
    %cst_40 = arith.constant dense<0.000000e+00> : vector<8x128xf32>
    %50 = tpu.matmul %24, %8, %cst_40 {dimension_numbers = #tpu.dot_dimension_numbers<[1], [0], [0], [1], [0, 0, 1, 1], [], []>} : vector<8x32xf32>, vector<32x128xf32>, vector<8x128xf32> -> vector<8x128xf32>
    %51 = arith.addf %49, %50 : vector<8x128xf32>
    %52 = arith.addf %51, %16 : vector<8x128xf32>
    %53 = arith.negf %52 : vector<8x128xf32>
    %54 = math.exp %53 : vector<8x128xf32>
    %cst_41 = arith.constant 1.000000e+00 : f32
    %55 = vector.broadcast %cst_41 : f32 to vector<8x128xf32>
    %56 = arith.addf %55, %54 : vector<8x128xf32>
    %57 = arith.divf %55, %56 : vector<8x128xf32>
    %58 = math.tanh %52 : vector<8x128xf32>
    %59 = vector.extract_strided_slice %57 {offsets = [0, 0], sizes = [8, 32], strides = [1, 1]} : vector<8x128xf32> to vector<8x32xf32>
    %60 = vector.extract_strided_slice %57 {offsets = [0, 32], sizes = [8, 32], strides = [1, 1]} : vector<8x128xf32> to vector<8x32xf32>
    %61 = vector.extract_strided_slice %58 {offsets = [0, 64], sizes = [8, 32], strides = [1, 1]} : vector<8x128xf32> to vector<8x32xf32>
    %62 = vector.extract_strided_slice %57 {offsets = [0, 96], sizes = [8, 32], strides = [1, 1]} : vector<8x128xf32> to vector<8x32xf32>
    %63 = arith.mulf %60, %28 : vector<8x32xf32>
    %64 = arith.mulf %59, %61 : vector<8x32xf32>
    %65 = arith.addf %63, %64 : vector<8x32xf32>
    %66 = math.tanh %65 : vector<8x32xf32>
    %67 = arith.mulf %62, %66 : vector<8x32xf32>
    %c8 = arith.constant 8 : index
    %c0_42 = arith.constant 0 : index
    %68 = vector.load %arg17[%c8, %c0_42] : memref<64x128xf32, #tpu.memory_space<vmem>>, vector<8x128xf32>
    %cst_43 = arith.constant dense<0.000000e+00> : vector<8x128xf32>
    %69 = tpu.matmul %48, %7, %cst_43 {dimension_numbers = #tpu.dot_dimension_numbers<[1], [0], [0], [1], [0, 0, 1, 1], [], []>} : vector<8x32xf32>, vector<32x128xf32>, vector<8x128xf32> -> vector<8x128xf32>
    %70 = arith.addf %68, %69 : vector<8x128xf32>
    %71 = arith.negf %70 : vector<8x128xf32>
    %72 = math.exp %71 : vector<8x128xf32>
    %cst_44 = arith.constant 1.000000e+00 : f32
    %73 = vector.broadcast %cst_44 : f32 to vector<8x128xf32>
    %74 = arith.addf %73, %72 : vector<8x128xf32>
    %75 = arith.divf %73, %74 : vector<8x128xf32>
    %76 = math.tanh %70 : vector<8x128xf32>
    %77 = vector.extract_strided_slice %75 {offsets = [0, 0], sizes = [8, 32], strides = [1, 1]} : vector<8x128xf32> to vector<8x32xf32>
    %78 = vector.extract_strided_slice %75 {offsets = [0, 32], sizes = [8, 32], strides = [1, 1]} : vector<8x128xf32> to vector<8x32xf32>
    %79 = vector.extract_strided_slice %76 {offsets = [0, 64], sizes = [8, 32], strides = [1, 1]} : vector<8x128xf32> to vector<8x32xf32>
    %80 = vector.extract_strided_slice %75 {offsets = [0, 96], sizes = [8, 32], strides = [1, 1]} : vector<8x128xf32> to vector<8x32xf32>
    %81 = arith.mulf %78, %46 : vector<8x32xf32>
    %82 = arith.mulf %77, %79 : vector<8x32xf32>
    %83 = arith.addf %81, %82 : vector<8x32xf32>
    %84 = math.tanh %83 : vector<8x32xf32>
    %85 = arith.mulf %80, %84 : vector<8x32xf32>
    %cst_45 = arith.constant dense<0.000000e+00> : vector<8x128xf32>
    %86 = tpu.matmul %67, %12, %cst_45 {dimension_numbers = #tpu.dot_dimension_numbers<[1], [0], [0], [1], [0, 0, 1, 1], [], []>} : vector<8x32xf32>, vector<32x128xf32>, vector<8x128xf32> -> vector<8x128xf32>
    %cst_46 = arith.constant dense<0.000000e+00> : vector<8x128xf32>
    %87 = tpu.matmul %25, %9, %cst_46 {dimension_numbers = #tpu.dot_dimension_numbers<[1], [0], [0], [1], [0, 0, 1, 1], [], []>} : vector<8x32xf32>, vector<32x128xf32>, vector<8x128xf32> -> vector<8x128xf32>
    %88 = arith.addf %86, %87 : vector<8x128xf32>
    %89 = arith.addf %88, %19 : vector<8x128xf32>
    %90 = arith.negf %89 : vector<8x128xf32>
    %91 = math.exp %90 : vector<8x128xf32>
    %cst_47 = arith.constant 1.000000e+00 : f32
    %92 = vector.broadcast %cst_47 : f32 to vector<8x128xf32>
    %93 = arith.addf %92, %91 : vector<8x128xf32>
    %94 = arith.divf %92, %93 : vector<8x128xf32>
    %95 = math.tanh %89 : vector<8x128xf32>
    %96 = vector.extract_strided_slice %94 {offsets = [0, 0], sizes = [8, 32], strides = [1, 1]} : vector<8x128xf32> to vector<8x32xf32>
    %97 = vector.extract_strided_slice %94 {offsets = [0, 32], sizes = [8, 32], strides = [1, 1]} : vector<8x128xf32> to vector<8x32xf32>
    %98 = vector.extract_strided_slice %95 {offsets = [0, 64], sizes = [8, 32], strides = [1, 1]} : vector<8x128xf32> to vector<8x32xf32>
    %99 = vector.extract_strided_slice %94 {offsets = [0, 96], sizes = [8, 32], strides = [1, 1]} : vector<8x128xf32> to vector<8x32xf32>
    %100 = arith.mulf %97, %29 : vector<8x32xf32>
    %101 = arith.mulf %96, %98 : vector<8x32xf32>
    %102 = arith.addf %100, %101 : vector<8x32xf32>
    %103 = math.tanh %102 : vector<8x32xf32>
    %104 = arith.mulf %99, %103 : vector<8x32xf32>
    %cst_48 = arith.constant dense<0.000000e+00> : vector<8x128xf32>
    %105 = tpu.matmul %85, %11, %cst_48 {dimension_numbers = #tpu.dot_dimension_numbers<[1], [0], [0], [1], [0, 0, 1, 1], [], []>} : vector<8x32xf32>, vector<32x128xf32>, vector<8x128xf32> -> vector<8x128xf32>
    %cst_49 = arith.constant dense<0.000000e+00> : vector<8x128xf32>
    %106 = tpu.matmul %67, %8, %cst_49 {dimension_numbers = #tpu.dot_dimension_numbers<[1], [0], [0], [1], [0, 0, 1, 1], [], []>} : vector<8x32xf32>, vector<32x128xf32>, vector<8x128xf32> -> vector<8x128xf32>
    %107 = arith.addf %105, %106 : vector<8x128xf32>
    %108 = arith.addf %107, %16 : vector<8x128xf32>
    %109 = arith.negf %108 : vector<8x128xf32>
    %110 = math.exp %109 : vector<8x128xf32>
    %cst_50 = arith.constant 1.000000e+00 : f32
    %111 = vector.broadcast %cst_50 : f32 to vector<8x128xf32>
    %112 = arith.addf %111, %110 : vector<8x128xf32>
    %113 = arith.divf %111, %112 : vector<8x128xf32>
    %114 = math.tanh %108 : vector<8x128xf32>
    %115 = vector.extract_strided_slice %113 {offsets = [0, 0], sizes = [8, 32], strides = [1, 1]} : vector<8x128xf32> to vector<8x32xf32>
    %116 = vector.extract_strided_slice %113 {offsets = [0, 32], sizes = [8, 32], strides = [1, 1]} : vector<8x128xf32> to vector<8x32xf32>
    %117 = vector.extract_strided_slice %114 {offsets = [0, 64], sizes = [8, 32], strides = [1, 1]} : vector<8x128xf32> to vector<8x32xf32>
    %118 = vector.extract_strided_slice %113 {offsets = [0, 96], sizes = [8, 32], strides = [1, 1]} : vector<8x128xf32> to vector<8x32xf32>
    %119 = arith.mulf %116, %65 : vector<8x32xf32>
    %120 = arith.mulf %115, %117 : vector<8x32xf32>
    %121 = arith.addf %119, %120 : vector<8x32xf32>
    %122 = math.tanh %121 : vector<8x32xf32>
    %123 = arith.mulf %118, %122 : vector<8x32xf32>
    %c16 = arith.constant 16 : index
    %c0_51 = arith.constant 0 : index
    %124 = vector.load %arg17[%c16, %c0_51] : memref<64x128xf32, #tpu.memory_space<vmem>>, vector<8x128xf32>
    %cst_52 = arith.constant dense<0.000000e+00> : vector<8x128xf32>
    %125 = tpu.matmul %85, %7, %cst_52 {dimension_numbers = #tpu.dot_dimension_numbers<[1], [0], [0], [1], [0, 0, 1, 1], [], []>} : vector<8x32xf32>, vector<32x128xf32>, vector<8x128xf32> -> vector<8x128xf32>
    %126 = arith.addf %124, %125 : vector<8x128xf32>
    %127 = arith.negf %126 : vector<8x128xf32>
    %128 = math.exp %127 : vector<8x128xf32>
    %cst_53 = arith.constant 1.000000e+00 : f32
    %129 = vector.broadcast %cst_53 : f32 to vector<8x128xf32>
    %130 = arith.addf %129, %128 : vector<8x128xf32>
    %131 = arith.divf %129, %130 : vector<8x128xf32>
    %132 = math.tanh %126 : vector<8x128xf32>
    %133 = vector.extract_strided_slice %131 {offsets = [0, 0], sizes = [8, 32], strides = [1, 1]} : vector<8x128xf32> to vector<8x32xf32>
    %134 = vector.extract_strided_slice %131 {offsets = [0, 32], sizes = [8, 32], strides = [1, 1]} : vector<8x128xf32> to vector<8x32xf32>
    %135 = vector.extract_strided_slice %132 {offsets = [0, 64], sizes = [8, 32], strides = [1, 1]} : vector<8x128xf32> to vector<8x32xf32>
    %136 = vector.extract_strided_slice %131 {offsets = [0, 96], sizes = [8, 32], strides = [1, 1]} : vector<8x128xf32> to vector<8x32xf32>
    %137 = arith.mulf %134, %83 : vector<8x32xf32>
    %138 = arith.mulf %133, %135 : vector<8x32xf32>
    %139 = arith.addf %137, %138 : vector<8x32xf32>
    %140 = math.tanh %139 : vector<8x32xf32>
    %141 = arith.mulf %136, %140 : vector<8x32xf32>
    %cst_54 = arith.constant dense<0.000000e+00> : vector<8x128xf32>
    %142 = tpu.matmul %104, %13, %cst_54 {dimension_numbers = #tpu.dot_dimension_numbers<[1], [0], [0], [1], [0, 0, 1, 1], [], []>} : vector<8x32xf32>, vector<32x128xf32>, vector<8x128xf32> -> vector<8x128xf32>
    %cst_55 = arith.constant dense<0.000000e+00> : vector<8x128xf32>
    %143 = tpu.matmul %26, %10, %cst_55 {dimension_numbers = #tpu.dot_dimension_numbers<[1], [0], [0], [1], [0, 0, 1, 1], [], []>} : vector<8x32xf32>, vector<32x128xf32>, vector<8x128xf32> -> vector<8x128xf32>
    %144 = arith.addf %142, %143 : vector<8x128xf32>
    %145 = arith.addf %144, %22 : vector<8x128xf32>
    %146 = arith.negf %145 : vector<8x128xf32>
    %147 = math.exp %146 : vector<8x128xf32>
    %cst_56 = arith.constant 1.000000e+00 : f32
    %148 = vector.broadcast %cst_56 : f32 to vector<8x128xf32>
    %149 = arith.addf %148, %147 : vector<8x128xf32>
    %150 = arith.divf %148, %149 : vector<8x128xf32>
    %151 = math.tanh %145 : vector<8x128xf32>
    %152 = vector.extract_strided_slice %150 {offsets = [0, 0], sizes = [8, 32], strides = [1, 1]} : vector<8x128xf32> to vector<8x32xf32>
    %153 = vector.extract_strided_slice %150 {offsets = [0, 32], sizes = [8, 32], strides = [1, 1]} : vector<8x128xf32> to vector<8x32xf32>
    %154 = vector.extract_strided_slice %151 {offsets = [0, 64], sizes = [8, 32], strides = [1, 1]} : vector<8x128xf32> to vector<8x32xf32>
    %155 = vector.extract_strided_slice %150 {offsets = [0, 96], sizes = [8, 32], strides = [1, 1]} : vector<8x128xf32> to vector<8x32xf32>
    %156 = arith.mulf %153, %30 : vector<8x32xf32>
    %157 = arith.mulf %152, %154 : vector<8x32xf32>
    %158 = arith.addf %156, %157 : vector<8x32xf32>
    %159 = math.tanh %158 : vector<8x32xf32>
    %160 = arith.mulf %155, %159 : vector<8x32xf32>
    %cst_57 = arith.constant dense<0.000000e+00> : vector<8x128xf32>
    %161 = tpu.matmul %123, %12, %cst_57 {dimension_numbers = #tpu.dot_dimension_numbers<[1], [0], [0], [1], [0, 0, 1, 1], [], []>} : vector<8x32xf32>, vector<32x128xf32>, vector<8x128xf32> -> vector<8x128xf32>
    %cst_58 = arith.constant dense<0.000000e+00> : vector<8x128xf32>
    %162 = tpu.matmul %104, %9, %cst_58 {dimension_numbers = #tpu.dot_dimension_numbers<[1], [0], [0], [1], [0, 0, 1, 1], [], []>} : vector<8x32xf32>, vector<32x128xf32>, vector<8x128xf32> -> vector<8x128xf32>
    %163 = arith.addf %161, %162 : vector<8x128xf32>
    %164 = arith.addf %163, %19 : vector<8x128xf32>
    %165 = arith.negf %164 : vector<8x128xf32>
    %166 = math.exp %165 : vector<8x128xf32>
    %cst_59 = arith.constant 1.000000e+00 : f32
    %167 = vector.broadcast %cst_59 : f32 to vector<8x128xf32>
    %168 = arith.addf %167, %166 : vector<8x128xf32>
    %169 = arith.divf %167, %168 : vector<8x128xf32>
    %170 = math.tanh %164 : vector<8x128xf32>
    %171 = vector.extract_strided_slice %169 {offsets = [0, 0], sizes = [8, 32], strides = [1, 1]} : vector<8x128xf32> to vector<8x32xf32>
    %172 = vector.extract_strided_slice %169 {offsets = [0, 32], sizes = [8, 32], strides = [1, 1]} : vector<8x128xf32> to vector<8x32xf32>
    %173 = vector.extract_strided_slice %170 {offsets = [0, 64], sizes = [8, 32], strides = [1, 1]} : vector<8x128xf32> to vector<8x32xf32>
    %174 = vector.extract_strided_slice %169 {offsets = [0, 96], sizes = [8, 32], strides = [1, 1]} : vector<8x128xf32> to vector<8x32xf32>
    %175 = arith.mulf %172, %102 : vector<8x32xf32>
    %176 = arith.mulf %171, %173 : vector<8x32xf32>
    %177 = arith.addf %175, %176 : vector<8x32xf32>
    %178 = math.tanh %177 : vector<8x32xf32>
    %179 = arith.mulf %174, %178 : vector<8x32xf32>
    %cst_60 = arith.constant dense<0.000000e+00> : vector<8x128xf32>
    %180 = tpu.matmul %141, %11, %cst_60 {dimension_numbers = #tpu.dot_dimension_numbers<[1], [0], [0], [1], [0, 0, 1, 1], [], []>} : vector<8x32xf32>, vector<32x128xf32>, vector<8x128xf32> -> vector<8x128xf32>
    %cst_61 = arith.constant dense<0.000000e+00> : vector<8x128xf32>
    %181 = tpu.matmul %123, %8, %cst_61 {dimension_numbers = #tpu.dot_dimension_numbers<[1], [0], [0], [1], [0, 0, 1, 1], [], []>} : vector<8x32xf32>, vector<32x128xf32>, vector<8x128xf32> -> vector<8x128xf32>
    %182 = arith.addf %180, %181 : vector<8x128xf32>
    %183 = arith.addf %182, %16 : vector<8x128xf32>
    %184 = arith.negf %183 : vector<8x128xf32>
    %185 = math.exp %184 : vector<8x128xf32>
    %cst_62 = arith.constant 1.000000e+00 : f32
    %186 = vector.broadcast %cst_62 : f32 to vector<8x128xf32>
    %187 = arith.addf %186, %185 : vector<8x128xf32>
    %188 = arith.divf %186, %187 : vector<8x128xf32>
    %189 = math.tanh %183 : vector<8x128xf32>
    %190 = vector.extract_strided_slice %188 {offsets = [0, 0], sizes = [8, 32], strides = [1, 1]} : vector<8x128xf32> to vector<8x32xf32>
    %191 = vector.extract_strided_slice %188 {offsets = [0, 32], sizes = [8, 32], strides = [1, 1]} : vector<8x128xf32> to vector<8x32xf32>
    %192 = vector.extract_strided_slice %189 {offsets = [0, 64], sizes = [8, 32], strides = [1, 1]} : vector<8x128xf32> to vector<8x32xf32>
    %193 = vector.extract_strided_slice %188 {offsets = [0, 96], sizes = [8, 32], strides = [1, 1]} : vector<8x128xf32> to vector<8x32xf32>
    %194 = arith.mulf %191, %121 : vector<8x32xf32>
    %195 = arith.mulf %190, %192 : vector<8x32xf32>
    %196 = arith.addf %194, %195 : vector<8x32xf32>
    %197 = math.tanh %196 : vector<8x32xf32>
    %198 = arith.mulf %193, %197 : vector<8x32xf32>
    %c24 = arith.constant 24 : index
    %c0_63 = arith.constant 0 : index
    %199 = vector.load %arg17[%c24, %c0_63] : memref<64x128xf32, #tpu.memory_space<vmem>>, vector<8x128xf32>
    %cst_64 = arith.constant dense<0.000000e+00> : vector<8x128xf32>
    %200 = tpu.matmul %141, %7, %cst_64 {dimension_numbers = #tpu.dot_dimension_numbers<[1], [0], [0], [1], [0, 0, 1, 1], [], []>} : vector<8x32xf32>, vector<32x128xf32>, vector<8x128xf32> -> vector<8x128xf32>
    %201 = arith.addf %199, %200 : vector<8x128xf32>
    %202 = arith.negf %201 : vector<8x128xf32>
    %203 = math.exp %202 : vector<8x128xf32>
    %cst_65 = arith.constant 1.000000e+00 : f32
    %204 = vector.broadcast %cst_65 : f32 to vector<8x128xf32>
    %205 = arith.addf %204, %203 : vector<8x128xf32>
    %206 = arith.divf %204, %205 : vector<8x128xf32>
    %207 = math.tanh %201 : vector<8x128xf32>
    %208 = vector.extract_strided_slice %206 {offsets = [0, 0], sizes = [8, 32], strides = [1, 1]} : vector<8x128xf32> to vector<8x32xf32>
    %209 = vector.extract_strided_slice %206 {offsets = [0, 32], sizes = [8, 32], strides = [1, 1]} : vector<8x128xf32> to vector<8x32xf32>
    %210 = vector.extract_strided_slice %207 {offsets = [0, 64], sizes = [8, 32], strides = [1, 1]} : vector<8x128xf32> to vector<8x32xf32>
    %211 = vector.extract_strided_slice %206 {offsets = [0, 96], sizes = [8, 32], strides = [1, 1]} : vector<8x128xf32> to vector<8x32xf32>
    %212 = arith.mulf %209, %139 : vector<8x32xf32>
    %213 = arith.mulf %208, %210 : vector<8x32xf32>
    %214 = arith.addf %212, %213 : vector<8x32xf32>
    %215 = math.tanh %214 : vector<8x32xf32>
    %216 = arith.mulf %211, %215 : vector<8x32xf32>
    %cst_66 = arith.constant dense<0.000000e+00> : vector<8x128xf32>
    %217 = tpu.matmul %179, %13, %cst_66 {dimension_numbers = #tpu.dot_dimension_numbers<[1], [0], [0], [1], [0, 0, 1, 1], [], []>} : vector<8x32xf32>, vector<32x128xf32>, vector<8x128xf32> -> vector<8x128xf32>
    %cst_67 = arith.constant dense<0.000000e+00> : vector<8x128xf32>
    %218 = tpu.matmul %160, %10, %cst_67 {dimension_numbers = #tpu.dot_dimension_numbers<[1], [0], [0], [1], [0, 0, 1, 1], [], []>} : vector<8x32xf32>, vector<32x128xf32>, vector<8x128xf32> -> vector<8x128xf32>
    %219 = arith.addf %217, %218 : vector<8x128xf32>
    %220 = arith.addf %219, %22 : vector<8x128xf32>
    %221 = arith.negf %220 : vector<8x128xf32>
    %222 = math.exp %221 : vector<8x128xf32>
    %cst_68 = arith.constant 1.000000e+00 : f32
    %223 = vector.broadcast %cst_68 : f32 to vector<8x128xf32>
    %224 = arith.addf %223, %222 : vector<8x128xf32>
    %225 = arith.divf %223, %224 : vector<8x128xf32>
    %226 = math.tanh %220 : vector<8x128xf32>
    %227 = vector.extract_strided_slice %225 {offsets = [0, 0], sizes = [8, 32], strides = [1, 1]} : vector<8x128xf32> to vector<8x32xf32>
    %228 = vector.extract_strided_slice %225 {offsets = [0, 32], sizes = [8, 32], strides = [1, 1]} : vector<8x128xf32> to vector<8x32xf32>
    %229 = vector.extract_strided_slice %226 {offsets = [0, 64], sizes = [8, 32], strides = [1, 1]} : vector<8x128xf32> to vector<8x32xf32>
    %230 = vector.extract_strided_slice %225 {offsets = [0, 96], sizes = [8, 32], strides = [1, 1]} : vector<8x128xf32> to vector<8x32xf32>
    %231 = arith.mulf %228, %158 : vector<8x32xf32>
    %232 = arith.mulf %227, %229 : vector<8x32xf32>
    %233 = arith.addf %231, %232 : vector<8x32xf32>
    %234 = math.tanh %233 : vector<8x32xf32>
    %235 = arith.mulf %230, %234 : vector<8x32xf32>
    %cst_69 = arith.constant dense<0.000000e+00> : vector<8x128xf32>
    %236 = tpu.matmul %198, %12, %cst_69 {dimension_numbers = #tpu.dot_dimension_numbers<[1], [0], [0], [1], [0, 0, 1, 1], [], []>} : vector<8x32xf32>, vector<32x128xf32>, vector<8x128xf32> -> vector<8x128xf32>
    %cst_70 = arith.constant dense<0.000000e+00> : vector<8x128xf32>
    %237 = tpu.matmul %179, %9, %cst_70 {dimension_numbers = #tpu.dot_dimension_numbers<[1], [0], [0], [1], [0, 0, 1, 1], [], []>} : vector<8x32xf32>, vector<32x128xf32>, vector<8x128xf32> -> vector<8x128xf32>
    %238 = arith.addf %236, %237 : vector<8x128xf32>
    %239 = arith.addf %238, %19 : vector<8x128xf32>
    %240 = arith.negf %239 : vector<8x128xf32>
    %241 = math.exp %240 : vector<8x128xf32>
    %cst_71 = arith.constant 1.000000e+00 : f32
    %242 = vector.broadcast %cst_71 : f32 to vector<8x128xf32>
    %243 = arith.addf %242, %241 : vector<8x128xf32>
    %244 = arith.divf %242, %243 : vector<8x128xf32>
    %245 = math.tanh %239 : vector<8x128xf32>
    %246 = vector.extract_strided_slice %244 {offsets = [0, 0], sizes = [8, 32], strides = [1, 1]} : vector<8x128xf32> to vector<8x32xf32>
    %247 = vector.extract_strided_slice %244 {offsets = [0, 32], sizes = [8, 32], strides = [1, 1]} : vector<8x128xf32> to vector<8x32xf32>
    %248 = vector.extract_strided_slice %245 {offsets = [0, 64], sizes = [8, 32], strides = [1, 1]} : vector<8x128xf32> to vector<8x32xf32>
    %249 = vector.extract_strided_slice %244 {offsets = [0, 96], sizes = [8, 32], strides = [1, 1]} : vector<8x128xf32> to vector<8x32xf32>
    %250 = arith.mulf %247, %177 : vector<8x32xf32>
    %251 = arith.mulf %246, %248 : vector<8x32xf32>
    %252 = arith.addf %250, %251 : vector<8x32xf32>
    %253 = math.tanh %252 : vector<8x32xf32>
    %254 = arith.mulf %249, %253 : vector<8x32xf32>
    %cst_72 = arith.constant dense<0.000000e+00> : vector<8x128xf32>
    %255 = tpu.matmul %216, %11, %cst_72 {dimension_numbers = #tpu.dot_dimension_numbers<[1], [0], [0], [1], [0, 0, 1, 1], [], []>} : vector<8x32xf32>, vector<32x128xf32>, vector<8x128xf32> -> vector<8x128xf32>
    %cst_73 = arith.constant dense<0.000000e+00> : vector<8x128xf32>
    %256 = tpu.matmul %198, %8, %cst_73 {dimension_numbers = #tpu.dot_dimension_numbers<[1], [0], [0], [1], [0, 0, 1, 1], [], []>} : vector<8x32xf32>, vector<32x128xf32>, vector<8x128xf32> -> vector<8x128xf32>
    %257 = arith.addf %255, %256 : vector<8x128xf32>
    %258 = arith.addf %257, %16 : vector<8x128xf32>
    %259 = arith.negf %258 : vector<8x128xf32>
    %260 = math.exp %259 : vector<8x128xf32>
    %cst_74 = arith.constant 1.000000e+00 : f32
    %261 = vector.broadcast %cst_74 : f32 to vector<8x128xf32>
    %262 = arith.addf %261, %260 : vector<8x128xf32>
    %263 = arith.divf %261, %262 : vector<8x128xf32>
    %264 = math.tanh %258 : vector<8x128xf32>
    %265 = vector.extract_strided_slice %263 {offsets = [0, 0], sizes = [8, 32], strides = [1, 1]} : vector<8x128xf32> to vector<8x32xf32>
    %266 = vector.extract_strided_slice %263 {offsets = [0, 32], sizes = [8, 32], strides = [1, 1]} : vector<8x128xf32> to vector<8x32xf32>
    %267 = vector.extract_strided_slice %264 {offsets = [0, 64], sizes = [8, 32], strides = [1, 1]} : vector<8x128xf32> to vector<8x32xf32>
    %268 = vector.extract_strided_slice %263 {offsets = [0, 96], sizes = [8, 32], strides = [1, 1]} : vector<8x128xf32> to vector<8x32xf32>
    %269 = arith.mulf %266, %196 : vector<8x32xf32>
    %270 = arith.mulf %265, %267 : vector<8x32xf32>
    %271 = arith.addf %269, %270 : vector<8x32xf32>
    %272 = math.tanh %271 : vector<8x32xf32>
    %273 = arith.mulf %268, %272 : vector<8x32xf32>
    %c32 = arith.constant 32 : index
    %c0_75 = arith.constant 0 : index
    %274 = vector.load %arg17[%c32, %c0_75] : memref<64x128xf32, #tpu.memory_space<vmem>>, vector<8x128xf32>
    %cst_76 = arith.constant dense<0.000000e+00> : vector<8x128xf32>
    %275 = tpu.matmul %216, %7, %cst_76 {dimension_numbers = #tpu.dot_dimension_numbers<[1], [0], [0], [1], [0, 0, 1, 1], [], []>} : vector<8x32xf32>, vector<32x128xf32>, vector<8x128xf32> -> vector<8x128xf32>
    %276 = arith.addf %274, %275 : vector<8x128xf32>
    %277 = arith.negf %276 : vector<8x128xf32>
    %278 = math.exp %277 : vector<8x128xf32>
    %cst_77 = arith.constant 1.000000e+00 : f32
    %279 = vector.broadcast %cst_77 : f32 to vector<8x128xf32>
    %280 = arith.addf %279, %278 : vector<8x128xf32>
    %281 = arith.divf %279, %280 : vector<8x128xf32>
    %282 = math.tanh %276 : vector<8x128xf32>
    %283 = vector.extract_strided_slice %281 {offsets = [0, 0], sizes = [8, 32], strides = [1, 1]} : vector<8x128xf32> to vector<8x32xf32>
    %284 = vector.extract_strided_slice %281 {offsets = [0, 32], sizes = [8, 32], strides = [1, 1]} : vector<8x128xf32> to vector<8x32xf32>
    %285 = vector.extract_strided_slice %282 {offsets = [0, 64], sizes = [8, 32], strides = [1, 1]} : vector<8x128xf32> to vector<8x32xf32>
    %286 = vector.extract_strided_slice %281 {offsets = [0, 96], sizes = [8, 32], strides = [1, 1]} : vector<8x128xf32> to vector<8x32xf32>
    %287 = arith.mulf %284, %214 : vector<8x32xf32>
    %288 = arith.mulf %283, %285 : vector<8x32xf32>
    %289 = arith.addf %287, %288 : vector<8x32xf32>
    %290 = math.tanh %289 : vector<8x32xf32>
    %291 = arith.mulf %286, %290 : vector<8x32xf32>
    %cst_78 = arith.constant dense<0.000000e+00> : vector<8x128xf32>
    %292 = tpu.matmul %254, %13, %cst_78 {dimension_numbers = #tpu.dot_dimension_numbers<[1], [0], [0], [1], [0, 0, 1, 1], [], []>} : vector<8x32xf32>, vector<32x128xf32>, vector<8x128xf32> -> vector<8x128xf32>
    %cst_79 = arith.constant dense<0.000000e+00> : vector<8x128xf32>
    %293 = tpu.matmul %235, %10, %cst_79 {dimension_numbers = #tpu.dot_dimension_numbers<[1], [0], [0], [1], [0, 0, 1, 1], [], []>} : vector<8x32xf32>, vector<32x128xf32>, vector<8x128xf32> -> vector<8x128xf32>
    %294 = arith.addf %292, %293 : vector<8x128xf32>
    %295 = arith.addf %294, %22 : vector<8x128xf32>
    %296 = arith.negf %295 : vector<8x128xf32>
    %297 = math.exp %296 : vector<8x128xf32>
    %cst_80 = arith.constant 1.000000e+00 : f32
    %298 = vector.broadcast %cst_80 : f32 to vector<8x128xf32>
    %299 = arith.addf %298, %297 : vector<8x128xf32>
    %300 = arith.divf %298, %299 : vector<8x128xf32>
    %301 = math.tanh %295 : vector<8x128xf32>
    %302 = vector.extract_strided_slice %300 {offsets = [0, 0], sizes = [8, 32], strides = [1, 1]} : vector<8x128xf32> to vector<8x32xf32>
    %303 = vector.extract_strided_slice %300 {offsets = [0, 32], sizes = [8, 32], strides = [1, 1]} : vector<8x128xf32> to vector<8x32xf32>
    %304 = vector.extract_strided_slice %301 {offsets = [0, 64], sizes = [8, 32], strides = [1, 1]} : vector<8x128xf32> to vector<8x32xf32>
    %305 = vector.extract_strided_slice %300 {offsets = [0, 96], sizes = [8, 32], strides = [1, 1]} : vector<8x128xf32> to vector<8x32xf32>
    %306 = arith.mulf %303, %233 : vector<8x32xf32>
    %307 = arith.mulf %302, %304 : vector<8x32xf32>
    %308 = arith.addf %306, %307 : vector<8x32xf32>
    %309 = math.tanh %308 : vector<8x32xf32>
    %310 = arith.mulf %305, %309 : vector<8x32xf32>
    %cst_81 = arith.constant dense<0.000000e+00> : vector<8x128xf32>
    %311 = tpu.matmul %273, %12, %cst_81 {dimension_numbers = #tpu.dot_dimension_numbers<[1], [0], [0], [1], [0, 0, 1, 1], [], []>} : vector<8x32xf32>, vector<32x128xf32>, vector<8x128xf32> -> vector<8x128xf32>
    %cst_82 = arith.constant dense<0.000000e+00> : vector<8x128xf32>
    %312 = tpu.matmul %254, %9, %cst_82 {dimension_numbers = #tpu.dot_dimension_numbers<[1], [0], [0], [1], [0, 0, 1, 1], [], []>} : vector<8x32xf32>, vector<32x128xf32>, vector<8x128xf32> -> vector<8x128xf32>
    %313 = arith.addf %311, %312 : vector<8x128xf32>
    %314 = arith.addf %313, %19 : vector<8x128xf32>
    %315 = arith.negf %314 : vector<8x128xf32>
    %316 = math.exp %315 : vector<8x128xf32>
    %cst_83 = arith.constant 1.000000e+00 : f32
    %317 = vector.broadcast %cst_83 : f32 to vector<8x128xf32>
    %318 = arith.addf %317, %316 : vector<8x128xf32>
    %319 = arith.divf %317, %318 : vector<8x128xf32>
    %320 = math.tanh %314 : vector<8x128xf32>
    %321 = vector.extract_strided_slice %319 {offsets = [0, 0], sizes = [8, 32], strides = [1, 1]} : vector<8x128xf32> to vector<8x32xf32>
    %322 = vector.extract_strided_slice %319 {offsets = [0, 32], sizes = [8, 32], strides = [1, 1]} : vector<8x128xf32> to vector<8x32xf32>
    %323 = vector.extract_strided_slice %320 {offsets = [0, 64], sizes = [8, 32], strides = [1, 1]} : vector<8x128xf32> to vector<8x32xf32>
    %324 = vector.extract_strided_slice %319 {offsets = [0, 96], sizes = [8, 32], strides = [1, 1]} : vector<8x128xf32> to vector<8x32xf32>
    %325 = arith.mulf %322, %252 : vector<8x32xf32>
    %326 = arith.mulf %321, %323 : vector<8x32xf32>
    %327 = arith.addf %325, %326 : vector<8x32xf32>
    %328 = math.tanh %327 : vector<8x32xf32>
    %329 = arith.mulf %324, %328 : vector<8x32xf32>
    %cst_84 = arith.constant dense<0.000000e+00> : vector<8x128xf32>
    %330 = tpu.matmul %291, %11, %cst_84 {dimension_numbers = #tpu.dot_dimension_numbers<[1], [0], [0], [1], [0, 0, 1, 1], [], []>} : vector<8x32xf32>, vector<32x128xf32>, vector<8x128xf32> -> vector<8x128xf32>
    %cst_85 = arith.constant dense<0.000000e+00> : vector<8x128xf32>
    %331 = tpu.matmul %273, %8, %cst_85 {dimension_numbers = #tpu.dot_dimension_numbers<[1], [0], [0], [1], [0, 0, 1, 1], [], []>} : vector<8x32xf32>, vector<32x128xf32>, vector<8x128xf32> -> vector<8x128xf32>
    %332 = arith.addf %330, %331 : vector<8x128xf32>
    %333 = arith.addf %332, %16 : vector<8x128xf32>
    %334 = arith.negf %333 : vector<8x128xf32>
    %335 = math.exp %334 : vector<8x128xf32>
    %cst_86 = arith.constant 1.000000e+00 : f32
    %336 = vector.broadcast %cst_86 : f32 to vector<8x128xf32>
    %337 = arith.addf %336, %335 : vector<8x128xf32>
    %338 = arith.divf %336, %337 : vector<8x128xf32>
    %339 = math.tanh %333 : vector<8x128xf32>
    %340 = vector.extract_strided_slice %338 {offsets = [0, 0], sizes = [8, 32], strides = [1, 1]} : vector<8x128xf32> to vector<8x32xf32>
    %341 = vector.extract_strided_slice %338 {offsets = [0, 32], sizes = [8, 32], strides = [1, 1]} : vector<8x128xf32> to vector<8x32xf32>
    %342 = vector.extract_strided_slice %339 {offsets = [0, 64], sizes = [8, 32], strides = [1, 1]} : vector<8x128xf32> to vector<8x32xf32>
    %343 = vector.extract_strided_slice %338 {offsets = [0, 96], sizes = [8, 32], strides = [1, 1]} : vector<8x128xf32> to vector<8x32xf32>
    %344 = arith.mulf %341, %271 : vector<8x32xf32>
    %345 = arith.mulf %340, %342 : vector<8x32xf32>
    %346 = arith.addf %344, %345 : vector<8x32xf32>
    %347 = math.tanh %346 : vector<8x32xf32>
    %348 = arith.mulf %343, %347 : vector<8x32xf32>
    %c40 = arith.constant 40 : index
    %c0_87 = arith.constant 0 : index
    %349 = vector.load %arg17[%c40, %c0_87] : memref<64x128xf32, #tpu.memory_space<vmem>>, vector<8x128xf32>
    %cst_88 = arith.constant dense<0.000000e+00> : vector<8x128xf32>
    %350 = tpu.matmul %291, %7, %cst_88 {dimension_numbers = #tpu.dot_dimension_numbers<[1], [0], [0], [1], [0, 0, 1, 1], [], []>} : vector<8x32xf32>, vector<32x128xf32>, vector<8x128xf32> -> vector<8x128xf32>
    %351 = arith.addf %349, %350 : vector<8x128xf32>
    %352 = arith.negf %351 : vector<8x128xf32>
    %353 = math.exp %352 : vector<8x128xf32>
    %cst_89 = arith.constant 1.000000e+00 : f32
    %354 = vector.broadcast %cst_89 : f32 to vector<8x128xf32>
    %355 = arith.addf %354, %353 : vector<8x128xf32>
    %356 = arith.divf %354, %355 : vector<8x128xf32>
    %357 = math.tanh %351 : vector<8x128xf32>
    %358 = vector.extract_strided_slice %356 {offsets = [0, 0], sizes = [8, 32], strides = [1, 1]} : vector<8x128xf32> to vector<8x32xf32>
    %359 = vector.extract_strided_slice %356 {offsets = [0, 32], sizes = [8, 32], strides = [1, 1]} : vector<8x128xf32> to vector<8x32xf32>
    %360 = vector.extract_strided_slice %357 {offsets = [0, 64], sizes = [8, 32], strides = [1, 1]} : vector<8x128xf32> to vector<8x32xf32>
    %361 = vector.extract_strided_slice %356 {offsets = [0, 96], sizes = [8, 32], strides = [1, 1]} : vector<8x128xf32> to vector<8x32xf32>
    %362 = arith.mulf %359, %289 : vector<8x32xf32>
    %363 = arith.mulf %358, %360 : vector<8x32xf32>
    %364 = arith.addf %362, %363 : vector<8x32xf32>
    %365 = math.tanh %364 : vector<8x32xf32>
    %366 = arith.mulf %361, %365 : vector<8x32xf32>
    %cst_90 = arith.constant dense<0.000000e+00> : vector<8x128xf32>
    %367 = tpu.matmul %329, %13, %cst_90 {dimension_numbers = #tpu.dot_dimension_numbers<[1], [0], [0], [1], [0, 0, 1, 1], [], []>} : vector<8x32xf32>, vector<32x128xf32>, vector<8x128xf32> -> vector<8x128xf32>
    %cst_91 = arith.constant dense<0.000000e+00> : vector<8x128xf32>
    %368 = tpu.matmul %310, %10, %cst_91 {dimension_numbers = #tpu.dot_dimension_numbers<[1], [0], [0], [1], [0, 0, 1, 1], [], []>} : vector<8x32xf32>, vector<32x128xf32>, vector<8x128xf32> -> vector<8x128xf32>
    %369 = arith.addf %367, %368 : vector<8x128xf32>
    %370 = arith.addf %369, %22 : vector<8x128xf32>
    %371 = arith.negf %370 : vector<8x128xf32>
    %372 = math.exp %371 : vector<8x128xf32>
    %cst_92 = arith.constant 1.000000e+00 : f32
    %373 = vector.broadcast %cst_92 : f32 to vector<8x128xf32>
    %374 = arith.addf %373, %372 : vector<8x128xf32>
    %375 = arith.divf %373, %374 : vector<8x128xf32>
    %376 = math.tanh %370 : vector<8x128xf32>
    %377 = vector.extract_strided_slice %375 {offsets = [0, 0], sizes = [8, 32], strides = [1, 1]} : vector<8x128xf32> to vector<8x32xf32>
    %378 = vector.extract_strided_slice %375 {offsets = [0, 32], sizes = [8, 32], strides = [1, 1]} : vector<8x128xf32> to vector<8x32xf32>
    %379 = vector.extract_strided_slice %376 {offsets = [0, 64], sizes = [8, 32], strides = [1, 1]} : vector<8x128xf32> to vector<8x32xf32>
    %380 = vector.extract_strided_slice %375 {offsets = [0, 96], sizes = [8, 32], strides = [1, 1]} : vector<8x128xf32> to vector<8x32xf32>
    %381 = arith.mulf %378, %308 : vector<8x32xf32>
    %382 = arith.mulf %377, %379 : vector<8x32xf32>
    %383 = arith.addf %381, %382 : vector<8x32xf32>
    %384 = math.tanh %383 : vector<8x32xf32>
    %385 = arith.mulf %380, %384 : vector<8x32xf32>
    %cst_93 = arith.constant dense<0.000000e+00> : vector<8x128xf32>
    %386 = tpu.matmul %348, %12, %cst_93 {dimension_numbers = #tpu.dot_dimension_numbers<[1], [0], [0], [1], [0, 0, 1, 1], [], []>} : vector<8x32xf32>, vector<32x128xf32>, vector<8x128xf32> -> vector<8x128xf32>
    %cst_94 = arith.constant dense<0.000000e+00> : vector<8x128xf32>
    %387 = tpu.matmul %329, %9, %cst_94 {dimension_numbers = #tpu.dot_dimension_numbers<[1], [0], [0], [1], [0, 0, 1, 1], [], []>} : vector<8x32xf32>, vector<32x128xf32>, vector<8x128xf32> -> vector<8x128xf32>
    %388 = arith.addf %386, %387 : vector<8x128xf32>
    %389 = arith.addf %388, %19 : vector<8x128xf32>
    %390 = arith.negf %389 : vector<8x128xf32>
    %391 = math.exp %390 : vector<8x128xf32>
    %cst_95 = arith.constant 1.000000e+00 : f32
    %392 = vector.broadcast %cst_95 : f32 to vector<8x128xf32>
    %393 = arith.addf %392, %391 : vector<8x128xf32>
    %394 = arith.divf %392, %393 : vector<8x128xf32>
    %395 = math.tanh %389 : vector<8x128xf32>
    %396 = vector.extract_strided_slice %394 {offsets = [0, 0], sizes = [8, 32], strides = [1, 1]} : vector<8x128xf32> to vector<8x32xf32>
    %397 = vector.extract_strided_slice %394 {offsets = [0, 32], sizes = [8, 32], strides = [1, 1]} : vector<8x128xf32> to vector<8x32xf32>
    %398 = vector.extract_strided_slice %395 {offsets = [0, 64], sizes = [8, 32], strides = [1, 1]} : vector<8x128xf32> to vector<8x32xf32>
    %399 = vector.extract_strided_slice %394 {offsets = [0, 96], sizes = [8, 32], strides = [1, 1]} : vector<8x128xf32> to vector<8x32xf32>
    %400 = arith.mulf %397, %327 : vector<8x32xf32>
    %401 = arith.mulf %396, %398 : vector<8x32xf32>
    %402 = arith.addf %400, %401 : vector<8x32xf32>
    %403 = math.tanh %402 : vector<8x32xf32>
    %404 = arith.mulf %399, %403 : vector<8x32xf32>
    %cst_96 = arith.constant dense<0.000000e+00> : vector<8x128xf32>
    %405 = tpu.matmul %366, %11, %cst_96 {dimension_numbers = #tpu.dot_dimension_numbers<[1], [0], [0], [1], [0, 0, 1, 1], [], []>} : vector<8x32xf32>, vector<32x128xf32>, vector<8x128xf32> -> vector<8x128xf32>
    %cst_97 = arith.constant dense<0.000000e+00> : vector<8x128xf32>
    %406 = tpu.matmul %348, %8, %cst_97 {dimension_numbers = #tpu.dot_dimension_numbers<[1], [0], [0], [1], [0, 0, 1, 1], [], []>} : vector<8x32xf32>, vector<32x128xf32>, vector<8x128xf32> -> vector<8x128xf32>
    %407 = arith.addf %405, %406 : vector<8x128xf32>
    %408 = arith.addf %407, %16 : vector<8x128xf32>
    %409 = arith.negf %408 : vector<8x128xf32>
    %410 = math.exp %409 : vector<8x128xf32>
    %cst_98 = arith.constant 1.000000e+00 : f32
    %411 = vector.broadcast %cst_98 : f32 to vector<8x128xf32>
    %412 = arith.addf %411, %410 : vector<8x128xf32>
    %413 = arith.divf %411, %412 : vector<8x128xf32>
    %414 = math.tanh %408 : vector<8x128xf32>
    %415 = vector.extract_strided_slice %413 {offsets = [0, 0], sizes = [8, 32], strides = [1, 1]} : vector<8x128xf32> to vector<8x32xf32>
    %416 = vector.extract_strided_slice %413 {offsets = [0, 32], sizes = [8, 32], strides = [1, 1]} : vector<8x128xf32> to vector<8x32xf32>
    %417 = vector.extract_strided_slice %414 {offsets = [0, 64], sizes = [8, 32], strides = [1, 1]} : vector<8x128xf32> to vector<8x32xf32>
    %418 = vector.extract_strided_slice %413 {offsets = [0, 96], sizes = [8, 32], strides = [1, 1]} : vector<8x128xf32> to vector<8x32xf32>
    %419 = arith.mulf %416, %346 : vector<8x32xf32>
    %420 = arith.mulf %415, %417 : vector<8x32xf32>
    %421 = arith.addf %419, %420 : vector<8x32xf32>
    %422 = math.tanh %421 : vector<8x32xf32>
    %423 = arith.mulf %418, %422 : vector<8x32xf32>
    %c48 = arith.constant 48 : index
    %c0_99 = arith.constant 0 : index
    %424 = vector.load %arg17[%c48, %c0_99] : memref<64x128xf32, #tpu.memory_space<vmem>>, vector<8x128xf32>
    %cst_100 = arith.constant dense<0.000000e+00> : vector<8x128xf32>
    %425 = tpu.matmul %366, %7, %cst_100 {dimension_numbers = #tpu.dot_dimension_numbers<[1], [0], [0], [1], [0, 0, 1, 1], [], []>} : vector<8x32xf32>, vector<32x128xf32>, vector<8x128xf32> -> vector<8x128xf32>
    %426 = arith.addf %424, %425 : vector<8x128xf32>
    %427 = arith.negf %426 : vector<8x128xf32>
    %428 = math.exp %427 : vector<8x128xf32>
    %cst_101 = arith.constant 1.000000e+00 : f32
    %429 = vector.broadcast %cst_101 : f32 to vector<8x128xf32>
    %430 = arith.addf %429, %428 : vector<8x128xf32>
    %431 = arith.divf %429, %430 : vector<8x128xf32>
    %432 = math.tanh %426 : vector<8x128xf32>
    %433 = vector.extract_strided_slice %431 {offsets = [0, 0], sizes = [8, 32], strides = [1, 1]} : vector<8x128xf32> to vector<8x32xf32>
    %434 = vector.extract_strided_slice %431 {offsets = [0, 32], sizes = [8, 32], strides = [1, 1]} : vector<8x128xf32> to vector<8x32xf32>
    %435 = vector.extract_strided_slice %432 {offsets = [0, 64], sizes = [8, 32], strides = [1, 1]} : vector<8x128xf32> to vector<8x32xf32>
    %436 = vector.extract_strided_slice %431 {offsets = [0, 96], sizes = [8, 32], strides = [1, 1]} : vector<8x128xf32> to vector<8x32xf32>
    %437 = arith.mulf %434, %364 : vector<8x32xf32>
    %438 = arith.mulf %433, %435 : vector<8x32xf32>
    %439 = arith.addf %437, %438 : vector<8x32xf32>
    %440 = math.tanh %439 : vector<8x32xf32>
    %441 = arith.mulf %436, %440 : vector<8x32xf32>
    %cst_102 = arith.constant dense<0.000000e+00> : vector<8x128xf32>
    %442 = tpu.matmul %404, %13, %cst_102 {dimension_numbers = #tpu.dot_dimension_numbers<[1], [0], [0], [1], [0, 0, 1, 1], [], []>} : vector<8x32xf32>, vector<32x128xf32>, vector<8x128xf32> -> vector<8x128xf32>
    %cst_103 = arith.constant dense<0.000000e+00> : vector<8x128xf32>
    %443 = tpu.matmul %385, %10, %cst_103 {dimension_numbers = #tpu.dot_dimension_numbers<[1], [0], [0], [1], [0, 0, 1, 1], [], []>} : vector<8x32xf32>, vector<32x128xf32>, vector<8x128xf32> -> vector<8x128xf32>
    %444 = arith.addf %442, %443 : vector<8x128xf32>
    %445 = arith.addf %444, %22 : vector<8x128xf32>
    %446 = arith.negf %445 : vector<8x128xf32>
    %447 = math.exp %446 : vector<8x128xf32>
    %cst_104 = arith.constant 1.000000e+00 : f32
    %448 = vector.broadcast %cst_104 : f32 to vector<8x128xf32>
    %449 = arith.addf %448, %447 : vector<8x128xf32>
    %450 = arith.divf %448, %449 : vector<8x128xf32>
    %451 = math.tanh %445 : vector<8x128xf32>
    %452 = vector.extract_strided_slice %450 {offsets = [0, 0], sizes = [8, 32], strides = [1, 1]} : vector<8x128xf32> to vector<8x32xf32>
    %453 = vector.extract_strided_slice %450 {offsets = [0, 32], sizes = [8, 32], strides = [1, 1]} : vector<8x128xf32> to vector<8x32xf32>
    %454 = vector.extract_strided_slice %451 {offsets = [0, 64], sizes = [8, 32], strides = [1, 1]} : vector<8x128xf32> to vector<8x32xf32>
    %455 = vector.extract_strided_slice %450 {offsets = [0, 96], sizes = [8, 32], strides = [1, 1]} : vector<8x128xf32> to vector<8x32xf32>
    %456 = arith.mulf %453, %383 : vector<8x32xf32>
    %457 = arith.mulf %452, %454 : vector<8x32xf32>
    %458 = arith.addf %456, %457 : vector<8x32xf32>
    %459 = math.tanh %458 : vector<8x32xf32>
    %460 = arith.mulf %455, %459 : vector<8x32xf32>
    %cst_105 = arith.constant dense<0.000000e+00> : vector<8x128xf32>
    %461 = tpu.matmul %423, %12, %cst_105 {dimension_numbers = #tpu.dot_dimension_numbers<[1], [0], [0], [1], [0, 0, 1, 1], [], []>} : vector<8x32xf32>, vector<32x128xf32>, vector<8x128xf32> -> vector<8x128xf32>
    %cst_106 = arith.constant dense<0.000000e+00> : vector<8x128xf32>
    %462 = tpu.matmul %404, %9, %cst_106 {dimension_numbers = #tpu.dot_dimension_numbers<[1], [0], [0], [1], [0, 0, 1, 1], [], []>} : vector<8x32xf32>, vector<32x128xf32>, vector<8x128xf32> -> vector<8x128xf32>
    %463 = arith.addf %461, %462 : vector<8x128xf32>
    %464 = arith.addf %463, %19 : vector<8x128xf32>
    %465 = arith.negf %464 : vector<8x128xf32>
    %466 = math.exp %465 : vector<8x128xf32>
    %cst_107 = arith.constant 1.000000e+00 : f32
    %467 = vector.broadcast %cst_107 : f32 to vector<8x128xf32>
    %468 = arith.addf %467, %466 : vector<8x128xf32>
    %469 = arith.divf %467, %468 : vector<8x128xf32>
    %470 = math.tanh %464 : vector<8x128xf32>
    %471 = vector.extract_strided_slice %469 {offsets = [0, 0], sizes = [8, 32], strides = [1, 1]} : vector<8x128xf32> to vector<8x32xf32>
    %472 = vector.extract_strided_slice %469 {offsets = [0, 32], sizes = [8, 32], strides = [1, 1]} : vector<8x128xf32> to vector<8x32xf32>
    %473 = vector.extract_strided_slice %470 {offsets = [0, 64], sizes = [8, 32], strides = [1, 1]} : vector<8x128xf32> to vector<8x32xf32>
    %474 = vector.extract_strided_slice %469 {offsets = [0, 96], sizes = [8, 32], strides = [1, 1]} : vector<8x128xf32> to vector<8x32xf32>
    %475 = arith.mulf %472, %402 : vector<8x32xf32>
    %476 = arith.mulf %471, %473 : vector<8x32xf32>
    %477 = arith.addf %475, %476 : vector<8x32xf32>
    %478 = math.tanh %477 : vector<8x32xf32>
    %479 = arith.mulf %474, %478 : vector<8x32xf32>
    %cst_108 = arith.constant dense<0.000000e+00> : vector<8x128xf32>
    %480 = tpu.matmul %441, %11, %cst_108 {dimension_numbers = #tpu.dot_dimension_numbers<[1], [0], [0], [1], [0, 0, 1, 1], [], []>} : vector<8x32xf32>, vector<32x128xf32>, vector<8x128xf32> -> vector<8x128xf32>
    %cst_109 = arith.constant dense<0.000000e+00> : vector<8x128xf32>
    %481 = tpu.matmul %423, %8, %cst_109 {dimension_numbers = #tpu.dot_dimension_numbers<[1], [0], [0], [1], [0, 0, 1, 1], [], []>} : vector<8x32xf32>, vector<32x128xf32>, vector<8x128xf32> -> vector<8x128xf32>
    %482 = arith.addf %480, %481 : vector<8x128xf32>
    %483 = arith.addf %482, %16 : vector<8x128xf32>
    %484 = arith.negf %483 : vector<8x128xf32>
    %485 = math.exp %484 : vector<8x128xf32>
    %cst_110 = arith.constant 1.000000e+00 : f32
    %486 = vector.broadcast %cst_110 : f32 to vector<8x128xf32>
    %487 = arith.addf %486, %485 : vector<8x128xf32>
    %488 = arith.divf %486, %487 : vector<8x128xf32>
    %489 = math.tanh %483 : vector<8x128xf32>
    %490 = vector.extract_strided_slice %488 {offsets = [0, 0], sizes = [8, 32], strides = [1, 1]} : vector<8x128xf32> to vector<8x32xf32>
    %491 = vector.extract_strided_slice %488 {offsets = [0, 32], sizes = [8, 32], strides = [1, 1]} : vector<8x128xf32> to vector<8x32xf32>
    %492 = vector.extract_strided_slice %489 {offsets = [0, 64], sizes = [8, 32], strides = [1, 1]} : vector<8x128xf32> to vector<8x32xf32>
    %493 = vector.extract_strided_slice %488 {offsets = [0, 96], sizes = [8, 32], strides = [1, 1]} : vector<8x128xf32> to vector<8x32xf32>
    %494 = arith.mulf %491, %421 : vector<8x32xf32>
    %495 = arith.mulf %490, %492 : vector<8x32xf32>
    %496 = arith.addf %494, %495 : vector<8x32xf32>
    %497 = math.tanh %496 : vector<8x32xf32>
    %498 = arith.mulf %493, %497 : vector<8x32xf32>
    %c56 = arith.constant 56 : index
    %c0_111 = arith.constant 0 : index
    %499 = vector.load %arg17[%c56, %c0_111] : memref<64x128xf32, #tpu.memory_space<vmem>>, vector<8x128xf32>
    %cst_112 = arith.constant dense<0.000000e+00> : vector<8x128xf32>
    %500 = tpu.matmul %441, %7, %cst_112 {dimension_numbers = #tpu.dot_dimension_numbers<[1], [0], [0], [1], [0, 0, 1, 1], [], []>} : vector<8x32xf32>, vector<32x128xf32>, vector<8x128xf32> -> vector<8x128xf32>
    %501 = arith.addf %499, %500 : vector<8x128xf32>
    %502 = arith.negf %501 : vector<8x128xf32>
    %503 = math.exp %502 : vector<8x128xf32>
    %cst_113 = arith.constant 1.000000e+00 : f32
    %504 = vector.broadcast %cst_113 : f32 to vector<8x128xf32>
    %505 = arith.addf %504, %503 : vector<8x128xf32>
    %506 = arith.divf %504, %505 : vector<8x128xf32>
    %507 = math.tanh %501 : vector<8x128xf32>
    %508 = vector.extract_strided_slice %506 {offsets = [0, 0], sizes = [8, 32], strides = [1, 1]} : vector<8x128xf32> to vector<8x32xf32>
    %509 = vector.extract_strided_slice %506 {offsets = [0, 32], sizes = [8, 32], strides = [1, 1]} : vector<8x128xf32> to vector<8x32xf32>
    %510 = vector.extract_strided_slice %507 {offsets = [0, 64], sizes = [8, 32], strides = [1, 1]} : vector<8x128xf32> to vector<8x32xf32>
    %511 = vector.extract_strided_slice %506 {offsets = [0, 96], sizes = [8, 32], strides = [1, 1]} : vector<8x128xf32> to vector<8x32xf32>
    %512 = arith.mulf %509, %439 : vector<8x32xf32>
    %513 = arith.mulf %508, %510 : vector<8x32xf32>
    %514 = arith.addf %512, %513 : vector<8x32xf32>
    %515 = math.tanh %514 : vector<8x32xf32>
    %516 = arith.mulf %511, %515 : vector<8x32xf32>
    %cst_114 = arith.constant dense<0.000000e+00> : vector<8x128xf32>
    %517 = tpu.matmul %479, %13, %cst_114 {dimension_numbers = #tpu.dot_dimension_numbers<[1], [0], [0], [1], [0, 0, 1, 1], [], []>} : vector<8x32xf32>, vector<32x128xf32>, vector<8x128xf32> -> vector<8x128xf32>
    %cst_115 = arith.constant dense<0.000000e+00> : vector<8x128xf32>
    %518 = tpu.matmul %460, %10, %cst_115 {dimension_numbers = #tpu.dot_dimension_numbers<[1], [0], [0], [1], [0, 0, 1, 1], [], []>} : vector<8x32xf32>, vector<32x128xf32>, vector<8x128xf32> -> vector<8x128xf32>
    %519 = arith.addf %517, %518 : vector<8x128xf32>
    %520 = arith.addf %519, %22 : vector<8x128xf32>
    %521 = arith.negf %520 : vector<8x128xf32>
    %522 = math.exp %521 : vector<8x128xf32>
    %cst_116 = arith.constant 1.000000e+00 : f32
    %523 = vector.broadcast %cst_116 : f32 to vector<8x128xf32>
    %524 = arith.addf %523, %522 : vector<8x128xf32>
    %525 = arith.divf %523, %524 : vector<8x128xf32>
    %526 = math.tanh %520 : vector<8x128xf32>
    %527 = vector.extract_strided_slice %525 {offsets = [0, 0], sizes = [8, 32], strides = [1, 1]} : vector<8x128xf32> to vector<8x32xf32>
    %528 = vector.extract_strided_slice %525 {offsets = [0, 32], sizes = [8, 32], strides = [1, 1]} : vector<8x128xf32> to vector<8x32xf32>
    %529 = vector.extract_strided_slice %526 {offsets = [0, 64], sizes = [8, 32], strides = [1, 1]} : vector<8x128xf32> to vector<8x32xf32>
    %530 = vector.extract_strided_slice %525 {offsets = [0, 96], sizes = [8, 32], strides = [1, 1]} : vector<8x128xf32> to vector<8x32xf32>
    %531 = arith.mulf %528, %458 : vector<8x32xf32>
    %532 = arith.mulf %527, %529 : vector<8x32xf32>
    %533 = arith.addf %531, %532 : vector<8x32xf32>
    %534 = math.tanh %533 : vector<8x32xf32>
    %535 = arith.mulf %530, %534 : vector<8x32xf32>
    %cst_117 = arith.constant dense<0.000000e+00> : vector<8x128xf32>
    %536 = tpu.matmul %498, %12, %cst_117 {dimension_numbers = #tpu.dot_dimension_numbers<[1], [0], [0], [1], [0, 0, 1, 1], [], []>} : vector<8x32xf32>, vector<32x128xf32>, vector<8x128xf32> -> vector<8x128xf32>
    %cst_118 = arith.constant dense<0.000000e+00> : vector<8x128xf32>
    %537 = tpu.matmul %479, %9, %cst_118 {dimension_numbers = #tpu.dot_dimension_numbers<[1], [0], [0], [1], [0, 0, 1, 1], [], []>} : vector<8x32xf32>, vector<32x128xf32>, vector<8x128xf32> -> vector<8x128xf32>
    %538 = arith.addf %536, %537 : vector<8x128xf32>
    %539 = arith.addf %538, %19 : vector<8x128xf32>
    %540 = arith.negf %539 : vector<8x128xf32>
    %541 = math.exp %540 : vector<8x128xf32>
    %cst_119 = arith.constant 1.000000e+00 : f32
    %542 = vector.broadcast %cst_119 : f32 to vector<8x128xf32>
    %543 = arith.addf %542, %541 : vector<8x128xf32>
    %544 = arith.divf %542, %543 : vector<8x128xf32>
    %545 = math.tanh %539 : vector<8x128xf32>
    %546 = vector.extract_strided_slice %544 {offsets = [0, 0], sizes = [8, 32], strides = [1, 1]} : vector<8x128xf32> to vector<8x32xf32>
    %547 = vector.extract_strided_slice %544 {offsets = [0, 32], sizes = [8, 32], strides = [1, 1]} : vector<8x128xf32> to vector<8x32xf32>
    %548 = vector.extract_strided_slice %545 {offsets = [0, 64], sizes = [8, 32], strides = [1, 1]} : vector<8x128xf32> to vector<8x32xf32>
    %549 = vector.extract_strided_slice %544 {offsets = [0, 96], sizes = [8, 32], strides = [1, 1]} : vector<8x128xf32> to vector<8x32xf32>
    %550 = arith.mulf %547, %477 : vector<8x32xf32>
    %551 = arith.mulf %546, %548 : vector<8x32xf32>
    %552 = arith.addf %550, %551 : vector<8x32xf32>
    %553 = math.tanh %552 : vector<8x32xf32>
    %554 = arith.mulf %549, %553 : vector<8x32xf32>
    %cst_120 = arith.constant dense<0.000000e+00> : vector<8x128xf32>
    %555 = tpu.matmul %516, %11, %cst_120 {dimension_numbers = #tpu.dot_dimension_numbers<[1], [0], [0], [1], [0, 0, 1, 1], [], []>} : vector<8x32xf32>, vector<32x128xf32>, vector<8x128xf32> -> vector<8x128xf32>
    %cst_121 = arith.constant dense<0.000000e+00> : vector<8x128xf32>
    %556 = tpu.matmul %498, %8, %cst_121 {dimension_numbers = #tpu.dot_dimension_numbers<[1], [0], [0], [1], [0, 0, 1, 1], [], []>} : vector<8x32xf32>, vector<32x128xf32>, vector<8x128xf32> -> vector<8x128xf32>
    %557 = arith.addf %555, %556 : vector<8x128xf32>
    %558 = arith.addf %557, %16 : vector<8x128xf32>
    %559 = arith.negf %558 : vector<8x128xf32>
    %560 = math.exp %559 : vector<8x128xf32>
    %cst_122 = arith.constant 1.000000e+00 : f32
    %561 = vector.broadcast %cst_122 : f32 to vector<8x128xf32>
    %562 = arith.addf %561, %560 : vector<8x128xf32>
    %563 = arith.divf %561, %562 : vector<8x128xf32>
    %564 = math.tanh %558 : vector<8x128xf32>
    %565 = vector.extract_strided_slice %563 {offsets = [0, 0], sizes = [8, 32], strides = [1, 1]} : vector<8x128xf32> to vector<8x32xf32>
    %566 = vector.extract_strided_slice %563 {offsets = [0, 32], sizes = [8, 32], strides = [1, 1]} : vector<8x128xf32> to vector<8x32xf32>
    %567 = vector.extract_strided_slice %564 {offsets = [0, 64], sizes = [8, 32], strides = [1, 1]} : vector<8x128xf32> to vector<8x32xf32>
    %568 = vector.extract_strided_slice %563 {offsets = [0, 96], sizes = [8, 32], strides = [1, 1]} : vector<8x128xf32> to vector<8x32xf32>
    %569 = arith.mulf %566, %496 : vector<8x32xf32>
    %570 = arith.mulf %565, %567 : vector<8x32xf32>
    %571 = arith.addf %569, %570 : vector<8x32xf32>
    %572 = math.tanh %571 : vector<8x32xf32>
    %573 = arith.mulf %568, %572 : vector<8x32xf32>
    %cst_123 = arith.constant dense<0.000000e+00> : vector<8x128xf32>
    %574 = tpu.matmul %554, %13, %cst_123 {dimension_numbers = #tpu.dot_dimension_numbers<[1], [0], [0], [1], [0, 0, 1, 1], [], []>} : vector<8x32xf32>, vector<32x128xf32>, vector<8x128xf32> -> vector<8x128xf32>
    %cst_124 = arith.constant dense<0.000000e+00> : vector<8x128xf32>
    %575 = tpu.matmul %535, %10, %cst_124 {dimension_numbers = #tpu.dot_dimension_numbers<[1], [0], [0], [1], [0, 0, 1, 1], [], []>} : vector<8x32xf32>, vector<32x128xf32>, vector<8x128xf32> -> vector<8x128xf32>
    %576 = arith.addf %574, %575 : vector<8x128xf32>
    %577 = arith.addf %576, %22 : vector<8x128xf32>
    %578 = arith.negf %577 : vector<8x128xf32>
    %579 = math.exp %578 : vector<8x128xf32>
    %cst_125 = arith.constant 1.000000e+00 : f32
    %580 = vector.broadcast %cst_125 : f32 to vector<8x128xf32>
    %581 = arith.addf %580, %579 : vector<8x128xf32>
    %582 = arith.divf %580, %581 : vector<8x128xf32>
    %583 = math.tanh %577 : vector<8x128xf32>
    %584 = vector.extract_strided_slice %582 {offsets = [0, 0], sizes = [8, 32], strides = [1, 1]} : vector<8x128xf32> to vector<8x32xf32>
    %585 = vector.extract_strided_slice %582 {offsets = [0, 32], sizes = [8, 32], strides = [1, 1]} : vector<8x128xf32> to vector<8x32xf32>
    %586 = vector.extract_strided_slice %583 {offsets = [0, 64], sizes = [8, 32], strides = [1, 1]} : vector<8x128xf32> to vector<8x32xf32>
    %587 = vector.extract_strided_slice %582 {offsets = [0, 96], sizes = [8, 32], strides = [1, 1]} : vector<8x128xf32> to vector<8x32xf32>
    %588 = arith.mulf %585, %533 : vector<8x32xf32>
    %589 = arith.mulf %584, %586 : vector<8x32xf32>
    %590 = arith.addf %588, %589 : vector<8x32xf32>
    %591 = math.tanh %590 : vector<8x32xf32>
    %592 = arith.mulf %587, %591 : vector<8x32xf32>
    %cst_126 = arith.constant dense<0.000000e+00> : vector<8x128xf32>
    %593 = tpu.matmul %573, %12, %cst_126 {dimension_numbers = #tpu.dot_dimension_numbers<[1], [0], [0], [1], [0, 0, 1, 1], [], []>} : vector<8x32xf32>, vector<32x128xf32>, vector<8x128xf32> -> vector<8x128xf32>
    %cst_127 = arith.constant dense<0.000000e+00> : vector<8x128xf32>
    %594 = tpu.matmul %554, %9, %cst_127 {dimension_numbers = #tpu.dot_dimension_numbers<[1], [0], [0], [1], [0, 0, 1, 1], [], []>} : vector<8x32xf32>, vector<32x128xf32>, vector<8x128xf32> -> vector<8x128xf32>
    %595 = arith.addf %593, %594 : vector<8x128xf32>
    %596 = arith.addf %595, %19 : vector<8x128xf32>
    %597 = arith.negf %596 : vector<8x128xf32>
    %598 = math.exp %597 : vector<8x128xf32>
    %cst_128 = arith.constant 1.000000e+00 : f32
    %599 = vector.broadcast %cst_128 : f32 to vector<8x128xf32>
    %600 = arith.addf %599, %598 : vector<8x128xf32>
    %601 = arith.divf %599, %600 : vector<8x128xf32>
    %602 = math.tanh %596 : vector<8x128xf32>
    %603 = vector.extract_strided_slice %601 {offsets = [0, 0], sizes = [8, 32], strides = [1, 1]} : vector<8x128xf32> to vector<8x32xf32>
    %604 = vector.extract_strided_slice %601 {offsets = [0, 32], sizes = [8, 32], strides = [1, 1]} : vector<8x128xf32> to vector<8x32xf32>
    %605 = vector.extract_strided_slice %602 {offsets = [0, 64], sizes = [8, 32], strides = [1, 1]} : vector<8x128xf32> to vector<8x32xf32>
    %606 = vector.extract_strided_slice %601 {offsets = [0, 96], sizes = [8, 32], strides = [1, 1]} : vector<8x128xf32> to vector<8x32xf32>
    %607 = arith.mulf %604, %552 : vector<8x32xf32>
    %608 = arith.mulf %603, %605 : vector<8x32xf32>
    %609 = arith.addf %607, %608 : vector<8x32xf32>
    %610 = math.tanh %609 : vector<8x32xf32>
    %611 = arith.mulf %606, %610 : vector<8x32xf32>
    %cst_129 = arith.constant dense<0.000000e+00> : vector<8x128xf32>
    %612 = tpu.matmul %611, %13, %cst_129 {dimension_numbers = #tpu.dot_dimension_numbers<[1], [0], [0], [1], [0, 0, 1, 1], [], []>} : vector<8x32xf32>, vector<32x128xf32>, vector<8x128xf32> -> vector<8x128xf32>
    %cst_130 = arith.constant dense<0.000000e+00> : vector<8x128xf32>
    %613 = tpu.matmul %592, %10, %cst_130 {dimension_numbers = #tpu.dot_dimension_numbers<[1], [0], [0], [1], [0, 0, 1, 1], [], []>} : vector<8x32xf32>, vector<32x128xf32>, vector<8x128xf32> -> vector<8x128xf32>
    %614 = arith.addf %612, %613 : vector<8x128xf32>
    %615 = arith.addf %614, %22 : vector<8x128xf32>
    %616 = arith.negf %615 : vector<8x128xf32>
    %617 = math.exp %616 : vector<8x128xf32>
    %cst_131 = arith.constant 1.000000e+00 : f32
    %618 = vector.broadcast %cst_131 : f32 to vector<8x128xf32>
    %619 = arith.addf %618, %617 : vector<8x128xf32>
    %620 = arith.divf %618, %619 : vector<8x128xf32>
    %621 = math.tanh %615 : vector<8x128xf32>
    %622 = vector.extract_strided_slice %620 {offsets = [0, 0], sizes = [8, 32], strides = [1, 1]} : vector<8x128xf32> to vector<8x32xf32>
    %623 = vector.extract_strided_slice %620 {offsets = [0, 32], sizes = [8, 32], strides = [1, 1]} : vector<8x128xf32> to vector<8x32xf32>
    %624 = vector.extract_strided_slice %621 {offsets = [0, 64], sizes = [8, 32], strides = [1, 1]} : vector<8x128xf32> to vector<8x32xf32>
    %625 = vector.extract_strided_slice %620 {offsets = [0, 96], sizes = [8, 32], strides = [1, 1]} : vector<8x128xf32> to vector<8x32xf32>
    %626 = arith.mulf %623, %590 : vector<8x32xf32>
    %627 = arith.mulf %622, %624 : vector<8x32xf32>
    %628 = arith.addf %626, %627 : vector<8x32xf32>
    %629 = math.tanh %628 : vector<8x32xf32>
    %630 = arith.mulf %625, %629 : vector<8x32xf32>
    %c0_132 = arith.constant 0 : index
    %c0_133 = arith.constant 0 : index
    %631 = vector.load %arg14[%c0_132, %c0_133] : memref<32x128xf32, #tpu.memory_space<vmem>>, vector<32x128xf32>
    %cst_134 = arith.constant dense<0.000000e+00> : vector<8x128xf32>
    %632 = tpu.matmul %630, %631, %cst_134 {dimension_numbers = #tpu.dot_dimension_numbers<[1], [0], [0], [1], [0, 0, 1, 1], [], []>} : vector<8x32xf32>, vector<32x128xf32>, vector<8x128xf32> -> vector<8x128xf32>
    %c0_135 = arith.constant 0 : index
    %c0_136 = arith.constant 0 : index
    %633 = vector.load %arg15[%c0_135, %c0_136] : memref<1x128xf32, #tpu.memory_space<vmem>>, vector<1x128xf32>
    %634 = vector.broadcast %633 : vector<1x128xf32> to vector<8x128xf32>
    %635 = arith.addf %632, %634 : vector<8x128xf32>
    %636 = arith.negf %635 : vector<8x128xf32>
    %637 = math.exp %636 : vector<8x128xf32>
    %cst_137 = arith.constant 1.000000e+00 : f32
    %638 = vector.broadcast %cst_137 : f32 to vector<8x128xf32>
    %639 = arith.addf %638, %637 : vector<8x128xf32>
    %640 = arith.divf %638, %639 : vector<8x128xf32>
    %c0_138 = arith.constant 0 : index
    %c0_139 = arith.constant 0 : index
    %641 = vector.load %arg16[%c0_138, %c0_139] : memref<8x128xf32, #tpu.memory_space<vmem>>, vector<8x128xf32>
    tpu.vector_store %arg16[%c0_138, %c0_139], %640 {strides = array<i32>} : memref<8x128xf32, #tpu.memory_space<vmem>>, vector<8x128xf32>,
    return
  }
  func.func @transform_0(%arg0: i32) -> (i32, i32) {
    %c0_i32 = arith.constant 0 : i32
    %c0_i32_0 = arith.constant 0 : i32
    %c0_i32_1 = arith.constant 0 : i32
    return %c0_i32, %c0_i32_0 : i32, i32
  }
  func.func @transform_1(%arg0: i32) -> (i32, i32) {
    %c0_i32 = arith.constant 0 : i32
    %c0_i32_0 = arith.constant 0 : i32
    %c0_i32_1 = arith.constant 0 : i32
    return %c0_i32, %c0_i32_0 : i32, i32
  }
  func.func @transform_2(%arg0: i32) -> (i32, i32) {
    %c0_i32 = arith.constant 0 : i32
    %c0_i32_0 = arith.constant 0 : i32
    %c0_i32_1 = arith.constant 0 : i32
    return %c0_i32, %c0_i32_0 : i32, i32
  }
  func.func @transform_3(%arg0: i32) -> (i32, i32) {
    %c0_i32 = arith.constant 0 : i32
    %c0_i32_0 = arith.constant 0 : i32
    %c0_i32_1 = arith.constant 0 : i32
    return %c0_i32, %c0_i32_0 : i32, i32
  }
  func.func @transform_4(%arg0: i32) -> (i32, i32) {
    %c0_i32 = arith.constant 0 : i32
    %c0_i32_0 = arith.constant 0 : i32
    %c0_i32_1 = arith.constant 0 : i32
    return %c0_i32, %c0_i32_0 : i32, i32
  }
  func.func @transform_5(%arg0: i32) -> (i32, i32) {
    %c0_i32 = arith.constant 0 : i32
    %c0_i32_0 = arith.constant 0 : i32
    %c0_i32_1 = arith.constant 0 : i32
    return %c0_i32, %c0_i32_0 : i32, i32
  }
  func.func @transform_6(%arg0: i32) -> (i32, i32) {
    %c0_i32 = arith.constant 0 : i32
    %c0_i32_0 = arith.constant 0 : i32
    %c0_i32_1 = arith.constant 0 : i32
    return %c0_i32, %c0_i32_0 : i32, i32
  }
  func.func @transform_7(%arg0: i32) -> (i32, i32) {
    %c0_i32 = arith.constant 0 : i32
    %c0_i32_0 = arith.constant 0 : i32
    %c0_i32_1 = arith.constant 0 : i32
    return %c0_i32, %c0_i32_0 : i32, i32
  }
  func.func @transform_8(%arg0: i32) -> (i32, i32) {
    %c0_i32 = arith.constant 0 : i32
    %c0_i32_0 = arith.constant 0 : i32
    %c0_i32_1 = arith.constant 0 : i32
    return %c0_i32, %c0_i32_0 : i32, i32
  }
  func.func @transform_9(%arg0: i32) -> (i32, i32) {
    %c0_i32 = arith.constant 0 : i32
    %c0_i32_0 = arith.constant 0 : i32
    %c0_i32_1 = arith.constant 0 : i32
    return %c0_i32, %c0_i32_0 : i32, i32
  }
  func.func @transform_10(%arg0: i32) -> (i32, i32) {
    %c0_i32 = arith.constant 0 : i32
    %c0_i32_0 = arith.constant 0 : i32
    %c0_i32_1 = arith.constant 0 : i32
    return %c0_i32, %c0_i32_0 : i32, i32
  }
  func.func @transform_11(%arg0: i32) -> (i32, i32) {
    %c0_i32 = arith.constant 0 : i32
    %c0_i32_0 = arith.constant 0 : i32
    %c0_i32_1 = arith.constant 0 : i32
    return %c0_i32, %c0_i32_0 : i32, i32
  }
  func.func @transform_12(%arg0: i32) -> (i32, i32) {
    %c0_i32 = arith.constant 0 : i32
    %c0_i32_0 = arith.constant 0 : i32
    %c0_i32_1 = arith.constant 0 : i32
    return %c0_i32, %c0_i32_0 : i32, i32
  }
  func.func @transform_13(%arg0: i32) -> (i32, i32) {
    %c0_i32 = arith.constant 0 : i32
    %c0_i32_0 = arith.constant 0 : i32
    %c0_i32_1 = arith.constant 0 : i32
    return %c0_i32, %c0_i32_0 : i32, i32
  }
  func.func @transform_14(%arg0: i32) -> (i32, i32) {
    %c0_i32 = arith.constant 0 : i32
    %c0_i32_0 = arith.constant 0 : i32
    %c0_i32_1 = arith.constant 0 : i32
    return %c0_i32, %c0_i32_0 : i32, i32
  }
  func.func @transform_15(%arg0: i32) -> (i32, i32) {
    %c0_i32 = arith.constant 0 : i32
    %c0_i32_0 = arith.constant 0 : i32
    %c0_i32_1 = arith.constant 0 : i32
    return %c0_i32, %c0_i32_0 : i32, i32
  }
}

</mosaic_0001>

<bundles_post_ra>
// kernel: lstm_classifier_forward.1
= control target key start
LH: loop header
LB: loop body
LE: loop exit
PB: predicated region body
PF: predicated region fallthrough
CT: control target
= control target key end

     0   :  { %20 = vsyncpa [#allocation4], 0  ;;  %s8209_s0 = inlined_call_operand.vmem [shape: f32[64,16], index: 0, kind: input, shape index: {}]   ;;  %s8210_s1 = inlined_call_operand.hbm [shape: f32[16,128], index: 1, kind: input, shape index: {}]   ;;  %s8211_s2 = inlined_call_operand.vmem [shape: f32[32,128], index: 2, kind: input, shape index: {}]   ;;  %s8212_s3 = inlined_call_operand.vmem [shape: f32[1,128], index: 3, kind: input, shape index: {}]   ;;  %s8213_s4 = inlined_call_operand.vmem [shape: f32[32,128], index: 4, kind: input, shape index: {}]   ;;  %s8214_s5 = inlined_call_operand.vmem [shape: f32[32,128], index: 5, kind: input, shape index: {}]   ;;  %s8215_s6 = inlined_call_operand.vmem [shape: f32[1,128], index: 6, kind: input, shape index: {}]   ;;  %s8216_s7 = inlined_call_operand.vmem [shape: f32[32,128], index: 7, kind: input, shape index: {}]   ;;  %s8217_s8 = inlined_call_operand.vmem [shape: f32[32,128], index: 8, kind: input, shape index: {}]   ;;  %s8218_s9 = inlined_call_operand.hbm [shape: f32[1,128], index: 9, kind: input, shape index: {}]   ;;  %s8219_s10 = inlined_call_operand.vmem [shape: f32[32,128], index: 10, kind: input, shape index: {}]   ;;  %s8220_s11 = inlined_call_operand.hbm [shape: f32[32,128], index: 11, kind: input, shape index: {}]   ;;  %s8221_s12 = inlined_call_operand.hbm [shape: f32[1,128], index: 12, kind: input, shape index: {}]   ;;  %s8222_s13 = inlined_call_operand.vmem [shape: f32[32,128], index: 13, kind: input, shape index: {}]   ;;  %s8223_s14 = inlined_call_operand.hbm [shape: f32[1,128], index: 14, kind: input, shape index: {}]   ;;  %s8224_s15 = inlined_call_operand.vmem [shape: f32[8,128], index: 15, kind: output, shape index: {}]  }
   0x1   :  { %21 = vsyncpa [#allocation6], 0 }
   0x2   :  { %22 = vsyncpa [#allocation9], 0  ;;  %s6773_s18 = smov [#allocation5]   ;;  %s6774_s20 = smov [#allocation8]  }
   0x3   :  { %s57_s19 = sshll.u32 %s6773_s18, 4  ;;  %s81_s21 = sshll.u32 %s6774_s20, 4  ;;  %s58_s19 = int_to_ptr.vmem [resolvable:$true] %s57_s19  ;;  %s82_s21 = int_to_ptr.vmem [resolvable:$true] %s81_s21 }
   0x4   :  { %s6675_s22 = scalar_lea.vmem %s58_s19, 16  ;;  %s6679_s23 = scalar_lea.vmem %s58_s19, 32 }
   0x5   :  { %p6676_p0 = scmp.ne.s32.totalorder %s58_s19, %s6675_s22  ;;  %p6680_p1 = scmp.lt.s32.totalorder %s58_s19, %s58_s19 }
   0x6   :  { %p6681_p2 = scmp.lt.s32.totalorder %s6679_s23, %s6675_s22 }
   0x8   :  { %p6682_p3 = por %p6681_p2, %p6680_p1 }
   0xa   :  { %p6683_p4 = pnand %p6682_p3, %p6676_p0 }
   0xc   :  { %6686 = shalt.err (!%p6683_p4)
}
   0xd   :  { %60 = dma.hbm_to_vmem [thread:$0]  %s8218_s9, 16, %s58_s19, [#allocation6]  }
   0xe   :  { %s6695_s26 = scalar_lea.vmem %s82_s21, 16  ;;  %s6699_s27 = scalar_lea.vmem %s82_s21, 32 }
   0xf   :  { %p6696_p5 = scmp.ne.s32.totalorder %s82_s21, %s6695_s26  ;;  %p6700_p6 = scmp.lt.s32.totalorder %s82_s21, %s82_s21 }
  0x10   :  { %p6701_p7 = scmp.lt.s32.totalorder %s6699_s27, %s6695_s26 }
  0x12   :  { %p6702_p8 = por %p6701_p7, %p6700_p6 }
  0x14   :  { %p6703_p9 = pnand %p6702_p8, %p6696_p5 }
  0x16   :  { %6706 = shalt.err (!%p6703_p9)
}
  0x17   :  { %84 = dma.hbm_to_vmem [thread:$0]  %s8221_s12, 16, %s82_s21, [#allocation9]  }
  0x18   :  { %s6775_s30 = smov [#allocation3]  }
  0x19   :  { %s30_s16 = sshll.u32 %s6775_s30, 4  ;;  %s31_s16 = int_to_ptr.vmem [resolvable:$true] %s30_s16 }
  0x1a   :  { %s6715_s17 = scalar_lea.vmem %s31_s16, 256  ;;  %p6720_p11 = scmp.lt.s32.totalorder %s31_s16, %s31_s16 }
  0x1b   :  { %p6716_p10 = scmp.ne.s32.totalorder %s31_s16, %s6715_s17  ;;  %p6721_p12 = scmp.lt.s32.totalorder %s6715_s17, %s6715_s17 }
  0x1d   :  { %p6722_p13 = por %p6721_p12, %p6720_p11 }
  0x1f   :  { %p6723_p0 = pnand %p6722_p13, %p6716_p10 }
  0x21   :  { %6726 = shalt.err (!%p6723_p0)
}
  0x22   :  { %s6776_s9 = smov 128   ;;  %s6777_s18 = smov 8  }
  0x23   :  { %36 = dma.hbm_to_vmem [thread:$0]  %s8210_s1, 256, %s31_s16, [#allocation4], %s6776_s9, %s6776_s9, %s6777_s18  }
  0x24   :  { %s6778_s22 = smov [#allocation7]   ;;  %s6779_s12 = smov [#allocation10]  }
  0x25   :  { %s68_s23 = sshll.u32 %s6778_s22, 4  ;;  %s93_s21 = sshll.u32 %s6779_s12, 4  ;;  %s69_s23 = int_to_ptr.vmem [resolvable:$true] %s68_s23  ;;  %s94_s21 = int_to_ptr.vmem [resolvable:$true] %s93_s21 }
  0x26   :  { %s6735_s24 = scalar_lea.vmem %s69_s23, 512  ;;  %p6740_p2 = scmp.lt.s32.totalorder %s69_s23, %s69_s23 }
  0x27   :  { %p6736_p1 = scmp.ne.s32.totalorder %s69_s23, %s6735_s24  ;;  %p6741_p3 = scmp.lt.s32.totalorder %s6735_s24, %s6735_s24 }
  0x29   :  { %p6742_p4 = por %p6741_p3, %p6740_p2 }
  0x2b   :  { %p6743_p5 = pnand %p6742_p4, %p6736_p1 }
  0x2d   :  { %6746 = shalt.err (!%p6743_p5)
}
  0x2e   :  { %74 = dma.hbm_to_vmem [thread:$0]  %s8220_s11, 512, %s69_s23, [#allocation6], %s6776_s9, %s6776_s9, %s6777_s18  }
  0x2f   :  { %s6755_s27 = scalar_lea.vmem %s94_s21, 16  ;;  %s6759_s1 = scalar_lea.vmem %s94_s21, 32 }
  0x30   :  { %p6756_p6 = scmp.ne.s32.totalorder %s94_s21, %s6755_s27  ;;  %p6760_p7 = scmp.lt.s32.totalorder %s94_s21, %s94_s21 }
  0x31   :  { %p6761_p8 = scmp.lt.s32.totalorder %s6759_s1, %s6755_s27 }
  0x33   :  { %p6762_p9 = por %p6761_p8, %p6760_p7 }
  0x35   :  { %p6763_p10 = pnand %p6762_p9, %p6756_p6 }
  0x37   :  { %6766 = shalt.err (!%p6763_p10)
}
  0x38   :  { %96 = dma.hbm_to_vmem [thread:$0]  %s8223_s14, 16, %s94_s21, [#allocation9]  }
  0x39   :  { %6767 = dma.done.wait [#allocation4], 256  }
  0x3a   :  { %6768 = vsyncadd [#allocation4], 4294967040 }
  0x3b   :  { %6769 = dma.done.wait [#allocation6], 528  }
  0x3c   :  { %6770 = vsyncadd [#allocation6], 4294966768 }
  0x3d   :  { %6771 = dma.done.wait [#allocation9], 32  }
  0x3e   :  { %6772 = vsyncadd [#allocation9], 4294967264  ;;  %v6780_v0 = vmov 0.0   ;;  %vm6781_vm0 = vmmov 0   ;;  %v121_v1 = vld [vmem:[#allocation3 + $0x8] sm:$0xff]  ;;  %v6885_v2 = vld [vmem:[%s8211_s2 + $0x18] sm:$0xff] }
  0x3f   :  { %5713 = vmatprep.subr.mxu1 %v6780_v0  ;;  %5721 = vmatprep.mubr.msk.f32.mxu1 %vm6781_vm0, %v6780_v0  ;;  %v120_v3 = vld [vmem:[#allocation3] sm:$0xff]  ;;  %v6891_v4 = vld [vmem:[%s8211_s2 + $0x10] sm:$0xff]  ;;  %vm129_vm1 = vcmask 130048   ;;  %v113_v6 = vld [vmem:[%s8209_s0 + $0x8] sm:$0xff]  ;;  %s6782_s25 = smov 64   ;;  %s6783_s26 = smov 32  }
  0x40   :  { %5697 = vmatprep.subr.mxu0 %v121_v1  ;;  %5714 = vmatpush3.msra.mxu1 %v6885_v2  ;;  %v112_v5 = vld [vmem:[%s8209_s0] sm:$0xff]  ;;  %v6904_v7 = vld [vmem:[%s8211_s2 + $0x8] sm:$0xff]  ;;  %v6938_v26 = vld [vmem:[%s8213_s4 + $0x18] sm:$0xff]  ;;  %vm317_vm2 = vcmask 261120  }
  0x41   :  { %5698 = vmatpush3.msra.mxu0 %v121_v1  ;;  %5715 = vmatprep.subr.mxu1 %v6780_v0  ;;  %v6912_v8 = vld [vmem:[%s8211_s2] sm:$0xff]  ;;  %v114_v27 = vld [vmem:[%s8209_s0 + $0x10] sm:$0xff]  ;;  %v6946_v28 = vld [vmem:[%s8214_s5 + $0x18] sm:$0xff] }
  0x42   :  { %5699 = vmatprep.subr.mxu0 %v120_v3  ;;  %5716 = vmatpush3.msra.mxu1 %v6891_v4  ;;  %v6927_v10 = vld [vmem:[%s8212_s3] ss:$0 sm:$0xff]  ;;  %v115_v29 = vld [vmem:[%s8209_s0 + $0x18] sm:$0xff]  ;;  %v6956_v30 = vld [vmem:[%s8214_s5 + $0x10] sm:$0xff] }
  0x43   :  { %5700 = vmatpush3.msra.mxu0 %v120_v3  ;;  %5701 = vmatprep.mubr.msk.f32.mxu0 %vm129_vm1, %v112_v5  ;;  %v6961_v31 = vld [vmem:[%s8213_s4 + $0x10] sm:$0xff]  ;;  %v116_v32 = vld [vmem:[%s8209_s0 + $0x20] sm:$0xff]  ;;  %v6973_v33 = vld [vmem:[%s8214_s5 + $0x8] sm:$0xff] }
  0x44   :  { %5717 = vmatprep.subr.mxu1 %v6780_v0  ;;  %5702 = vmatmul.mubr.msk.f32.vlgmr.msra.gmra.mxu0 %vm129_vm1, %v113_v6  ;;  %v117_v34 = vld [vmem:[%s8209_s0 + $0x28] sm:$0xff]  ;;  %v6985_v35 = vld [vmem:[%s8214_s5] sm:$0xff]  ;;  %v118_v37 = vld [vmem:[%s8209_s0 + $0x30] sm:$0xff] }
  0x45   :  { %5718 = vmatpush3.msra.mxu1 %v6904_v7  ;;  %5735 = vmatprep.subr.mxu0 %v6780_v0  ;;  %v6990_v36 = vld [vmem:[%s8213_s4 + $0x8] sm:$0xff]  ;;  %v119_v38 = vld [vmem:[%s8209_s0 + $0x38] sm:$0xff]  ;;  %v7011_v40 = vld [vmem:[%s8213_s4] sm:$0xff] }
  0x46   :  { %5719 = vmatprep.subr.mxu1 %v6780_v0  ;;  %5736 = vmatpush3.msra.mxu0 %v6938_v26  ;;  %v7053_v53 = vld [vmem:[%s8215_s6] ss:$0 sm:$0xff] }
  0x47   :  { %5720 = vmatpush3.msra.mxu1 %v6912_v8  ;;  %5704 = vmatprep.mubr.msk.f32.mxu0 %vm129_vm1, %v114_v27  ;;  %v7086_v27 = vld [vmem:[%s8216_s7 + $0x10] sm:$0xff] }
  0x48   :  { %5722 = vmatmul.mubr.f32.vlgmr.msra.gmra.mxu1 %v6780_v0  ;;  %5724 = vmatprep.subr.mxu1 %v6780_v0 }
  0x49   :  { %5732 = vmatprep.mubr.msk.f32.mxu1 %vm6781_vm0, %v6780_v0  ;;  %5725 = vmatpush3.msra.mxu1 %v6946_v28 }
  0x4a   :  { %5705 = vmatmul.mubr.msk.f32.gmra.mxu0 %vm129_vm1, %v115_v29  ;;  %5726 = vmatprep.subr.mxu1 %v6780_v0  ;;  %v7092_v29 = vld [vmem:[%s8217_s8 + $0x8] sm:$0xff] }
  0x4b   :  { %5737 = vmatprep.subr.mxu0 %v6780_v0  ;;  %5727 = vmatpush3.msra.mxu1 %v6956_v30 }
  0x4c   :  { %5738 = vmatpush3.msra.mxu0 %v6961_v31  ;;  %5728 = vmatprep.subr.mxu1 %v6780_v0 }
  0x4d   :  { %5707 = vmatprep.mubr.msk.f32.mxu0 %vm129_vm1, %v116_v32  ;;  %5729 = vmatpush3.msra.mxu1 %v6973_v33  ;;  %v7100_v32 = vld [vmem:[%s8216_s7 + $0x8] sm:$0xff] }
  0x4e   :  { %5708 = vmatmul.mubr.msk.f32.gmra.mxu0 %vm129_vm1, %v117_v34  ;;  %5730 = vmatprep.subr.mxu1 %v6780_v0  ;;  %v7106_v34 = vld [vmem:[%s8217_s8] sm:$0xff] }
  0x4f   :  { %5739 = vmatprep.subr.mxu0 %v6780_v0  ;;  %5731 = vmatpush3.msra.mxu1 %v6985_v35 }
  0x50   :  { %5740 = vmatpush3.msra.mxu0 %v6990_v36  ;;  %5746 = vmatprep.subr.mxu1 %v6780_v0 }
  0x51   :  { %5710 = vmatprep.mubr.msk.f32.mxu0 %vm129_vm1, %v118_v37  ;;  %5733 = vmatmul.mubr.f32.vlgmr.msra.gmra.mxu1 %v6780_v0 }
  0x52   :  { %5711 = vmatmul.mubr.msk.f32.gmra.mxu0 %vm129_vm1, %v119_v38  ;;  %5747 = vmatpush3.msra.mxu1 %v6885_v2 }
  0x53   :  { %5748 = vmatprep.subr.mxu1 %v6780_v0  ;;  %5741 = vmatprep.subr.mxu0 %v6780_v0 }
  0x54   :  { %5749 = vmatpush3.msra.mxu1 %v6891_v4  ;;  %5742 = vmatpush3.msra.mxu0 %v7011_v40 }
  0x55   :  { %5750 = vmatprep.subr.mxu1 %v6780_v0  ;;  %5743 = vmatprep.mubr.msk.f32.mxu0 %vm6781_vm0, %v6780_v0 }
  0x56   :  { %5751 = vmatpush3.msra.mxu1 %v6904_v7  ;;  %5754 = vmatprep.mubr.msk.f32.mxu1 %vm6781_vm0, %v6780_v0 }
  0x57   :  { %5752 = vmatprep.subr.mxu1 %v6780_v0  ;;  %5757 = vmatprep.subr.mxu0 %v6780_v0 }
  0x58   :  { %5753 = vmatpush3.msra.mxu1 %v6912_v8 }
  0x59   :  { %5768 = vmatprep.subr.mxu1 %v6780_v0 }
 0x104   :  { %v6922_v9 = vpop.f32.mrf.mxu0 }
 0x105   :  { %v226_v52 = vadd.f32 %v6922_v9, %v6927_v10 }
 0x106   :  { %v220_v11 = vpop.f32.mrf.mxu0 }
 0x107   :  { %v221_v12 = vadd.f32 %v6927_v10, %v220_v11 }
 0x108   :  { %v387_v13 = vpop.f32.mrf.mxu1 }
 0x109   :  { %v391_v14 = vadd.f32 %v387_v13, %v221_v12 }
 0x10a   :  { %v5723_v15 = vpop.f32.mrf.mxu1  ;;  %v7036_v46 = vpop.f32.mrf.mxu0 }
 0x10b   :  { %6351 = vtanh.f32 %v391_v14  ;;  %v5315_v17 = vmul.f32 -1.442695, %v391_v14 }
 0x10c   :  { %v7038_v47 = vpop.f32.mrf.mxu0 }
 0x10d   :  { %6353 = vpow2.f32 %v5315_v17 }
 0x10e   :  { %v7040_v48 = vpop.f32.mrf.mxu0 }
 0x110   :  { %v7042_v49 = vpop.f32.mrf.mxu0 }
 0x111   :  { %v482_v43 = vpop.f32.mrf.mxu1 }
 0x112   :  { %v7044_v50 = vpop.f32.mrf.mxu0 }
 0x113   :  { %v5734_v44 = vpop.f32.mrf.mxu1 }
 0x114   :  { %v7046_v51 = vpop.f32.mrf.mxu0 }
 0x118   :  { %v6352_v16 = vpop.eup %6351 }
 0x119   :  { %401 = vrot.lane.b32.xlu0 %v6352_v16, %s6782_s25 }
 0x11a   :  { %v6354_v18 = vpop.eup %6353 }
 0x11b   :  { %v395_v19 = vadd.f32 1.0, %v6354_v18 }
 0x11d   :  { %6355 = vrcp.f32 %v395_v19 }
 0x12a   :  { %v6356_v20 = vpop.eup %6355 }
 0x12b   :  { %v399_v23 = vmul.f32 0.0, %v6356_v20 }
 0x18b   :  { %v402_v21 = vpop.permute.xlu0 %401 }
 0x18c   :  { %v404_v22 = vmul.f32 %v6356_v20, %v402_v21 }
 0x18e   :  { %406 = vrot.lane.b32.xlu0 %v404_v22, %s6783_s26 }
 0x200   :  { %v407_v24 = vpop.permute.xlu0 %406 }
 0x201   :  { %v6932_v25 = vadd.f32 %v407_v24, %v399_v23  ;;  %v7070_v23 = vld [vmem:[%s8217_s8 + $0x18] sm:$0xff]  ;;  %v7075_v24 = vld [vmem:[%s8217_s8 + $0x10] sm:$0xff] }
 0x203   :  { %6357 = vtanh.f32 %v6932_v25 }
 0x210   :  { %v6358_v39 = vpop.eup %6357 }
 0x211   :  { %412 = vrot.lane.b32.xlu1 %v6358_v39, %s6782_s25  ;;  %v7132_v39 = vld [vmem:[%s8216_s7] sm:$0xff] }
 0x283   :  { %v413_v41 = vpop.permute.xlu1 %412 }
 0x284   :  { %v415_v42 = vmul.f32 %v6356_v20, %v413_v41 }
 0x286   :  { %487 = vrot.lane.b32.xlu1 %v415_v42, %s6783_s26 }
 0x2f8   :  { %v488_v45 = vpop.permute.xlu1 %487 }
 0x2f9   :  { %5744 = vmatmul.mubr.msk.f32.vlgmr.msra.gmra.mxu0 %vm317_vm2, %v488_v45  ;;  %5755 = vmatmul.mubr.msk.f32.vlgmr.msra.gmra.mxu1 %vm317_vm2, %v488_v45 }
 0x2fa   :  { %5765 = vmatprep.mubr.msk.f32.mxu0 %vm6781_vm0, %v6780_v0  ;;  %5776 = vmatprep.mubr.msk.f32.mxu1 %vm6781_vm0, %v6780_v0 }
 0x2fb   :  { %5758 = vmatpush3.msra.mxu0 %v7070_v23 }
 0x2fc   :  { %5759 = vmatprep.subr.mxu0 %v6780_v0 }
 0x2fd   :  { %5760 = vmatpush3.msra.mxu0 %v7075_v24 }
 0x2fe   :  { %5761 = vmatprep.subr.mxu0 %v6780_v0 }
 0x2ff   :  { %5762 = vmatpush3.msra.mxu0 %v7092_v29 }
 0x300   :  { %5763 = vmatprep.subr.mxu0 %v6780_v0 }
 0x301   :  { %5764 = vmatpush3.msra.mxu0 %v7106_v34 }
 0x302   :  { %5779 = vmatprep.subr.mxu0 %v6780_v0  ;;  %5766 = vmatmul.mubr.f32.vlgmr.msra.gmra.mxu0 %v6780_v0 }
 0x303   :  { %5780 = vmatpush3.msra.mxu0 %v6946_v28  ;;  %5787 = vmatprep.mubr.msk.f32.mxu0 %vm6781_vm0, %v6780_v0 }
 0x304   :  { %5781 = vmatprep.subr.mxu0 %v6780_v0 }
 0x305   :  { %5782 = vmatpush3.msra.mxu0 %v6956_v30 }
 0x306   :  { %5783 = vmatprep.subr.mxu0 %v6780_v0 }
 0x307   :  { %5784 = vmatpush3.msra.mxu0 %v6973_v33 }
 0x308   :  { %5785 = vmatprep.subr.mxu0 %v6780_v0 }
 0x309   :  { %5786 = vmatpush3.msra.mxu0 %v6985_v35 }
 0x30a   :  { %5801 = vmatprep.subr.mxu0 %v6780_v0 }
 0x3b9   :  { %v557_v54 = vpop.f32.mrf.mxu0  ;;  %v653_v55 = vpop.f32.mrf.mxu1 }
 0x3ba   :  { %v558_v56 = vadd.f32 %v557_v54, %v482_v43  ;;  %v657_v57 = vadd.f32 %v653_v55, %v226_v52 }
 0x3bb   :  { %v5745_v58 = vpop.f32.mrf.mxu0  ;;  %v5756_v59 = vpop.f32.mrf.mxu1 }
 0x3bc   :  { %v561_v60 = vadd.f32 %v7053_v53, %v558_v56  ;;  %6359 = vtanh.f32 %v657_v57  ;;  %v5319_v63 = vmul.f32 -1.442695, %v657_v57  ;;  %v7166_v56 = vld [vmem:[#allocation5] ss:$0 sm:$0xff] }
 0x3be   :  { %6361 = vtanh.f32 %v561_v60  ;;  %v5317_v1 = vmul.f32 -1.442695, %v561_v60 }
 0x3bf   :  { %6363 = vpow2.f32 %v5319_v63  ;;  %v231_v63 = vadd.f32 %v6927_v10, %v7038_v47 }
 0x3c0   :  { %6365 = vpow2.f32 %v5317_v1 }
 0x3c2   :  { %v748_v45 = vpop.f32.mrf.mxu0 }
 0x3c4   :  { %v5767_v52 = vpop.f32.mrf.mxu0 }
 0x3c9   :  { %v6360_v61 = vpop.eup %6359 }
 0x3ca   :  { %667 = vrot.lane.b32.xlu1 %v6360_v61, %s6782_s25 }
 0x3cb   :  { %v6362_v62 = vpop.eup %6361 }
 0x3cc   :  { %571 = vrot.lane.b32.xlu0 %v6362_v62, %s6782_s25  ;;  %v6364_v3 = vpop.eup %6363 }
 0x3cd   :  { %v6366_v5 = vpop.eup %6365  ;;  %v661_v6 = vadd.f32 1.0, %v6364_v3 }
 0x3ce   :  { %v565_v9 = vadd.f32 1.0, %v6366_v5 }
 0x3cf   :  { %6367 = vrcp.f32 %v661_v6 }
 0x3d0   :  { %6369 = vrcp.f32 %v565_v9 }
 0x3dc   :  { %v6368_v11 = vpop.eup %6367 }
 0x3dd   :  { %v6370_v14 = vpop.eup %6369  ;;  %v665_v17 = vmul.f32 %v6368_v11, %v6932_v25  ;;  %v7081_v25 = vld [vmem:[%s8216_s7 + $0x18] sm:$0xff] }
 0x3de   :  { %v569_v20 = vmul.f32 0.0, %v6370_v14  ;;  %5769 = vmatpush3.msra.mxu1 %v7081_v25 }
 0x3df   :  { %5770 = vmatprep.subr.mxu1 %v6780_v0 }
 0x3e0   :  { %5771 = vmatpush3.msra.mxu1 %v7086_v27 }
 0x3e1   :  { %5772 = vmatprep.subr.mxu1 %v6780_v0 }
 0x3e2   :  { %5773 = vmatpush3.msra.mxu1 %v7100_v32 }
 0x3e3   :  { %5774 = vmatprep.subr.mxu1 %v6780_v0 }
 0x3e4   :  { %5775 = vmatpush3.msra.mxu1 %v7132_v39 }
 0x3e5   :  { %5790 = vmatprep.subr.mxu1 %v6780_v0 }
 0x43c   :  { %v668_v12 = vpop.permute.xlu1 %667 }
 0x43d   :  { %v670_v13 = vmul.f32 %v6368_v11, %v668_v12 }
 0x43e   :  { %v572_v15 = vpop.permute.xlu0 %571 }
 0x43f   :  { %v574_v16 = vmul.f32 %v6370_v14, %v572_v15  ;;  %672 = vrot.lane.b32.xlu1 %v670_v13, %s6783_s26 }
 0x441   :  { %576 = vrot.lane.b32.xlu0 %v574_v16, %s6783_s26 }
 0x4b1   :  { %v673_v18 = vpop.permute.xlu1 %672 }
 0x4b2   :  { %v7061_v19 = vadd.f32 %v673_v18, %v665_v17 }
 0x4b3   :  { %v577_v21 = vpop.permute.xlu0 %576 }
 0x4b4   :  { %6371 = vtanh.f32 %v7061_v19  ;;  %v7064_v22 = vadd.f32 %v577_v21, %v569_v20 }
 0x4b6   :  { %6373 = vtanh.f32 %v7064_v22 }
 0x4c1   :  { %v6372_v37 = vpop.eup %6371 }
 0x4c2   :  { %678 = vrot.lane.b32.xlu1 %v6372_v37, %s6782_s25 }
 0x4c3   :  { %v6374_v38 = vpop.eup %6373 }
 0x4c4   :  { %582 = vrot.lane.b32.xlu0 %v6374_v38, %s6782_s25 }
 0x534   :  { %v679_v41 = vpop.permute.xlu1 %678 }
 0x535   :  { %v681_v42 = vmul.f32 %v6368_v11, %v679_v41 }
 0x536   :  { %v583_v43 = vpop.permute.xlu0 %582 }
 0x537   :  { %v585_v44 = vmul.f32 %v6370_v14, %v583_v43  ;;  %923 = vrot.lane.b32.xlu1 %v681_v42, %s6783_s26 }
 0x539   :  { %753 = vrot.lane.b32.xlu0 %v585_v44, %s6783_s26 }
 0x5a9   :  { %v924_v55 = vpop.permute.xlu1 %923 }
 0x5ab   :  { %v754_v54 = vpop.permute.xlu0 %753 }
 0x5ac   :  { %5777 = vmatmul.mubr.msk.f32.vlgmr.msra.gmra.mxu1 %vm317_vm2, %v754_v54  ;;  %5788 = vmatmul.mubr.msk.f32.vlgmr.msra.gmra.mxu0 %vm317_vm2, %v754_v54 }
 0x5ad   :  { %5791 = vmatpush3.msra.mxu1 %v6938_v26  ;;  %5802 = vmatpush3.msra.mxu0 %v6885_v2 }
 0x5ae   :  { %5792 = vmatprep.subr.mxu1 %v6780_v0  ;;  %5803 = vmatprep.subr.mxu0 %v6780_v0 }
 0x5af   :  { %5793 = vmatpush3.msra.mxu1 %v6961_v31  ;;  %5804 = vmatpush3.msra.mxu0 %v6891_v4 }
 0x5b0   :  { %5794 = vmatprep.subr.mxu1 %v6780_v0  ;;  %5805 = vmatprep.subr.mxu0 %v6780_v0 }
 0x5b1   :  { %5795 = vmatpush3.msra.mxu1 %v6990_v36  ;;  %5806 = vmatpush3.msra.mxu0 %v6904_v7 }
 0x5b2   :  { %5796 = vmatprep.subr.mxu1 %v6780_v0  ;;  %5807 = vmatprep.subr.mxu0 %v6780_v0 }
 0x5b3   :  { %5797 = vmatpush3.msra.mxu1 %v7011_v40  ;;  %5798 = vmatprep.mubr.msk.f32.mxu1 %vm6781_vm0, %v6780_v0 }
 0x5b4   :  { %5808 = vmatpush3.msra.mxu0 %v6912_v8  ;;  %5809 = vmatprep.mubr.msk.f32.mxu0 %vm6781_vm0, %v6780_v0 }
 0x5b5   :  { %5799 = vmatmul.mubr.msk.f32.vlgmr.msra.gmra.mxu1 %vm317_vm2, %v924_v55  ;;  %5810 = vmatmul.mubr.msk.f32.vlgmr.msra.gmra.mxu0 %vm317_vm2, %v924_v55 }
 0x5b6   :  { %5812 = vmatprep.subr.mxu1 %v6780_v0  ;;  %5820 = vmatprep.mubr.msk.f32.mxu1 %vm6781_vm0, %v6780_v0 }
 0x5b7   :  { %5823 = vmatprep.subr.mxu0 %v6780_v0  ;;  %5831 = vmatprep.mubr.msk.f32.mxu0 %vm6781_vm0, %v6780_v0 }
 0x66c   :  { %v823_v57 = vpop.f32.mrf.mxu1  ;;  %v918_v58 = vpop.f32.mrf.mxu0 }
 0x66d   :  { %v824_v59 = vadd.f32 %v823_v57, %v748_v45 }
 0x66e   :  { %v5778_v60 = vpop.f32.mrf.mxu1  ;;  %v5789_v61 = vpop.f32.mrf.mxu0 }
 0x66f   :  { %v827_v62 = vadd.f32 %v7166_v56, %v824_v59 }
 0x671   :  { %6375 = vtanh.f32 %v827_v62  ;;  %v5321_v47 = vmul.f32 -1.442695, %v827_v62 }
 0x675   :  { %v993_v1 = vpop.f32.mrf.mxu1  ;;  %v1089_v3 = vpop.f32.mrf.mxu0 }
 0x676   :  { %v994_v5 = vadd.f32 %v993_v1, %v918_v58  ;;  %v1093_v6 = vadd.f32 %v1089_v3, %v231_v63 }
 0x677   :  { %v5800_v9 = vpop.f32.mrf.mxu1  ;;  %v5811_v11 = vpop.f32.mrf.mxu0 }
 0x678   :  { %v997_v12 = vadd.f32 %v7053_v53, %v994_v5  ;;  %6377 = vtanh.f32 %v1093_v6  ;;  %v5326_v16 = vmul.f32 -1.442695, %v1093_v6  ;;  %v7201_v9 = vld [vmem:[#allocation7 + $0x18] sm:$0xff]  ;;  %v7203_v11 = vld [vmem:[#allocation7 + $0x10] sm:$0xff] }
 0x679   :  { %5813 = vmatpush3.msra.mxu1 %v7201_v9 }
 0x67a   :  { %6379 = vtanh.f32 %v997_v12  ;;  %v5324_v17 = vmul.f32 -1.442695, %v997_v12  ;;  %5814 = vmatprep.subr.mxu1 %v6780_v0 }
 0x67b   :  { %6381 = vpow2.f32 %v5321_v47  ;;  %5815 = vmatpush3.msra.mxu1 %v7203_v11 }
 0x67c   :  { %6383 = vpow2.f32 %v5326_v16  ;;  %5816 = vmatprep.subr.mxu1 %v6780_v0  ;;  %v7244_v16 = vld [vmem:[%s8219_s10] sm:$0xff] }
 0x67d   :  { %6385 = vpow2.f32 %v5324_v17 }
 0x67e   :  { %v6376_v13 = vpop.eup %6375 }
 0x67f   :  { %837 = vrot.lane.b32.xlu0 %v6376_v13, %s6782_s25  ;;  %v7218_v13 = vld [vmem:[%s8219_s10 + $0x10] sm:$0xff] }
 0x685   :  { %v6378_v14 = vpop.eup %6377 }
 0x686   :  { %1103 = vrot.lane.b32.xlu0 %v6378_v14, %s6782_s25  ;;  %v7223_v14 = vld [vmem:[#allocation7] sm:$0xff] }
 0x687   :  { %v6380_v15 = vpop.eup %6379 }
 0x688   :  { %1007 = vrot.lane.b32.xlu1 %v6380_v15, %s6782_s25  ;;  %v6382_v18 = vpop.eup %6381  ;;  %v7229_v15 = vld [vmem:[%s8219_s10 + $0x8] sm:$0xff] }
 0x689   :  { %v831_v20 = vadd.f32 1.0, %v6382_v18  ;;  %v6384_v21 = vpop.eup %6383 }
 0x68a   :  { %v6386_v37 = vpop.eup %6385  ;;  %v1097_v38 = vadd.f32 1.0, %v6384_v21 }
 0x68b   :  { %6387 = vrcp.f32 %v831_v20  ;;  %v1001_v41 = vadd.f32 1.0, %v6386_v37 }
 0x68c   :  { %6389 = vrcp.f32 %v1097_v38 }
 0x68d   :  { %6391 = vrcp.f32 %v1001_v41 }
 0x698   :  { %v7175_v42 = vpop.eup %6387 }
 0x699   :  { %v7179_v45 = vpop.eup %6389  ;;  %v835_v59 = vmul.f32 0.0, %v7175_v42 }
 0x69a   :  { %v7182_v55 = vpop.eup %6391  ;;  %v1101_v62 = vmul.f32 %v7179_v45, %v7061_v19  ;;  %v7209_v19 = vld [vmem:[%s8219_s10 + $0x18] sm:$0xff] }
 0x69b   :  { %v1005_v3 = vmul.f32 %v7182_v55, %v7064_v22  ;;  %v7213_v22 = vld [vmem:[#allocation7 + $0x8] sm:$0xff]  ;;  %5824 = vmatpush3.msra.mxu0 %v7209_v19 }
 0x69c   :  { %5825 = vmatprep.subr.mxu0 %v6780_v0  ;;  %5817 = vmatpush3.msra.mxu1 %v7213_v22 }
 0x69d   :  { %5826 = vmatpush3.msra.mxu0 %v7218_v13  ;;  %5818 = vmatprep.subr.mxu1 %v6780_v0 }
 0x69e   :  { %5827 = vmatprep.subr.mxu0 %v6780_v0  ;;  %5819 = vmatpush3.msra.mxu1 %v7223_v14 }
 0x69f   :  { %5828 = vmatpush3.msra.mxu0 %v7229_v15  ;;  %5834 = vmatprep.subr.mxu1 %v6780_v0 }
 0x6a0   :  { %5821 = vmatmul.mubr.f32.vlgmr.msra.gmra.mxu1 %v6780_v0  ;;  %5829 = vmatprep.subr.mxu0 %v6780_v0 }
 0x6a1   :  { %5835 = vmatpush3.msra.mxu1 %v7070_v23  ;;  %5830 = vmatpush3.msra.mxu0 %v7244_v16 }
 0x6a2   :  { %5836 = vmatprep.subr.mxu1 %v6780_v0  ;;  %5842 = vmatprep.mubr.msk.f32.mxu1 %vm6781_vm0, %v6780_v0 }
 0x6a3   :  { %5837 = vmatpush3.msra.mxu1 %v7075_v24  ;;  %5845 = vmatprep.subr.mxu0 %v6780_v0 }
 0x6a4   :  { %5838 = vmatprep.subr.mxu1 %v6780_v0 }
 0x6a5   :  { %5839 = vmatpush3.msra.mxu1 %v7092_v29 }
 0x6a6   :  { %5840 = vmatprep.subr.mxu1 %v6780_v0 }
 0x6a7   :  { %5841 = vmatpush3.msra.mxu1 %v7106_v34 }
 0x6a8   :  { %5856 = vmatprep.subr.mxu1 %v6780_v0 }
 0x6f1   :  { %v838_v43 = vpop.permute.xlu0 %837 }
 0x6f2   :  { %v840_v44 = vmul.f32 %v7175_v42, %v838_v43 }
 0x6f4   :  { %842 = vrot.lane.b32.xlu1 %v840_v44, %s6783_s26 }
 0x6f8   :  { %v1104_v52 = vpop.permute.xlu0 %1103 }
 0x6f9   :  { %v1106_v54 = vmul.f32 %v7179_v45, %v1104_v52 }
 0x6fa   :  { %v1008_v57 = vpop.permute.xlu1 %1007 }
 0x6fb   :  { %v1010_v58 = vmul.f32 %v7182_v55, %v1008_v57  ;;  %1108 = vrot.lane.b32.xlu1 %v1106_v54, %s6783_s26 }
 0x6fd   :  { %1012 = vrot.lane.b32.xlu0 %v1010_v58, %s6783_s26 }
 0x760   :  { %v7265_v43 = vpop.f32.mrf.mxu1 }
 0x762   :  { %v5822_v44 = vpop.f32.mrf.mxu1 }
 0x766   :  { %v843_v60 = vpop.permute.xlu1 %842 }
 0x767   :  { %v7188_v61 = vadd.f32 %v843_v60, %v835_v59 }
 0x769   :  { %6393 = vtanh.f32 %v7188_v61 }
 0x76d   :  { %v1109_v63 = vpop.permute.xlu1 %1108 }
 0x76e   :  { %v7193_v1 = vadd.f32 %v1109_v63, %v1101_v62 }
 0x76f   :  { %v1013_v5 = vpop.permute.xlu0 %1012 }
 0x770   :  { %6395 = vtanh.f32 %v7193_v1  ;;  %v7198_v6 = vadd.f32 %v1013_v5, %v1005_v3 }
 0x772   :  { %6397 = vtanh.f32 %v7198_v6 }
 0x776   :  { %v6394_v12 = vpop.eup %6393 }
 0x777   :  { %848 = vrot.lane.b32.xlu0 %v6394_v12, %s6782_s25  ;;  %v236_v12 = vadd.f32 %v7036_v46, %v6927_v10 }
 0x77d   :  { %v6396_v47 = vpop.eup %6395 }
 0x77e   :  { %1114 = vrot.lane.b32.xlu0 %v6396_v47, %s6782_s25 }
 0x77f   :  { %v6398_v17 = vpop.eup %6397 }
 0x780   :  { %1018 = vrot.lane.b32.xlu1 %v6398_v17, %s6782_s25 }
 0x7e9   :  { %v849_v18 = vpop.permute.xlu0 %848 }
 0x7ea   :  { %v851_v20 = vmul.f32 %v7175_v42, %v849_v18 }
 0x7ec   :  { %1189 = vrot.lane.b32.xlu1 %v851_v20, %s6783_s26 }
 0x7f0   :  { %v1115_v21 = vpop.permute.xlu0 %1114 }
 0x7f1   :  { %v1117_v37 = vmul.f32 %v7179_v45, %v1115_v21 }
 0x7f2   :  { %v1019_v38 = vpop.permute.xlu1 %1018 }
 0x7f3   :  { %v1021_v41 = vmul.f32 %v7182_v55, %v1019_v38  ;;  %1529 = vrot.lane.b32.xlu1 %v1117_v37, %s6783_s26 }
 0x7f5   :  { %1359 = vrot.lane.b32.xlu0 %v1021_v41, %s6783_s26 }
 0x85e   :  { %v1190_v52 = vpop.permute.xlu1 %1189 }
 0x85f   :  { %5832 = vmatmul.mubr.msk.f32.vlgmr.msra.gmra.mxu0 %vm317_vm2, %v1190_v52  ;;  %5843 = vmatmul.mubr.msk.f32.vlgmr.msra.gmra.mxu1 %vm317_vm2, %v1190_v52 }
 0x860   :  { %5846 = vmatpush3.msra.mxu0 %v7081_v25  ;;  %5857 = vmatpush3.msra.mxu1 %v6946_v28 }
 0x861   :  { %5847 = vmatprep.subr.mxu0 %v6780_v0  ;;  %5858 = vmatprep.subr.mxu1 %v6780_v0 }
 0x862   :  { %5848 = vmatpush3.msra.mxu0 %v7086_v27  ;;  %5859 = vmatpush3.msra.mxu1 %v6956_v30 }
 0x863   :  { %5849 = vmatprep.subr.mxu0 %v6780_v0  ;;  %5860 = vmatprep.subr.mxu1 %v6780_v0 }
 0x864   :  { %5850 = vmatpush3.msra.mxu0 %v7100_v32  ;;  %5861 = vmatpush3.msra.mxu1 %v6973_v33 }
 0x865   :  { %5851 = vmatprep.subr.mxu0 %v6780_v0  ;;  %5862 = vmatprep.subr.mxu1 %v6780_v0 }
 0x866   :  { %5852 = vmatpush3.msra.mxu0 %v7132_v39  ;;  %5853 = vmatprep.mubr.msk.f32.mxu0 %vm6781_vm0, %v6780_v0 }
 0x867   :  { %5863 = vmatpush3.msra.mxu1 %v6985_v35  ;;  %5864 = vmatprep.mubr.msk.f32.mxu1 %vm6781_vm0, %v6780_v0  ;;  %v1360_v42 = vpop.permute.xlu0 %1359 }
 0x868   :  { %5854 = vmatmul.mubr.msk.f32.vlgmr.msra.gmra.mxu0 %vm317_vm2, %v1360_v42  ;;  %5865 = vmatmul.mubr.msk.f32.vlgmr.msra.gmra.mxu1 %vm317_vm2, %v1360_v42 }
 0x869   :  { %5867 = vmatprep.subr.mxu0 %v6780_v0  ;;  %5878 = vmatprep.subr.mxu1 %v6780_v0 }
 0x86a   :  { %5868 = vmatpush3.msra.mxu0 %v6938_v26  ;;  %5879 = vmatpush3.msra.mxu1 %v6885_v2  ;;  %v1530_v2 = vpop.permute.xlu1 %1529 }
 0x86b   :  { %5869 = vmatprep.subr.mxu0 %v6780_v0  ;;  %5880 = vmatprep.subr.mxu1 %v6780_v0 }
 0x86c   :  { %5870 = vmatpush3.msra.mxu0 %v6961_v31  ;;  %5881 = vmatpush3.msra.mxu1 %v6891_v4  ;;  %v7333_v4 = vld [vmem:[#allocation8] ss:$0 sm:$0xff] }
 0x86d   :  { %5871 = vmatprep.subr.mxu0 %v6780_v0  ;;  %5882 = vmatprep.subr.mxu1 %v6780_v0 }
 0x86e   :  { %5872 = vmatpush3.msra.mxu0 %v6990_v36  ;;  %5883 = vmatpush3.msra.mxu1 %v6904_v7 }
 0x86f   :  { %5873 = vmatprep.subr.mxu0 %v6780_v0  ;;  %5884 = vmatprep.subr.mxu1 %v6780_v0 }
 0x870   :  { %5874 = vmatpush3.msra.mxu0 %v7011_v40  ;;  %5875 = vmatprep.mubr.msk.f32.mxu0 %vm6781_vm0, %v6780_v0 }
 0x871   :  { %5885 = vmatpush3.msra.mxu1 %v6912_v8  ;;  %5886 = vmatprep.mubr.msk.f32.mxu1 %vm6781_vm0, %v6780_v0 }
 0x872   :  { %5876 = vmatmul.mubr.msk.f32.vlgmr.msra.gmra.mxu0 %vm317_vm2, %v1530_v2  ;;  %5887 = vmatmul.mubr.msk.f32.vlgmr.msra.gmra.mxu1 %vm317_vm2, %v1530_v2 }
 0x873   :  { %5889 = vmatprep.subr.mxu0 %v6780_v0  ;;  %5900 = vmatprep.subr.mxu1 %v6780_v0 }
 0x874   :  { %5890 = vmatpush3.msra.mxu0 %v7201_v9  ;;  %5897 = vmatprep.mubr.msk.f32.mxu0 %vm6781_vm0, %v6780_v0 }
 0x875   :  { %5891 = vmatprep.subr.mxu0 %v6780_v0  ;;  %5901 = vmatpush3.msra.mxu1 %v7209_v19 }
 0x876   :  { %5892 = vmatpush3.msra.mxu0 %v7203_v11  ;;  %5902 = vmatprep.subr.mxu1 %v6780_v0 }
 0x877   :  { %5893 = vmatprep.subr.mxu0 %v6780_v0  ;;  %5903 = vmatpush3.msra.mxu1 %v7218_v13 }
 0x878   :  { %5894 = vmatpush3.msra.mxu0 %v7213_v22  ;;  %5904 = vmatprep.subr.mxu1 %v6780_v0 }
 0x879   :  { %5895 = vmatprep.subr.mxu0 %v6780_v0  ;;  %5905 = vmatpush3.msra.mxu1 %v7229_v15 }
 0x87a   :  { %5896 = vmatpush3.msra.mxu0 %v7223_v14  ;;  %5906 = vmatprep.subr.mxu1 %v6780_v0 }
 0x87b   :  { %5911 = vmatprep.subr.mxu0 %v6780_v0  ;;  %5907 = vmatpush3.msra.mxu1 %v7244_v16 }
 0x87c   :  { %5908 = vmatprep.mubr.msk.f32.mxu1 %vm6781_vm0, %v6780_v0  ;;  %5922 = vmatprep.subr.mxu1 %v6780_v0 }
 0x91f   :  { %v1259_v7 = vpop.f32.mrf.mxu0  ;;  %v1354_v8 = vpop.f32.mrf.mxu1 }
 0x920   :  { %v1260_v45 = vadd.f32 %v1259_v7, %v7265_v43 }
 0x921   :  { %v5833_v54 = vpop.f32.mrf.mxu0  ;;  %v5844_v55 = vpop.f32.mrf.mxu1 }
 0x922   :  { %v1263_v57 = vadd.f32 %v7333_v4, %v1260_v45 }
 0x924   :  { %6399 = vtanh.f32 %v1263_v57  ;;  %v5328_v10 = vmul.f32 -1.442695, %v1263_v57 }
 0x928   :  { %v1429_v58 = vpop.f32.mrf.mxu0  ;;  %v1524_v59 = vpop.f32.mrf.mxu1 }
 0x929   :  { %v1430_v60 = vadd.f32 %v1429_v58, %v1354_v8 }
 0x92a   :  { %v5855_v62 = vpop.f32.mrf.mxu0  ;;  %v5866_v63 = vpop.f32.mrf.mxu1 }
 0x92b   :  { %v1433_v3 = vadd.f32 %v7166_v56, %v1430_v60 }
 0x92d   :  { %6401 = vtanh.f32 %v1433_v3  ;;  %v5331_v46 = vmul.f32 -1.442695, %v1433_v3 }
 0x931   :  { %v6400_v5 = vpop.eup %6399 }
 0x932   :  { %v1599_v47 = vpop.f32.mrf.mxu0  ;;  %v1695_v17 = vpop.f32.mrf.mxu1  ;;  %1273 = vrot.lane.b32.xlu0 %v6400_v5, %s6782_s25 }
 0x933   :  { %v1600_v18 = vadd.f32 %v1599_v47, %v1524_v59  ;;  %v1699_v20 = vadd.f32 %v1695_v17, %v236_v12 }
 0x934   :  { %v5877_v21 = vpop.f32.mrf.mxu0  ;;  %v5888_v37 = vpop.f32.mrf.mxu1 }
 0x935   :  { %v1603_v38 = vadd.f32 %v7053_v53, %v1600_v18  ;;  %6403 = vtanh.f32 %v1699_v20  ;;  %v5336_v42 = vmul.f32 -1.442695, %v1699_v20 }
 0x937   :  { %6405 = vtanh.f32 %v1603_v38  ;;  %v5334_v2 = vmul.f32 -1.442695, %v1603_v38 }
 0x938   :  { %6407 = vpow2.f32 %v5328_v10 }
 0x939   :  { %6409 = vpow2.f32 %v5331_v46 }
 0x93a   :  { %v6402_v41 = vpop.eup %6401  ;;  %6411 = vpow2.f32 %v5336_v42 }
 0x93b   :  { %1443 = vrot.lane.b32.xlu1 %v6402_v41, %s6782_s25  ;;  %6413 = vpow2.f32 %v5334_v2 }
 0x942   :  { %v6404_v43 = vpop.eup %6403 }
 0x943   :  { %1709 = vrot.lane.b32.xlu1 %v6404_v43, %s6782_s25 }
 0x944   :  { %v6406_v44 = vpop.eup %6405 }
 0x945   :  { %1613 = vrot.lane.b32.xlu0 %v6406_v44, %s6782_s25  ;;  %v6408_v52 = vpop.eup %6407 }
 0x946   :  { %v1267_v7 = vadd.f32 1.0, %v6408_v52  ;;  %v6410_v8 = vpop.eup %6409 }
 0x947   :  { %v1437_v45 = vadd.f32 1.0, %v6410_v8  ;;  %v6412_v54 = vpop.eup %6411 }
 0x948   :  { %6415 = vrcp.f32 %v1267_v7  ;;  %v6414_v55 = vpop.eup %6413  ;;  %v1703_v59 = vadd.f32 1.0, %v6412_v54 }
 0x949   :  { %6417 = vrcp.f32 %v1437_v45  ;;  %v1607_v57 = vadd.f32 1.0, %v6414_v55 }
 0x94a   :  { %6419 = vrcp.f32 %v1703_v59 }
 0x94b   :  { %6421 = vrcp.f32 %v1607_v57 }
 0x955   :  { %v6416_v58 = vpop.eup %6415 }
 0x956   :  { %v6418_v63 = vpop.eup %6417  ;;  %v1271_v37 = vmul.f32 0.0, %v6416_v58 }
 0x957   :  { %v6420_v12 = vpop.eup %6419  ;;  %v1441_v43 = vmul.f32 %v6418_v63, %v7188_v61 }
 0x958   :  { %v6422_v18 = vpop.eup %6421  ;;  %v1707_v52 = vmul.f32 %v6420_v12, %v7193_v1 }
 0x959   :  { %v1611_v7 = vmul.f32 %v6422_v18, %v7198_v6 }
 0x9a4   :  { %v1274_v60 = vpop.permute.xlu0 %1273 }
 0x9a5   :  { %v1276_v62 = vmul.f32 %v6416_v58, %v1274_v60 }
 0x9a7   :  { %1278 = vrot.lane.b32.xlu0 %v1276_v62, %s6783_s26 }
 0x9ad   :  { %v1444_v3 = vpop.permute.xlu1 %1443 }
 0x9ae   :  { %v1446_v5 = vmul.f32 %v6418_v63, %v1444_v3 }
 0x9b0   :  { %1448 = vrot.lane.b32.xlu1 %v1446_v5, %s6783_s26 }
 0x9b5   :  { %v1710_v47 = vpop.permute.xlu1 %1709 }
 0x9b6   :  { %v1712_v17 = vmul.f32 %v6420_v12, %v1710_v47 }
 0x9b7   :  { %v1614_v20 = vpop.permute.xlu0 %1613 }
 0x9b8   :  { %v1616_v21 = vmul.f32 %v6422_v18, %v1614_v20  ;;  %1714 = vrot.lane.b32.xlu1 %v1712_v17, %s6783_s26 }
 0x9ba   :  { %1618 = vrot.lane.b32.xlu0 %v1616_v21, %s6783_s26 }
 0xa19   :  { %v1279_v38 = vpop.permute.xlu0 %1278 }
 0xa1a   :  { %v7349_v41 = vadd.f32 %v1279_v38, %v1271_v37 }
 0xa1c   :  { %6423 = vtanh.f32 %v7349_v41 }
 0xa22   :  { %v1449_v44 = vpop.permute.xlu1 %1448 }
 0xa23   :  { %v7353_v10 = vadd.f32 %v1449_v44, %v1441_v43  ;;  %v7475_v44 = vld [vmem:[%s8212_s3] ss:$0 sm:$0xff] }
 0xa25   :  { %6425 = vtanh.f32 %v7353_v10 }
 0xa29   :  { %v6424_v46 = vpop.eup %6423 }
 0xa2a   :  { %v1715_v42 = vpop.permute.xlu1 %1714  ;;  %1284 = vrot.lane.b32.xlu0 %v6424_v46, %s6782_s25  ;;  %v241_v46 = vadd.f32 %v7475_v44, %v7042_v49 }
 0xa2b   :  { %v7358_v2 = vadd.f32 %v1715_v42, %v1707_v52 }
 0xa2c   :  { %v1619_v8 = vpop.permute.xlu0 %1618 }
 0xa2d   :  { %6427 = vtanh.f32 %v7358_v2  ;;  %v7362_v45 = vadd.f32 %v1619_v8, %v1611_v7 }
 0xa2f   :  { %6429 = vtanh.f32 %v7362_v45 }
 0xa32   :  { %v6426_v61 = vpop.eup %6425 }
 0xa33   :  { %1454 = vrot.lane.b32.xlu1 %v6426_v61, %s6782_s25 }
 0xa3a   :  { %v6428_v54 = vpop.eup %6427 }
 0xa3b   :  { %1720 = vrot.lane.b32.xlu1 %v6428_v54, %s6782_s25 }
 0xa3c   :  { %v6430_v1 = vpop.eup %6429 }
 0xa3d   :  { %1624 = vrot.lane.b32.xlu0 %v6430_v1, %s6782_s25 }
 0xa9c   :  { %v1285_v55 = vpop.permute.xlu0 %1284 }
 0xa9d   :  { %v1287_v59 = vmul.f32 %v6416_v58, %v1285_v55 }
 0xa9f   :  { %1725 = vrot.lane.b32.xlu0 %v1287_v59, %s6783_s26 }
 0xaa5   :  { %v1455_v6 = vpop.permute.xlu1 %1454 }
 0xaa6   :  { %v1457_v60 = vmul.f32 %v6418_v63, %v1455_v6 }
 0xaa8   :  { %1800 = vrot.lane.b32.xlu1 %v1457_v60, %s6783_s26 }
 0xaad   :  { %v1721_v62 = vpop.permute.xlu1 %1720 }
 0xaae   :  { %v1723_v57 = vmul.f32 %v6420_v12, %v1721_v62 }
 0xaaf   :  { %v1625_v3 = vpop.permute.xlu0 %1624 }
 0xab0   :  { %v1627_v5 = vmul.f32 %v6422_v18, %v1625_v3  ;;  %2140 = vrot.lane.b32.xlu1 %v1723_v57, %s6783_s26 }
 0xab2   :  { %1970 = vrot.lane.b32.xlu0 %v1627_v5, %s6783_s26 }
 0xb11   :  { %v1726_v47 = vpop.permute.xlu0 %1725 }
 0xb12   :  { %5898 = vmatmul.mubr.msk.f32.vlgmr.msra.gmra.mxu0 %vm317_vm2, %v1726_v47 }
 0xb13   :  { %5912 = vmatpush3.msra.mxu0 %v7070_v23  ;;  %5919 = vmatprep.mubr.msk.f32.mxu0 %vm6781_vm0, %v6780_v0 }
 0xb14   :  { %5913 = vmatprep.subr.mxu0 %v6780_v0 }
 0xb15   :  { %5914 = vmatpush3.msra.mxu0 %v7075_v24 }
 0xb16   :  { %5915 = vmatprep.subr.mxu0 %v6780_v0 }
 0xb17   :  { %5916 = vmatpush3.msra.mxu0 %v7092_v29 }
 0xb18   :  { %5917 = vmatprep.subr.mxu0 %v6780_v0 }
 0xb19   :  { %5918 = vmatpush3.msra.mxu0 %v7106_v34 }
 0xb1a   :  { %v1801_v58 = vpop.permute.xlu1 %1800  ;;  %5933 = vmatprep.subr.mxu0 %v6780_v0 }
 0xb1b   :  { %5909 = vmatmul.mubr.msk.f32.vlgmr.msra.gmra.mxu1 %vm317_vm2, %v1801_v58  ;;  %5920 = vmatmul.mubr.msk.f32.vlgmr.msra.gmra.mxu0 %vm317_vm2, %v1801_v58 }
 0xb1c   :  { %5923 = vmatpush3.msra.mxu1 %v7081_v25  ;;  %5934 = vmatpush3.msra.mxu0 %v6946_v28 }
 0xb1d   :  { %5924 = vmatprep.subr.mxu1 %v6780_v0  ;;  %5935 = vmatprep.subr.mxu0 %v6780_v0 }
 0xb1e   :  { %5925 = vmatpush3.msra.mxu1 %v7086_v27  ;;  %5936 = vmatpush3.msra.mxu0 %v6956_v30  ;;  %v7411_v30 = vld [vmem:[%s8211_s2 + $0x18] sm:$0xff] }
 0xb1f   :  { %5926 = vmatprep.subr.mxu1 %v6780_v0  ;;  %5937 = vmatprep.subr.mxu0 %v6780_v0 }
 0xb20   :  { %5927 = vmatpush3.msra.mxu1 %v7100_v32  ;;  %5938 = vmatpush3.msra.mxu0 %v6973_v33  ;;  %v7420_v33 = vld [vmem:[%s8211_s2 + $0x10] sm:$0xff] }
 0xb21   :  { %5928 = vmatprep.subr.mxu1 %v6780_v0  ;;  %5939 = vmatprep.subr.mxu0 %v6780_v0 }
 0xb22   :  { %5929 = vmatpush3.msra.mxu1 %v7132_v39  ;;  %5930 = vmatprep.mubr.msk.f32.mxu1 %vm6781_vm0, %v6780_v0 }
 0xb23   :  { %5940 = vmatpush3.msra.mxu0 %v6985_v35  ;;  %5941 = vmatprep.mubr.msk.f32.mxu0 %vm6781_vm0, %v6780_v0  ;;  %v7441_v35 = vld [vmem:[%s8211_s2] sm:$0xff] }
 0xb24   :  { %5944 = vmatprep.subr.mxu1 %v6780_v0  ;;  %v1971_v28 = vpop.permute.xlu0 %1970  ;;  %5955 = vmatprep.subr.mxu0 %v6780_v0 }
 0xb25   :  { %5931 = vmatmul.mubr.msk.f32.vlgmr.msra.gmra.mxu1 %vm317_vm2, %v1971_v28  ;;  %5942 = vmatmul.mubr.msk.f32.vlgmr.msra.gmra.mxu0 %vm317_vm2, %v1971_v28 }
 0xb26   :  { %5945 = vmatpush3.msra.mxu1 %v6938_v26  ;;  %5956 = vmatpush3.msra.mxu0 %v7411_v30  ;;  %v7429_v26 = vld [vmem:[%s8211_s2 + $0x8] sm:$0xff] }
 0xb27   :  { %5946 = vmatprep.subr.mxu1 %v6780_v0  ;;  %5957 = vmatprep.subr.mxu0 %v6780_v0 }
 0xb28   :  { %5947 = vmatpush3.msra.mxu1 %v6961_v31  ;;  %5958 = vmatpush3.msra.mxu0 %v7420_v33  ;;  %v2141_v31 = vpop.permute.xlu1 %2140 }
 0xb29   :  { %5948 = vmatprep.subr.mxu1 %v6780_v0  ;;  %5959 = vmatprep.subr.mxu0 %v6780_v0 }
 0xb2a   :  { %5949 = vmatpush3.msra.mxu1 %v6990_v36  ;;  %5960 = vmatpush3.msra.mxu0 %v7429_v26 }
 0xb2b   :  { %5950 = vmatprep.subr.mxu1 %v6780_v0  ;;  %5952 = vmatprep.mubr.msk.f32.mxu1 %vm6781_vm0, %v6780_v0 }
 0xb2c   :  { %5951 = vmatpush3.msra.mxu1 %v7011_v40  ;;  %5961 = vmatprep.subr.mxu0 %v6780_v0 }
 0xb2d   :  { %5953 = vmatmul.mubr.msk.f32.vlgmr.msra.gmra.mxu1 %vm317_vm2, %v2141_v31  ;;  %5962 = vmatpush3.msra.mxu0 %v7441_v35 }
 0xb2e   :  { %5963 = vmatprep.mubr.msk.f32.mxu0 %vm6781_vm0, %v6780_v0  ;;  %5966 = vmatprep.subr.mxu1 %v6780_v0 }
 0xb2f   :  { %5964 = vmatmul.mubr.msk.f32.vlgmr.msra.gmra.mxu0 %vm317_vm2, %v2141_v31  ;;  %5967 = vmatpush3.msra.mxu1 %v7201_v9 }
 0xb30   :  { %5968 = vmatprep.subr.mxu1 %v6780_v0  ;;  %5974 = vmatprep.mubr.msk.f32.mxu1 %vm6781_vm0, %v6780_v0 }
 0xb31   :  { %5969 = vmatpush3.msra.mxu1 %v7203_v11  ;;  %5977 = vmatprep.subr.mxu0 %v6780_v0 }
 0xb32   :  { %5970 = vmatprep.subr.mxu1 %v6780_v0  ;;  %5978 = vmatpush3.msra.mxu0 %v7209_v19 }
 0xb33   :  { %5971 = vmatpush3.msra.mxu1 %v7213_v22  ;;  %5979 = vmatprep.subr.mxu0 %v6780_v0 }
 0xb34   :  { %5972 = vmatprep.subr.mxu1 %v6780_v0  ;;  %5980 = vmatpush3.msra.mxu0 %v7218_v13 }
 0xb35   :  { %5973 = vmatpush3.msra.mxu1 %v7223_v14  ;;  %5981 = vmatprep.subr.mxu0 %v6780_v0 }
 0xb36   :  { %5988 = vmatprep.subr.mxu1 %v6780_v0  ;;  %5982 = vmatpush3.msra.mxu0 %v7229_v15 }
 0xb37   :  { %5983 = vmatprep.subr.mxu0 %v6780_v0  ;;  %5985 = vmatprep.mubr.msk.f32.mxu0 %vm6781_vm0, %v6780_v0 }
 0xb38   :  { %5984 = vmatpush3.msra.mxu0 %v7244_v16 }
 0xb39   :  { %5999 = vmatprep.subr.mxu0 %v6780_v0 }
 0xbd2   :  { %v1795_v36 = vpop.f32.mrf.mxu0 }
 0xbd4   :  { %v5899_v40 = vpop.f32.mrf.mxu0 }
 0xbdb   :  { %v1870_v23 = vpop.f32.mrf.mxu1  ;;  %v1965_v24 = vpop.f32.mrf.mxu0 }
 0xbdc   :  { %v1871_v25 = vadd.f32 %v1870_v23, %v1795_v36 }
 0xbdd   :  { %v5910_v27 = vpop.f32.mrf.mxu1  ;;  %v5921_v29 = vpop.f32.mrf.mxu0 }
 0xbde   :  { %v1874_v32 = vadd.f32 %v7333_v4, %v1871_v25 }
 0xbe0   :  { %6431 = vtanh.f32 %v1874_v32  ;;  %v5339_v54 = vmul.f32 -1.442695, %v1874_v32 }
 0xbe5   :  { %v2040_v34 = vpop.f32.mrf.mxu1  ;;  %v2135_v39 = vpop.f32.mrf.mxu0 }
 0xbe6   :  { %v2041_v63 = vadd.f32 %v2040_v34, %v1965_v24 }
 0xbe7   :  { %v5932_v12 = vpop.f32.mrf.mxu1  ;;  %v5943_v17 = vpop.f32.mrf.mxu0 }
 0xbe8   :  { %v2044_v18 = vadd.f32 %v7166_v56, %v2041_v63 }
 0xbea   :  { %6433 = vtanh.f32 %v2044_v18  ;;  %v5342_v1 = vmul.f32 -1.442695, %v2044_v18 }
 0xbed   :  { %v6432_v20 = vpop.eup %6431  ;;  %v2210_v21 = vpop.f32.mrf.mxu1 }
 0xbee   :  { %v2211_v37 = vadd.f32 %v2210_v21, %v2135_v39  ;;  %1884 = vrot.lane.b32.xlu0 %v6432_v20, %s6782_s25 }
 0xbef   :  { %v2306_v38 = vpop.f32.mrf.mxu0  ;;  %v5954_v43 = vpop.f32.mrf.mxu1 }
 0xbf0   :  { %v2214_v52 = vadd.f32 %v7053_v53, %v2211_v37  ;;  %v2310_v56 = vadd.f32 %v2306_v38, %v241_v46 }
 0xbf1   :  { %v5965_v42 = vpop.f32.mrf.mxu0 }
 0xbf2   :  { %6435 = vtanh.f32 %v2214_v52  ;;  %v5345_v55 = vmul.f32 -1.442695, %v2214_v52  ;;  %v5347_v59 = vmul.f32 -1.442695, %v2310_v56 }
 0xbf3   :  { %6437 = vtanh.f32 %v2310_v56 }
 0xbf4   :  { %6439 = vpow2.f32 %v5339_v54 }
 0xbf5   :  { %6441 = vpow2.f32 %v5342_v1 }
 0xbf6   :  { %6443 = vpow2.f32 %v5345_v55  ;;  %v7515_v55 = vld [vmem:[%s8217_s8 + $0x18] sm:$0xff] }
 0xbf7   :  { %v6434_v7 = vpop.eup %6433 }
 0xbf8   :  { %2054 = vrot.lane.b32.xlu1 %v6434_v7, %s6782_s25 }
 0xbff   :  { %v6436_v8 = vpop.eup %6435 }
 0xc00   :  { %2224 = vrot.lane.b32.xlu0 %v6436_v8, %s6782_s25  ;;  %v6438_v61 = vpop.eup %6437 }
 0xc01   :  { %2320 = vrot.lane.b32.xlu1 %v6438_v61, %s6782_s25  ;;  %v6440_v49 = vpop.eup %6439 }
 0xc02   :  { %v1878_v53 = vadd.f32 1.0, %v6440_v49  ;;  %v6442_v6 = vpop.eup %6441 }
 0xc03   :  { %v2048_v60 = vadd.f32 1.0, %v6442_v6  ;;  %v6444_v62 = vpop.eup %6443  ;;  %v7538_v6 = vld [vmem:[%s8217_s8] sm:$0xff] }
 0xc04   :  { %6445 = vrcp.f32 %v1878_v53  ;;  %v2218_v58 = vadd.f32 1.0, %v6444_v62  ;;  %v7524_v53 = vld [vmem:[%s8217_s8 + $0x10] sm:$0xff]  ;;  %v7547_v62 = vld [vmem:[%s8216_s7 + $0x18] sm:$0xff] }
 0xc05   :  { %6447 = vpow2.f32 %v5347_v59  ;;  %v7531_v59 = vld [vmem:[%s8217_s8 + $0x8] sm:$0xff] }
 0xc06   :  { %6449 = vrcp.f32 %v2048_v60 }
 0xc07   :  { %6451 = vrcp.f32 %v2218_v58  ;;  %v7581_v58 = vld [vmem:[%s8214_s5 + $0x8] sm:$0xff] }
 0xc11   :  { %v6446_v57 = vpop.eup %6445 }
 0xc12   :  { %v6448_v47 = vpop.eup %6447  ;;  %v1882_v34 = vmul.f32 %v6446_v57, %v7349_v41 }
 0xc13   :  { %v2314_v28 = vadd.f32 1.0, %v6448_v47  ;;  %v6450_v31 = vpop.eup %6449  ;;  %v7575_v47 = vld [vmem:[%s8216_s7 + $0x8] sm:$0xff] }
 0xc14   :  { %v6452_v23 = vpop.eup %6451  ;;  %v2052_v12 = vmul.f32 %v6450_v31, %v7353_v10 }
 0xc15   :  { %6453 = vrcp.f32 %v2314_v28  ;;  %v2222_v21 = vmul.f32 %v6452_v23, %v7362_v45  ;;  %v7589_v28 = vld [vmem:[%s8216_s7] sm:$0xff] }
 0xc22   :  { %v6454_v27 = vpop.eup %6453 }
 0xc23   :  { %v2318_v41 = vmul.f32 %v6454_v27, %v7358_v2 }
 0xc60   :  { %v1885_v3 = vpop.permute.xlu0 %1884 }
 0xc61   :  { %v1887_v5 = vmul.f32 %v6446_v57, %v1885_v3  ;;  %v7561_v3 = vld [vmem:[%s8216_s7 + $0x10] sm:$0xff] }
 0xc63   :  { %1889 = vrot.lane.b32.xlu0 %v1887_v5, %s6783_s26  ;;  %v7567_v5 = vld [vmem:[%s8214_s5 + $0x10] sm:$0xff] }
 0xc6a   :  { %v2055_v36 = vpop.permute.xlu1 %2054 }
 0xc6b   :  { %v2057_v40 = vmul.f32 %v6450_v31, %v2055_v36  ;;  %v7597_v36 = vld [vmem:[%s8214_s5] sm:$0xff] }
 0xc6d   :  { %2059 = vrot.lane.b32.xlu1 %v2057_v40, %s6783_s26  ;;  %v7609_v40 = vld [vmem:[%s8213_s4 + $0x18] sm:$0xff] }
 0xc72   :  { %v2225_v24 = vpop.permute.xlu0 %2224 }
 0xc73   :  { %v2227_v25 = vmul.f32 %v6452_v23, %v2225_v24  ;;  %v2321_v29 = vpop.permute.xlu1 %2320  ;;  %v7627_v24 = vld [vmem:[%s8213_s4 + $0x8] sm:$0xff] }
 0xc74   :  { %v2323_v32 = vmul.f32 %v6454_v27, %v2321_v29 }
 0xc75   :  { %2229 = vrot.lane.b32.xlu0 %v2227_v25, %s6783_s26  ;;  %v7636_v25 = vld [vmem:[%s8213_s4] sm:$0xff] }
 0xc76   :  { %2325 = vrot.lane.b32.xlu1 %v2323_v32, %s6783_s26 }
 0xcd5   :  { %v1890_v39 = vpop.permute.xlu0 %1889 }
 0xcd6   :  { %v7488_v63 = vadd.f32 %v1890_v39, %v1882_v34 }
 0xcd8   :  { %6455 = vtanh.f32 %v7488_v63 }
 0xcdf   :  { %v2060_v17 = vpop.permute.xlu1 %2059 }
 0xce0   :  { %v7492_v18 = vadd.f32 %v2060_v17, %v2052_v12  ;;  %v7669_v17 = vld [vmem:[#allocation5] ss:$0 sm:$0xff] }
 0xce2   :  { %6457 = vtanh.f32 %v7492_v18 }
 0xce5   :  { %v6456_v20 = vpop.eup %6455 }
 0xce6   :  { %1895 = vrot.lane.b32.xlu0 %v6456_v20, %s6782_s25 }
 0xce7   :  { %v2230_v37 = vpop.permute.xlu0 %2229 }
 0xce8   :  { %v7497_v38 = vadd.f32 %v2230_v37, %v2222_v21  ;;  %v2326_v43 = vpop.permute.xlu1 %2325  ;;  %v246_v37 = vadd.f32 %v7475_v44, %v7040_v48 }
 0xce9   :  { %v7501_v46 = vadd.f32 %v2326_v43, %v2318_v41 }
 0xcea   :  { %6459 = vtanh.f32 %v7497_v38 }
 0xceb   :  { %6461 = vtanh.f32 %v7501_v46 }
 0xcef   :  { %v6458_v10 = vpop.eup %6457 }
 0xcf0   :  { %2065 = vrot.lane.b32.xlu1 %v6458_v10, %s6782_s25 }
 0xcf7   :  { %v6460_v52 = vpop.eup %6459 }
 0xcf8   :  { %2235 = vrot.lane.b32.xlu0 %v6460_v52, %s6782_s25  ;;  %v6462_v42 = vpop.eup %6461 }
 0xcf9   :  { %2331 = vrot.lane.b32.xlu1 %v6462_v42, %s6782_s25 }
 0xd58   :  { %v1896_v45 = vpop.permute.xlu0 %1895 }
 0xd59   :  { %v1898_v56 = vmul.f32 %v6446_v57, %v1896_v45  ;;  %v7553_v57 = vld [vmem:[%s8214_s5 + $0x18] sm:$0xff]  ;;  %v7678_v45 = vld [vmem:[%s8215_s6] ss:$0 sm:$0xff] }
 0xd5b   :  { %2336 = vrot.lane.b32.xlu0 %v1898_v56, %s6783_s26 }
 0xd62   :  { %v2066_v2 = vpop.permute.xlu1 %2065 }
 0xd63   :  { %v2068_v7 = vmul.f32 %v6450_v31, %v2066_v2 }
 0xd65   :  { %2411 = vrot.lane.b32.xlu1 %v2068_v7, %s6783_s26 }
 0xd6a   :  { %v2236_v8 = vpop.permute.xlu0 %2235 }
 0xd6b   :  { %v2238_v61 = vmul.f32 %v6452_v23, %v2236_v8  ;;  %v2332_v54 = vpop.permute.xlu1 %2331  ;;  %v7618_v23 = vld [vmem:[%s8213_s4 + $0x10] sm:$0xff] }
 0xd6c   :  { %v2334_v1 = vmul.f32 %v6454_v27, %v2332_v54 }
 0xd6d   :  { %2581 = vrot.lane.b32.xlu0 %v2238_v61, %s6783_s26 }
 0xd6e   :  { %2751 = vrot.lane.b32.xlu1 %v2334_v1, %s6783_s26 }
 0xdcd   :  { %v2337_v49 = vpop.permute.xlu0 %2336 }
 0xdce   :  { %5975 = vmatmul.mubr.msk.f32.vlgmr.msra.gmra.mxu1 %vm317_vm2, %v2337_v49 }
 0xdcf   :  { %5989 = vmatpush3.msra.mxu1 %v7515_v55  ;;  %5996 = vmatprep.mubr.msk.f32.mxu1 %vm6781_vm0, %v6780_v0 }
 0xdd0   :  { %5990 = vmatprep.subr.mxu1 %v6780_v0 }
 0xdd1   :  { %5991 = vmatpush3.msra.mxu1 %v7524_v53 }
 0xdd2   :  { %5992 = vmatprep.subr.mxu1 %v6780_v0 }
 0xdd3   :  { %5993 = vmatpush3.msra.mxu1 %v7531_v59 }
 0xdd4   :  { %5994 = vmatprep.subr.mxu1 %v6780_v0 }
 0xdd5   :  { %5995 = vmatpush3.msra.mxu1 %v7538_v6 }
 0xdd6   :  { %6010 = vmatprep.subr.mxu1 %v6780_v0 }
 0xdd7   :  { %v2412_v60 = vpop.permute.xlu1 %2411 }
 0xdd8   :  { %5986 = vmatmul.mubr.msk.f32.vlgmr.msra.gmra.mxu0 %vm317_vm2, %v2412_v60  ;;  %5997 = vmatmul.mubr.msk.f32.vlgmr.msra.gmra.mxu1 %vm317_vm2, %v2412_v60 }
 0xdd9   :  { %6000 = vmatpush3.msra.mxu0 %v7547_v62  ;;  %6011 = vmatpush3.msra.mxu1 %v7553_v57 }
 0xdda   :  { %6001 = vmatprep.subr.mxu0 %v6780_v0  ;;  %6012 = vmatprep.subr.mxu1 %v6780_v0 }
 0xddb   :  { %6002 = vmatpush3.msra.mxu0 %v7561_v3  ;;  %6013 = vmatpush3.msra.mxu1 %v7567_v5 }
 0xddc   :  { %6003 = vmatprep.subr.mxu0 %v6780_v0  ;;  %6014 = vmatprep.subr.mxu1 %v6780_v0 }
 0xddd   :  { %6004 = vmatpush3.msra.mxu0 %v7575_v47  ;;  %6015 = vmatpush3.msra.mxu1 %v7581_v58 }
 0xdde   :  { %6005 = vmatprep.subr.mxu0 %v6780_v0  ;;  %6016 = vmatprep.subr.mxu1 %v6780_v0 }
 0xddf   :  { %6006 = vmatpush3.msra.mxu0 %v7589_v28  ;;  %6007 = vmatprep.mubr.msk.f32.mxu0 %vm6781_vm0, %v6780_v0  ;;  %v2582_v31 = vpop.permute.xlu0 %2581 }
 0xde0   :  { %6017 = vmatpush3.msra.mxu1 %v7597_v36  ;;  %6018 = vmatprep.mubr.msk.f32.mxu1 %vm6781_vm0, %v6780_v0  ;;  %v2752_v27 = vpop.permute.xlu1 %2751 }
 0xde1   :  { %6008 = vmatmul.mubr.msk.f32.vlgmr.msra.gmra.mxu0 %vm317_vm2, %v2582_v31  ;;  %6019 = vmatmul.mubr.msk.f32.vlgmr.msra.gmra.mxu1 %vm317_vm2, %v2582_v31 }
 0xde2   :  { %6021 = vmatprep.subr.mxu0 %v6780_v0  ;;  %6032 = vmatprep.subr.mxu1 %v6780_v0 }
 0xde3   :  { %6022 = vmatpush3.msra.mxu0 %v7609_v40  ;;  %6033 = vmatpush3.msra.mxu1 %v7411_v30 }
 0xde4   :  { %6023 = vmatprep.subr.mxu0 %v6780_v0  ;;  %6034 = vmatprep.subr.mxu1 %v6780_v0 }
 0xde5   :  { %6024 = vmatpush3.msra.mxu0 %v7618_v23  ;;  %6035 = vmatpush3.msra.mxu1 %v7420_v33 }
 0xde6   :  { %6025 = vmatprep.subr.mxu0 %v6780_v0  ;;  %6036 = vmatprep.subr.mxu1 %v6780_v0 }
 0xde7   :  { %6026 = vmatpush3.msra.mxu0 %v7627_v24  ;;  %6037 = vmatpush3.msra.mxu1 %v7429_v26 }
 0xde8   :  { %6027 = vmatprep.subr.mxu0 %v6780_v0  ;;  %6038 = vmatprep.subr.mxu1 %v6780_v0 }
 0xde9   :  { %6028 = vmatpush3.msra.mxu0 %v7636_v25  ;;  %6029 = vmatprep.mubr.msk.f32.mxu0 %vm6781_vm0, %v6780_v0 }
 0xdea   :  { %6039 = vmatpush3.msra.mxu1 %v7441_v35  ;;  %6040 = vmatprep.mubr.msk.f32.mxu1 %vm6781_vm0, %v6780_v0 }
 0xdeb   :  { %6030 = vmatmul.mubr.msk.f32.vlgmr.msra.gmra.mxu0 %vm317_vm2, %v2752_v27  ;;  %6041 = vmatmul.mubr.msk.f32.vlgmr.msra.gmra.mxu1 %vm317_vm2, %v2752_v27 }
 0xdec   :  { %6043 = vmatprep.subr.mxu0 %v6780_v0  ;;  %6054 = vmatprep.subr.mxu1 %v6780_v0 }
 0xded   :  { %6044 = vmatpush3.msra.mxu0 %v7201_v9  ;;  %6051 = vmatprep.mubr.msk.f32.mxu0 %vm6781_vm0, %v6780_v0 }
 0xdee   :  { %6045 = vmatprep.subr.mxu0 %v6780_v0  ;;  %6055 = vmatpush3.msra.mxu1 %v7209_v19 }
 0xdef   :  { %6046 = vmatpush3.msra.mxu0 %v7203_v11  ;;  %6056 = vmatprep.subr.mxu1 %v6780_v0 }
 0xdf0   :  { %6047 = vmatprep.subr.mxu0 %v6780_v0  ;;  %6057 = vmatpush3.msra.mxu1 %v7218_v13 }
 0xdf1   :  { %6048 = vmatpush3.msra.mxu0 %v7213_v22  ;;  %6058 = vmatprep.subr.mxu1 %v6780_v0 }
 0xdf2   :  { %6049 = vmatprep.subr.mxu0 %v6780_v0  ;;  %6059 = vmatpush3.msra.mxu1 %v7229_v15 }
 0xdf3   :  { %6050 = vmatpush3.msra.mxu0 %v7223_v14  ;;  %6060 = vmatprep.subr.mxu1 %v6780_v0 }
 0xdf4   :  { %6065 = vmatprep.subr.mxu0 %v6780_v0  ;;  %6061 = vmatpush3.msra.mxu1 %v7244_v16 }
 0xdf5   :  { %6062 = vmatprep.mubr.msk.f32.mxu1 %vm6781_vm0, %v6780_v0  ;;  %6076 = vmatprep.subr.mxu1 %v6780_v0 }
 0xe8e   :  { %v2406_v9 = vpop.f32.mrf.mxu1 }
 0xe90   :  { %v5976_v11 = vpop.f32.mrf.mxu1 }
 0xe98   :  { %v2481_v19 = vpop.f32.mrf.mxu0  ;;  %v2576_v22 = vpop.f32.mrf.mxu1 }
 0xe99   :  { %v2482_v13 = vadd.f32 %v2481_v19, %v2406_v9 }
 0xe9a   :  { %v5987_v29 = vpop.f32.mrf.mxu0  ;;  %v5998_v15 = vpop.f32.mrf.mxu1 }
 0xe9b   :  { %v2485_v14 = vadd.f32 %v7333_v4, %v2482_v13 }
 0xe9d   :  { %6463 = vtanh.f32 %v2485_v14  ;;  %v5350_v8 = vmul.f32 -1.442695, %v2485_v14 }
 0xea1   :  { %v2651_v32 = vpop.f32.mrf.mxu0  ;;  %v2746_v34 = vpop.f32.mrf.mxu1 }
 0xea2   :  { %v2652_v39 = vadd.f32 %v2651_v32, %v2576_v22 }
 0xea3   :  { %v6009_v12 = vpop.f32.mrf.mxu0  ;;  %v6020_v16 = vpop.f32.mrf.mxu1 }
 0xea4   :  { %v2655_v20 = vadd.f32 %v7669_v17, %v2652_v39 }
 0xea6   :  { %6465 = vtanh.f32 %v2655_v20  ;;  %v5353_v61 = vmul.f32 -1.442695, %v2655_v20 }
 0xeaa   :  { %v6464_v21 = vpop.eup %6463 }
 0xeab   :  { %v2821_v41 = vpop.f32.mrf.mxu0  ;;  %v2917_v43 = vpop.f32.mrf.mxu1  ;;  %2495 = vrot.lane.b32.xlu0 %v6464_v21, %s6782_s25 }
 0xeac   :  { %v2822_v4 = vadd.f32 %v2821_v41, %v2746_v34  ;;  %v2921_v10 = vadd.f32 %v2917_v43, %v246_v37 }
 0xead   :  { %v6031_v52 = vpop.f32.mrf.mxu0  ;;  %v6042_v42 = vpop.f32.mrf.mxu1 }
 0xeae   :  { %v2825_v56 = vadd.f32 %v7678_v45, %v2822_v4  ;;  %6467 = vtanh.f32 %v2921_v10  ;;  %v5358_v1 = vmul.f32 -1.442695, %v2921_v10 }
 0xeb0   :  { %6469 = vtanh.f32 %v2825_v56  ;;  %v5356_v49 = vmul.f32 -1.442695, %v2825_v56 }
 0xeb1   :  { %6471 = vpow2.f32 %v5350_v8 }
 0xeb2   :  { %6473 = vpow2.f32 %v5353_v61 }
 0xeb3   :  { %v6466_v2 = vpop.eup %6465  ;;  %6475 = vpow2.f32 %v5358_v1 }
 0xeb4   :  { %2665 = vrot.lane.b32.xlu1 %v6466_v2, %s6782_s25  ;;  %6477 = vpow2.f32 %v5356_v49 }
 0xebb   :  { %v6468_v48 = vpop.eup %6467 }
 0xebc   :  { %2931 = vrot.lane.b32.xlu1 %v6468_v48, %s6782_s25 }
 0xebd   :  { %v6470_v7 = vpop.eup %6469 }
 0xebe   :  { %2835 = vrot.lane.b32.xlu0 %v6470_v7, %s6782_s25  ;;  %v6472_v54 = vpop.eup %6471 }
 0xebf   :  { %v2489_v60 = vadd.f32 1.0, %v6472_v54  ;;  %v6474_v31 = vpop.eup %6473 }
 0xec0   :  { %v2659_v27 = vadd.f32 1.0, %v6474_v31  ;;  %v6476_v9 = vpop.eup %6475 }
 0xec1   :  { %6479 = vrcp.f32 %v2489_v60  ;;  %v6478_v11 = vpop.eup %6477  ;;  %v2925_v22 = vadd.f32 1.0, %v6476_v9 }
 0xec2   :  { %6481 = vrcp.f32 %v2659_v27  ;;  %v2829_v15 = vadd.f32 1.0, %v6478_v11 }
 0xec3   :  { %6483 = vrcp.f32 %v2925_v22 }
 0xec4   :  { %6485 = vrcp.f32 %v2829_v15  ;;  %v7793_v15 = vld [vmem:[%s8219_s10 + $0x10] sm:$0xff] }
 0xece   :  { %v6480_v19 = vpop.eup %6479 }
 0xecf   :  { %v6482_v14 = vpop.eup %6481  ;;  %v2493_v41 = vmul.f32 %v6480_v19, %v7488_v63 }
 0xed0   :  { %v6484_v39 = vpop.eup %6483  ;;  %v2663_v10 = vmul.f32 %v6482_v14, %v7492_v18 }
 0xed1   :  { %v6486_v20 = vpop.eup %6485  ;;  %v2929_v2 = vmul.f32 %v6484_v39, %v7501_v46 }
 0xed2   :  { %v2833_v63 = vmul.f32 %v6486_v20, %v7497_v38 }
 0xf1d   :  { %v2496_v13 = vpop.permute.xlu0 %2495 }
 0xf1e   :  { %v2498_v29 = vmul.f32 %v6480_v19, %v2496_v13 }
 0xf20   :  { %2500 = vrot.lane.b32.xlu0 %v2498_v29, %s6783_s26  ;;  %v7785_v29 = vld [vmem:[#allocation7 + $0x8] sm:$0xff] }
 0xf26   :  { %v2666_v32 = vpop.permute.xlu1 %2665 }
 0xf27   :  { %v2668_v34 = vmul.f32 %v6482_v14, %v2666_v32  ;;  %v7804_v32 = vld [vmem:[%s8219_s10 + $0x8] sm:$0xff] }
 0xf29   :  { %2670 = vrot.lane.b32.xlu1 %v2668_v34, %s6783_s26  ;;  %v7813_v34 = vld [vmem:[%s8219_s10] sm:$0xff] }
 0xf2e   :  { %v2932_v12 = vpop.permute.xlu1 %2931 }
 0xf2f   :  { %v2934_v16 = vmul.f32 %v6484_v39, %v2932_v12 }
 0xf30   :  { %v2836_v21 = vpop.permute.xlu0 %2835 }
 0xf31   :  { %v2838_v37 = vmul.f32 %v6486_v20, %v2836_v21  ;;  %2936 = vrot.lane.b32.xlu1 %v2934_v16, %s6783_s26 }
 0xf33   :  { %2840 = vrot.lane.b32.xlu0 %v2838_v37, %s6783_s26 }
 0xf92   :  { %v2501_v43 = vpop.permute.xlu0 %2500 }
 0xf93   :  { %v7689_v4 = vadd.f32 %v2501_v43, %v2493_v41  ;;  %v7817_v43 = vld [vmem:[#allocation8] ss:$0 sm:$0xff] }
 0xf95   :  { %6487 = vtanh.f32 %v7689_v4 }
 0xf9b   :  { %v2671_v52 = vpop.permute.xlu1 %2670 }
 0xf9c   :  { %v7693_v42 = vadd.f32 %v2671_v52, %v2663_v10 }
 0xf9e   :  { %6489 = vtanh.f32 %v7693_v42 }
 0xfa2   :  { %v6488_v56 = vpop.eup %6487 }
 0xfa3   :  { %v2937_v48 = vpop.permute.xlu1 %2936  ;;  %2506 = vrot.lane.b32.xlu0 %v6488_v56, %s6782_s25 }
 0xfa4   :  { %v7698_v7 = vadd.f32 %v2937_v48, %v2929_v2 }
 0xfa5   :  { %v2841_v8 = vpop.permute.xlu0 %2840 }
 0xfa6   :  { %6491 = vtanh.f32 %v7698_v7  ;;  %v7702_v61 = vadd.f32 %v2841_v8, %v2833_v63 }
 0xfa8   :  { %6493 = vtanh.f32 %v7702_v61 }
 0xfab   :  { %v6490_v18 = vpop.eup %6489 }
 0xfac   :  { %2676 = vrot.lane.b32.xlu1 %v6490_v18, %s6782_s25 }
 0xfb3   :  { %v6492_v54 = vpop.eup %6491 }
 0xfb4   :  { %2942 = vrot.lane.b32.xlu1 %v6492_v54, %s6782_s25 }
 0xfb5   :  { %v6494_v46 = vpop.eup %6493 }
 0xfb6   :  { %2846 = vrot.lane.b32.xlu0 %v6494_v46, %s6782_s25 }
0x1015   :  { %v2507_v1 = vpop.permute.xlu0 %2506 }
0x1016   :  { %v2509_v49 = vmul.f32 %v6480_v19, %v2507_v1 }
0x1018   :  { %2947 = vrot.lane.b32.xlu0 %v2509_v49, %s6783_s26 }
0x101e   :  { %v2677_v38 = vpop.permute.xlu1 %2676 }
0x101f   :  { %v2679_v60 = vmul.f32 %v6482_v14, %v2677_v38  ;;  %v7796_v14 = vld [vmem:[#allocation7] sm:$0xff]  ;;  %v251_v38 = vadd.f32 %v7475_v44, %v7046_v51 }
0x1021   :  { %3022 = vrot.lane.b32.xlu1 %v2679_v60, %s6783_s26 }
0x1026   :  { %v2943_v31 = vpop.permute.xlu1 %2942 }
0x1027   :  { %v2945_v27 = vmul.f32 %v6484_v39, %v2943_v31 }
0x1028   :  { %v2847_v9 = vpop.permute.xlu0 %2846 }
0x1029   :  { %v2849_v11 = vmul.f32 %v6486_v20, %v2847_v9  ;;  %3362 = vrot.lane.b32.xlu1 %v2945_v27, %s6783_s26 }
0x102b   :  { %3192 = vrot.lane.b32.xlu0 %v2849_v11, %s6783_s26 }
0x108a   :  { %v2948_v22 = vpop.permute.xlu0 %2947 }
0x108b   :  { %6052 = vmatmul.mubr.msk.f32.vlgmr.msra.gmra.mxu0 %vm317_vm2, %v2948_v22 }
0x108c   :  { %6066 = vmatpush3.msra.mxu0 %v7515_v55  ;;  %6073 = vmatprep.mubr.msk.f32.mxu0 %vm6781_vm0, %v6780_v0 }
0x108d   :  { %6067 = vmatprep.subr.mxu0 %v6780_v0 }
0x108e   :  { %6068 = vmatpush3.msra.mxu0 %v7524_v53 }
0x108f   :  { %6069 = vmatprep.subr.mxu0 %v6780_v0 }
0x1090   :  { %6070 = vmatpush3.msra.mxu0 %v7531_v59 }
0x1091   :  { %6071 = vmatprep.subr.mxu0 %v6780_v0 }
0x1092   :  { %6072 = vmatpush3.msra.mxu0 %v7538_v6 }
0x1093   :  { %v3023_v19 = vpop.permute.xlu1 %3022  ;;  %6087 = vmatprep.subr.mxu0 %v6780_v0 }
0x1094   :  { %6063 = vmatmul.mubr.msk.f32.vlgmr.msra.gmra.mxu1 %vm317_vm2, %v3023_v19  ;;  %6074 = vmatmul.mubr.msk.f32.vlgmr.msra.gmra.mxu0 %vm317_vm2, %v3023_v19 }
0x1095   :  { %6077 = vmatpush3.msra.mxu1 %v7547_v62  ;;  %6088 = vmatpush3.msra.mxu0 %v7553_v57 }
0x1096   :  { %6078 = vmatprep.subr.mxu1 %v6780_v0  ;;  %6089 = vmatprep.subr.mxu0 %v6780_v0 }
0x1097   :  { %6079 = vmatpush3.msra.mxu1 %v7561_v3  ;;  %6090 = vmatpush3.msra.mxu0 %v7567_v5 }
0x1098   :  { %6080 = vmatprep.subr.mxu1 %v6780_v0  ;;  %6091 = vmatprep.subr.mxu0 %v6780_v0 }
0x1099   :  { %6081 = vmatpush3.msra.mxu1 %v7575_v47  ;;  %6092 = vmatpush3.msra.mxu0 %v7581_v58 }
0x109a   :  { %6082 = vmatprep.subr.mxu1 %v6780_v0  ;;  %6093 = vmatprep.subr.mxu0 %v6780_v0 }
0x109b   :  { %6083 = vmatpush3.msra.mxu1 %v7589_v28  ;;  %6084 = vmatprep.mubr.msk.f32.mxu1 %vm6781_vm0, %v6780_v0 }
0x109c   :  { %6094 = vmatpush3.msra.mxu0 %v7597_v36  ;;  %6095 = vmatprep.mubr.msk.f32.mxu0 %vm6781_vm0, %v6780_v0 }
0x109d   :  { %6098 = vmatprep.subr.mxu1 %v6780_v0  ;;  %v3193_v13 = vpop.permute.xlu0 %3192  ;;  %6109 = vmatprep.subr.mxu0 %v6780_v0 }
0x109e   :  { %6085 = vmatmul.mubr.msk.f32.vlgmr.msra.gmra.mxu1 %vm317_vm2, %v3193_v13  ;;  %6096 = vmatmul.mubr.msk.f32.vlgmr.msra.gmra.mxu0 %vm317_vm2, %v3193_v13 }
0x109f   :  { %6099 = vmatpush3.msra.mxu1 %v7609_v40  ;;  %6110 = vmatpush3.msra.mxu0 %v7411_v30  ;;  %v3363_v30 = vpop.permute.xlu1 %3362 }
0x10a0   :  { %6100 = vmatprep.subr.mxu1 %v6780_v0  ;;  %6111 = vmatprep.subr.mxu0 %v6780_v0 }
0x10a1   :  { %6101 = vmatpush3.msra.mxu1 %v7618_v23  ;;  %6112 = vmatpush3.msra.mxu0 %v7420_v33  ;;  %v7768_v33 = vld [vmem:[#allocation7 + $0x18] sm:$0xff] }
0x10a2   :  { %6102 = vmatprep.subr.mxu1 %v6780_v0  ;;  %6113 = vmatprep.subr.mxu0 %v6780_v0 }
0x10a3   :  { %6103 = vmatpush3.msra.mxu1 %v7627_v24  ;;  %6114 = vmatpush3.msra.mxu0 %v7429_v26  ;;  %v7774_v26 = vld [vmem:[#allocation7 + $0x10] sm:$0xff] }
0x10a4   :  { %6104 = vmatprep.subr.mxu1 %v6780_v0  ;;  %6106 = vmatprep.mubr.msk.f32.mxu1 %vm6781_vm0, %v6780_v0 }
0x10a5   :  { %6105 = vmatpush3.msra.mxu1 %v7636_v25  ;;  %6115 = vmatprep.subr.mxu0 %v6780_v0 }
0x10a6   :  { %6107 = vmatmul.mubr.msk.f32.vlgmr.msra.gmra.mxu1 %vm317_vm2, %v3363_v30  ;;  %6116 = vmatpush3.msra.mxu0 %v7441_v35  ;;  %v7782_v35 = vld [vmem:[%s8219_s10 + $0x18] sm:$0xff] }
0x10a7   :  { %6117 = vmatprep.mubr.msk.f32.mxu0 %vm6781_vm0, %v6780_v0  ;;  %6120 = vmatprep.subr.mxu1 %v6780_v0 }
0x10a8   :  { %6118 = vmatmul.mubr.msk.f32.vlgmr.msra.gmra.mxu0 %vm317_vm2, %v3363_v30  ;;  %6121 = vmatpush3.msra.mxu1 %v7768_v33 }
0x10a9   :  { %6122 = vmatprep.subr.mxu1 %v6780_v0  ;;  %6128 = vmatprep.mubr.msk.f32.mxu1 %vm6781_vm0, %v6780_v0 }
0x10aa   :  { %6123 = vmatpush3.msra.mxu1 %v7774_v26  ;;  %6131 = vmatprep.subr.mxu0 %v6780_v0 }
0x10ab   :  { %6124 = vmatprep.subr.mxu1 %v6780_v0  ;;  %6132 = vmatpush3.msra.mxu0 %v7782_v35 }
0x10ac   :  { %6125 = vmatpush3.msra.mxu1 %v7785_v29  ;;  %6133 = vmatprep.subr.mxu0 %v6780_v0 }
0x10ad   :  { %6126 = vmatprep.subr.mxu1 %v6780_v0  ;;  %6134 = vmatpush3.msra.mxu0 %v7793_v15 }
0x10ae   :  { %6127 = vmatpush3.msra.mxu1 %v7796_v14  ;;  %6135 = vmatprep.subr.mxu0 %v6780_v0 }
0x10af   :  { %6142 = vmatprep.subr.mxu1 %v6780_v0  ;;  %6136 = vmatpush3.msra.mxu0 %v7804_v32 }
0x10b0   :  { %6137 = vmatprep.subr.mxu0 %v6780_v0  ;;  %6139 = vmatprep.mubr.msk.f32.mxu0 %vm6781_vm0, %v6780_v0 }
0x10b1   :  { %6138 = vmatpush3.msra.mxu0 %v7813_v34 }
0x10b2   :  { %6153 = vmatprep.subr.mxu0 %v6780_v0 }
0x114b   :  { %v3017_v39 = vpop.f32.mrf.mxu0 }
0x114d   :  { %v6053_v12 = vpop.f32.mrf.mxu0 }
0x1154   :  { %v3092_v16 = vpop.f32.mrf.mxu1  ;;  %v3187_v20 = vpop.f32.mrf.mxu0 }
0x1155   :  { %v3093_v21 = vadd.f32 %v3092_v16, %v3017_v39 }
0x1156   :  { %v6064_v37 = vpop.f32.mrf.mxu1  ;;  %v6075_v41 = vpop.f32.mrf.mxu0 }
0x1157   :  { %v3096_v10 = vadd.f32 %v7817_v43, %v3093_v21 }
0x1159   :  { %6495 = vtanh.f32 %v3096_v10  ;;  %v5361_v19 = vmul.f32 -1.442695, %v3096_v10 }
0x115e   :  { %v3262_v52 = vpop.f32.mrf.mxu1  ;;  %v3357_v56 = vpop.f32.mrf.mxu0 }
0x115f   :  { %v3263_v2 = vadd.f32 %v3262_v52, %v3187_v20 }
0x1160   :  { %v6086_v48 = vpop.f32.mrf.mxu1  ;;  %v6097_v63 = vpop.f32.mrf.mxu0 }
0x1161   :  { %v3266_v8 = vadd.f32 %v7669_v17, %v3263_v2 }
0x1163   :  { %6497 = vtanh.f32 %v3266_v8  ;;  %v5364_v13 = vmul.f32 -1.442695, %v3266_v8 }
0x1166   :  { %v6496_v18 = vpop.eup %6495  ;;  %v3432_v54 = vpop.f32.mrf.mxu1 }
0x1167   :  { %v3433_v46 = vadd.f32 %v3432_v54, %v3357_v56  ;;  %3106 = vrot.lane.b32.xlu0 %v6496_v18, %s6782_s25 }
0x1168   :  { %v3528_v1 = vpop.f32.mrf.mxu0  ;;  %v6108_v49 = vpop.f32.mrf.mxu1 }
0x1169   :  { %v3436_v60 = vadd.f32 %v7678_v45, %v3433_v46  ;;  %v3532_v27 = vadd.f32 %v3528_v1, %v251_v38 }
0x116a   :  { %v6119_v31 = vpop.f32.mrf.mxu0 }
0x116b   :  { %6499 = vtanh.f32 %v3436_v60  ;;  %v5367_v44 = vmul.f32 -1.442695, %v3436_v60  ;;  %v5369_v39 = vmul.f32 -1.442695, %v3532_v27 }
0x116c   :  { %6501 = vtanh.f32 %v3532_v27 }
0x116d   :  { %6503 = vpow2.f32 %v5361_v19 }
0x116e   :  { %6505 = vpow2.f32 %v5364_v13 }
0x116f   :  { %6507 = vpow2.f32 %v5367_v44 }
0x1170   :  { %v6498_v9 = vpop.eup %6497 }
0x1171   :  { %3276 = vrot.lane.b32.xlu1 %v6498_v9, %s6782_s25 }
0x1178   :  { %v6500_v11 = vpop.eup %6499 }
0x1179   :  { %3446 = vrot.lane.b32.xlu0 %v6500_v11, %s6782_s25  ;;  %v6502_v22 = vpop.eup %6501 }
0x117a   :  { %3542 = vrot.lane.b32.xlu1 %v6502_v22, %s6782_s25  ;;  %v6504_v51 = vpop.eup %6503 }
0x117b   :  { %v3100_v30 = vadd.f32 1.0, %v6504_v51  ;;  %v6506_v12 = vpop.eup %6505 }
0x117c   :  { %v3270_v16 = vadd.f32 1.0, %v6506_v12  ;;  %v6508_v20 = vpop.eup %6507 }
0x117d   :  { %6509 = vrcp.f32 %v3100_v30  ;;  %v3440_v56 = vadd.f32 1.0, %v6508_v20 }
0x117e   :  { %6511 = vpow2.f32 %v5369_v39 }
0x117f   :  { %6513 = vrcp.f32 %v3270_v16 }
0x1180   :  { %6515 = vrcp.f32 %v3440_v56 }
0x118a   :  { %v6510_v21 = vpop.eup %6509 }
0x118b   :  { %v6512_v52 = vpop.eup %6511  ;;  %v3104_v38 = vmul.f32 %v6510_v21, %v7689_v4 }
0x118c   :  { %v3536_v10 = vadd.f32 1.0, %v6512_v52  ;;  %v6514_v2 = vpop.eup %6513 }
0x118d   :  { %v6516_v8 = vpop.eup %6515  ;;  %v3274_v27 = vmul.f32 %v6514_v2, %v7693_v42 }
0x118e   :  { %6517 = vrcp.f32 %v3536_v10  ;;  %v3444_v19 = vmul.f32 %v6516_v8, %v7702_v61 }
0x119b   :  { %v6518_v46 = vpop.eup %6517 }
0x119c   :  { %v3540_v4 = vmul.f32 %v6518_v46, %v7698_v7 }
0x11d9   :  { %v3107_v37 = vpop.permute.xlu0 %3106 }
0x11da   :  { %v3109_v41 = vmul.f32 %v6510_v21, %v3107_v37 }
0x11dc   :  { %3111 = vrot.lane.b32.xlu0 %v3109_v41, %s6783_s26 }
0x11e3   :  { %v3277_v48 = vpop.permute.xlu1 %3276 }
0x11e4   :  { %v3279_v63 = vmul.f32 %v6514_v2, %v3277_v48 }
0x11e6   :  { %3281 = vrot.lane.b32.xlu1 %v3279_v63, %s6783_s26 }
0x11eb   :  { %v3447_v18 = vpop.permute.xlu0 %3446 }
0x11ec   :  { %v3449_v54 = vmul.f32 %v6516_v8, %v3447_v18  ;;  %v3543_v1 = vpop.permute.xlu1 %3542 }
0x11ed   :  { %v3545_v49 = vmul.f32 %v6518_v46, %v3543_v1 }
0x11ee   :  { %3451 = vrot.lane.b32.xlu0 %v3449_v54, %s6783_s26  ;;  %v6647_v54 = vld [vmem:[%s8212_s3] ss:$0 sm:$0xff] }
0x11ef   :  { %3547 = vrot.lane.b32.xlu1 %v3545_v49, %s6783_s26 }
0x124e   :  { %v3112_v60 = vpop.permute.xlu0 %3111 }
0x124f   :  { %v7833_v31 = vadd.f32 %v3112_v60, %v3104_v38 }
0x1251   :  { %6519 = vtanh.f32 %v7833_v31 }
0x1258   :  { %v3282_v9 = vpop.permute.xlu1 %3281 }
0x1259   :  { %v7837_v11 = vadd.f32 %v3282_v9, %v3274_v27 }
0x125b   :  { %6521 = vtanh.f32 %v7837_v11 }
0x125e   :  { %v6520_v22 = vpop.eup %6519 }
0x125f   :  { %3117 = vrot.lane.b32.xlu0 %v6520_v22, %s6782_s25 }
0x1260   :  { %v3452_v13 = vpop.permute.xlu0 %3451 }
0x1261   :  { %v7842_v51 = vadd.f32 %v3452_v13, %v3444_v19  ;;  %v3548_v44 = vpop.permute.xlu1 %3547 }
0x1262   :  { %v7846_v30 = vadd.f32 %v3548_v44, %v3540_v4 }
0x1263   :  { %6523 = vtanh.f32 %v7842_v51 }
0x1264   :  { %6525 = vtanh.f32 %v7846_v30 }
0x1268   :  { %v6522_v42 = vpop.eup %6521 }
0x1269   :  { %3287 = vrot.lane.b32.xlu1 %v6522_v42, %s6782_s25 }
0x1270   :  { %v6524_v39 = vpop.eup %6523 }
0x1271   :  { %3457 = vrot.lane.b32.xlu0 %v6524_v39, %s6782_s25  ;;  %v6526_v12 = vpop.eup %6525 }
0x1272   :  { %3553 = vrot.lane.b32.xlu1 %v6526_v12, %s6782_s25 }
0x12d1   :  { %v3118_v61 = vpop.permute.xlu0 %3117 }
0x12d2   :  { %v3120_v16 = vmul.f32 %v6510_v21, %v3118_v61 }
0x12d4   :  { %3558 = vrot.lane.b32.xlu0 %v3120_v16, %s6783_s26 }
0x12db   :  { %v3288_v7 = vpop.permute.xlu1 %3287 }
0x12dc   :  { %v3290_v20 = vmul.f32 %v6514_v2, %v3288_v7 }
0x12de   :  { %3633 = vrot.lane.b32.xlu1 %v3290_v20, %s6783_s26 }
0x12e3   :  { %v3458_v37 = vpop.permute.xlu0 %3457 }
0x12e4   :  { %v3460_v41 = vmul.f32 %v6516_v8, %v3458_v37  ;;  %v3554_v52 = vpop.permute.xlu1 %3553 }
0x12e5   :  { %v3556_v56 = vmul.f32 %v6518_v46, %v3554_v52  ;;  %v256_v46 = vadd.f32 %v6647_v54, %v7044_v50 }
0x12e6   :  { %3803 = vrot.lane.b32.xlu0 %v3460_v41, %s6783_s26 }
0x12e7   :  { %3973 = vrot.lane.b32.xlu1 %v3556_v56, %s6783_s26 }
0x1346   :  { %v3559_v10 = vpop.permute.xlu0 %3558 }
0x1347   :  { %6129 = vmatmul.mubr.msk.f32.vlgmr.msra.gmra.mxu1 %vm317_vm2, %v3559_v10 }
0x1348   :  { %6143 = vmatpush3.msra.mxu1 %v7515_v55  ;;  %6150 = vmatprep.mubr.msk.f32.mxu1 %vm6781_vm0, %v6780_v0 }
0x1349   :  { %6144 = vmatprep.subr.mxu1 %v6780_v0 }
0x134a   :  { %6145 = vmatpush3.msra.mxu1 %v7524_v53  ;;  %v6643_v53 = vld [vmem:[%s8211_s2 + $0x18] sm:$0xff] }
0x134b   :  { %6146 = vmatprep.subr.mxu1 %v6780_v0 }
0x134c   :  { %6147 = vmatpush3.msra.mxu1 %v7531_v59  ;;  %v6644_v59 = vld [vmem:[%s8211_s2 + $0x10] sm:$0xff] }
0x134d   :  { %6148 = vmatprep.subr.mxu1 %v6780_v0 }
0x134e   :  { %6149 = vmatpush3.msra.mxu1 %v7538_v6  ;;  %v6645_v6 = vld [vmem:[%s8211_s2 + $0x8] sm:$0xff] }
0x134f   :  { %6164 = vmatprep.subr.mxu1 %v6780_v0 }
0x1350   :  { %v3634_v21 = vpop.permute.xlu1 %3633 }
0x1351   :  { %6140 = vmatmul.mubr.msk.f32.vlgmr.msra.gmra.mxu0 %vm317_vm2, %v3634_v21  ;;  %6151 = vmatmul.mubr.msk.f32.vlgmr.msra.gmra.mxu1 %vm317_vm2, %v3634_v21 }
0x1352   :  { %6154 = vmatpush3.msra.mxu0 %v7547_v62  ;;  %6165 = vmatpush3.msra.mxu1 %v7553_v57  ;;  %v6646_v57 = vld [vmem:[%s8211_s2] sm:$0xff] }
0x1353   :  { %6155 = vmatprep.subr.mxu0 %v6780_v0  ;;  %6166 = vmatprep.subr.mxu1 %v6780_v0 }
0x1354   :  { %6156 = vmatpush3.msra.mxu0 %v7561_v3  ;;  %6167 = vmatpush3.msra.mxu1 %v7567_v5 }
0x1355   :  { %6157 = vmatprep.subr.mxu0 %v6780_v0  ;;  %6168 = vmatprep.subr.mxu1 %v6780_v0 }
0x1356   :  { %6158 = vmatpush3.msra.mxu0 %v7575_v47  ;;  %6169 = vmatpush3.msra.mxu1 %v7581_v58 }
0x1357   :  { %6159 = vmatprep.subr.mxu0 %v6780_v0  ;;  %6170 = vmatprep.subr.mxu1 %v6780_v0 }
0x1358   :  { %6160 = vmatpush3.msra.mxu0 %v7589_v28  ;;  %6161 = vmatprep.mubr.msk.f32.mxu0 %vm6781_vm0, %v6780_v0  ;;  %v3804_v55 = vpop.permute.xlu0 %3803 }
0x1359   :  { %6171 = vmatpush3.msra.mxu1 %v7597_v36  ;;  %6172 = vmatprep.mubr.msk.f32.mxu1 %vm6781_vm0, %v6780_v0  ;;  %v3974_v62 = vpop.permute.xlu1 %3973 }
0x135a   :  { %6162 = vmatmul.mubr.msk.f32.vlgmr.msra.gmra.mxu0 %vm317_vm2, %v3804_v55  ;;  %6173 = vmatmul.mubr.msk.f32.vlgmr.msra.gmra.mxu1 %vm317_vm2, %v3804_v55 }
0x135b   :  { %6175 = vmatprep.subr.mxu0 %v6780_v0  ;;  %6186 = vmatprep.subr.mxu1 %v6780_v0 }
0x135c   :  { %6176 = vmatpush3.msra.mxu0 %v7609_v40  ;;  %6187 = vmatpush3.msra.mxu1 %v6643_v53 }
0x135d   :  { %6177 = vmatprep.subr.mxu0 %v6780_v0  ;;  %6188 = vmatprep.subr.mxu1 %v6780_v0 }
0x135e   :  { %6178 = vmatpush3.msra.mxu0 %v7618_v23  ;;  %6189 = vmatpush3.msra.mxu1 %v6644_v59 }
0x135f   :  { %6179 = vmatprep.subr.mxu0 %v6780_v0  ;;  %6190 = vmatprep.subr.mxu1 %v6780_v0 }
0x1360   :  { %6180 = vmatpush3.msra.mxu0 %v7627_v24  ;;  %6191 = vmatpush3.msra.mxu1 %v6645_v6 }
0x1361   :  { %6181 = vmatprep.subr.mxu0 %v6780_v0  ;;  %6192 = vmatprep.subr.mxu1 %v6780_v0 }
0x1362   :  { %6182 = vmatpush3.msra.mxu0 %v7636_v25  ;;  %6183 = vmatprep.mubr.msk.f32.mxu0 %vm6781_vm0, %v6780_v0 }
0x1363   :  { %6193 = vmatpush3.msra.mxu1 %v6646_v57  ;;  %6194 = vmatprep.mubr.msk.f32.mxu1 %vm6781_vm0, %v6780_v0 }
0x1364   :  { %6184 = vmatmul.mubr.msk.f32.vlgmr.msra.gmra.mxu0 %vm317_vm2, %v3974_v62  ;;  %6195 = vmatmul.mubr.msk.f32.vlgmr.msra.gmra.mxu1 %vm317_vm2, %v3974_v62 }
0x1365   :  { %6197 = vmatprep.subr.mxu0 %v6780_v0  ;;  %6208 = vmatprep.subr.mxu1 %v6780_v0 }
0x1366   :  { %6198 = vmatpush3.msra.mxu0 %v7768_v33  ;;  %6205 = vmatprep.mubr.msk.f32.mxu0 %vm6781_vm0, %v6780_v0 }
0x1367   :  { %6199 = vmatprep.subr.mxu0 %v6780_v0  ;;  %6209 = vmatpush3.msra.mxu1 %v7782_v35 }
0x1368   :  { %6200 = vmatpush3.msra.mxu0 %v7774_v26  ;;  %6210 = vmatprep.subr.mxu1 %v6780_v0 }
0x1369   :  { %6201 = vmatprep.subr.mxu0 %v6780_v0  ;;  %6211 = vmatpush3.msra.mxu1 %v7793_v15 }
0x136a   :  { %6202 = vmatpush3.msra.mxu0 %v7785_v29  ;;  %6212 = vmatprep.subr.mxu1 %v6780_v0 }
0x136b   :  { %6203 = vmatprep.subr.mxu0 %v6780_v0  ;;  %6213 = vmatpush3.msra.mxu1 %v7804_v32 }
0x136c   :  { %6204 = vmatpush3.msra.mxu0 %v7796_v14  ;;  %6214 = vmatprep.subr.mxu1 %v6780_v0 }
0x136d   :  { %6219 = vmatprep.subr.mxu0 %v6780_v0  ;;  %6215 = vmatpush3.msra.mxu1 %v7813_v34 }
0x136e   :  { %6216 = vmatprep.mubr.msk.f32.mxu1 %vm6781_vm0, %v6780_v0  ;;  %6230 = vmatprep.subr.mxu1 %v6780_v0 }
0x1407   :  { %v3628_v3 = vpop.f32.mrf.mxu1 }
0x1409   :  { %v6130_v5 = vpop.f32.mrf.mxu1 }
0x1411   :  { %v3703_v47 = vpop.f32.mrf.mxu0  ;;  %v3798_v58 = vpop.f32.mrf.mxu1 }
0x1412   :  { %v3704_v28 = vadd.f32 %v3703_v47, %v3628_v3 }
0x1413   :  { %v6141_v36 = vpop.f32.mrf.mxu0  ;;  %v6152_v40 = vpop.f32.mrf.mxu1 }
0x1414   :  { %v3707_v23 = vadd.f32 %v7817_v43, %v3704_v28 }
0x1416   :  { %6527 = vtanh.f32 %v3707_v23  ;;  %v5372_v50 = vmul.f32 -1.442695, %v3707_v23 }
0x141a   :  { %v3873_v24 = vpop.f32.mrf.mxu0  ;;  %v3968_v25 = vpop.f32.mrf.mxu1 }
0x141b   :  { %v3874_v2 = vadd.f32 %v3873_v24, %v3798_v58 }
0x141c   :  { %v6163_v48 = vpop.f32.mrf.mxu0  ;;  %v6174_v63 = vpop.f32.mrf.mxu1 }
0x141d   :  { %v3877_v8 = vadd.f32 %v7669_v17, %v3874_v2 }
0x141f   :  { %6529 = vtanh.f32 %v3877_v8  ;;  %v5375_v4 = vmul.f32 -1.442695, %v3877_v8 }
0x1423   :  { %v6528_v18 = vpop.eup %6527 }
0x1424   :  { %v4043_v1 = vpop.f32.mrf.mxu0  ;;  %v4139_v49 = vpop.f32.mrf.mxu1  ;;  %3717 = vrot.lane.b32.xlu0 %v6528_v18, %s6782_s25 }
0x1425   :  { %v4044_v38 = vadd.f32 %v4043_v1, %v3968_v25  ;;  %v4143_v60 = vadd.f32 %v4139_v49, %v256_v46 }
0x1426   :  { %v6185_v27 = vpop.f32.mrf.mxu0  ;;  %v6196_v9 = vpop.f32.mrf.mxu1 }
0x1427   :  { %v4047_v22 = vadd.f32 %v7678_v45, %v4044_v38  ;;  %6531 = vtanh.f32 %v4143_v60  ;;  %v5380_v42 = vmul.f32 -1.442695, %v4143_v60  ;;  %v7981_v9 = vld [vmem:[%s8217_s8 + $0x18] sm:$0xff] }
0x1429   :  { %6533 = vtanh.f32 %v4047_v22  ;;  %v5378_v39 = vmul.f32 -1.442695, %v4047_v22  ;;  %v7990_v22 = vld [vmem:[%s8217_s8 + $0x10] sm:$0xff] }
0x142a   :  { %6535 = vpow2.f32 %v5372_v50  ;;  %v8013_v50 = vld [vmem:[%s8216_s7 + $0x18] sm:$0xff] }
0x142b   :  { %6537 = vpow2.f32 %v5375_v4  ;;  %v6653_v4 = vld [vmem:[%s8214_s5 + $0x18] sm:$0xff] }
0x142c   :  { %v6530_v17 = vpop.eup %6529  ;;  %6539 = vpow2.f32 %v5380_v42  ;;  %v6655_v42 = vld [vmem:[%s8214_s5 + $0x10] sm:$0xff] }
0x142d   :  { %3887 = vrot.lane.b32.xlu1 %v6530_v17, %s6782_s25  ;;  %6541 = vpow2.f32 %v5378_v39  ;;  %v7997_v17 = vld [vmem:[%s8217_s8 + $0x8] sm:$0xff] }
0x142e   :  { %v8035_v39 = vld [vmem:[%s8216_s7 + $0x8] sm:$0xff] }
0x1434   :  { %v6532_v19 = vpop.eup %6531 }
0x1435   :  { %4153 = vrot.lane.b32.xlu1 %v6532_v19, %s6782_s25  ;;  %v8004_v19 = vld [vmem:[%s8217_s8] sm:$0xff] }
0x1436   :  { %v6534_v13 = vpop.eup %6533 }
0x1437   :  { %4057 = vrot.lane.b32.xlu0 %v6534_v13, %s6782_s25  ;;  %v6536_v44 = vpop.eup %6535 }
0x1438   :  { %v3711_v12 = vadd.f32 1.0, %v6536_v44  ;;  %v6538_v45 = vpop.eup %6537  ;;  %v8024_v44 = vld [vmem:[%s8216_s7 + $0x10] sm:$0xff] }
0x1439   :  { %v3881_v61 = vadd.f32 1.0, %v6538_v45  ;;  %v6540_v16 = vpop.eup %6539  ;;  %v8046_v45 = vld [vmem:[%s8216_s7] sm:$0xff] }
0x143a   :  { %6543 = vrcp.f32 %v3711_v12  ;;  %v6542_v7 = vpop.eup %6541  ;;  %v4147_v37 = vadd.f32 1.0, %v6540_v16  ;;  %v6657_v12 = vld [vmem:[%s8214_s5 + $0x8] sm:$0xff] }
0x143b   :  { %6545 = vrcp.f32 %v3881_v61  ;;  %v4051_v56 = vadd.f32 1.0, %v6542_v7  ;;  %v6659_v61 = vld [vmem:[%s8214_s5] sm:$0xff]  ;;  %v6660_v7 = vld [vmem:[%s8213_s4 + $0x18] sm:$0xff] }
0x143c   :  { %6547 = vrcp.f32 %v4147_v37  ;;  %v6662_v37 = vld [vmem:[%s8213_s4 + $0x8] sm:$0xff] }
0x143d   :  { %6549 = vrcp.f32 %v4051_v56 }
0x1447   :  { %v6544_v20 = vpop.eup %6543 }
0x1448   :  { %v6546_v10 = vpop.eup %6545  ;;  %v3715_v5 = vmul.f32 %v6544_v20, %v7833_v31 }
0x1449   :  { %v6548_v53 = vpop.eup %6547  ;;  %v3885_v28 = vmul.f32 %v6546_v10, %v7837_v11 }
0x144a   :  { %v6550_v62 = vpop.eup %6549  ;;  %v4151_v24 = vmul.f32 %v6548_v53, %v7846_v30 }
0x144b   :  { %v4055_v31 = vmul.f32 %v6550_v62, %v7842_v51 }
0x1496   :  { %v3718_v41 = vpop.permute.xlu0 %3717 }
0x1497   :  { %v3720_v52 = vmul.f32 %v6544_v20, %v3718_v41 }
0x1499   :  { %3722 = vrot.lane.b32.xlu0 %v3720_v52, %s6783_s26  ;;  %v6663_v52 = vld [vmem:[%s8213_s4] sm:$0xff] }
0x149f   :  { %v3888_v21 = vpop.permute.xlu1 %3887 }
0x14a0   :  { %v3890_v55 = vmul.f32 %v6546_v10, %v3888_v21 }
0x14a2   :  { %3892 = vrot.lane.b32.xlu1 %v3890_v55, %s6783_s26 }
0x14a7   :  { %v4154_v59 = vpop.permute.xlu1 %4153 }
0x14a8   :  { %v4156_v6 = vmul.f32 %v6548_v53, %v4154_v59 }
0x14a9   :  { %v4058_v57 = vpop.permute.xlu0 %4057 }
0x14aa   :  { %v4060_v3 = vmul.f32 %v6550_v62, %v4058_v57  ;;  %4158 = vrot.lane.b32.xlu1 %v4156_v6, %s6783_s26 }
0x14ac   :  { %4062 = vrot.lane.b32.xlu0 %v4060_v3, %s6783_s26 }
0x150b   :  { %v3723_v47 = vpop.permute.xlu0 %3722 }
0x150c   :  { %v7957_v58 = vadd.f32 %v3723_v47, %v3715_v5 }
0x150e   :  { %6551 = vtanh.f32 %v7957_v58 }
0x1514   :  { %v3893_v36 = vpop.permute.xlu1 %3892 }
0x1515   :  { %v7961_v40 = vadd.f32 %v3893_v36, %v3885_v28  ;;  %v8100_v36 = vld [vmem:[#allocation5] ss:$0 sm:$0xff] }
0x1517   :  { %6553 = vtanh.f32 %v7961_v40 }
0x151b   :  { %v6552_v23 = vpop.eup %6551 }
0x151c   :  { %v4159_v25 = vpop.permute.xlu1 %4158  ;;  %3728 = vrot.lane.b32.xlu0 %v6552_v23, %s6782_s25 }
0x151d   :  { %v4161_v2 = vadd.f32 %v4159_v25, %v4151_v24 }
0x151e   :  { %v4063_v48 = vpop.permute.xlu0 %4062 }
0x151f   :  { %6555 = vtanh.f32 %v4161_v2  ;;  %v7967_v63 = vadd.f32 %v4063_v48, %v4055_v31  ;;  %v6665_v48 = vld [vmem:[%s8215_s6] ss:$0 sm:$0xff] }
0x1521   :  { %6557 = vtanh.f32 %v7967_v63 }
0x1524   :  { %v6554_v11 = vpop.eup %6553 }
0x1525   :  { %3898 = vrot.lane.b32.xlu1 %v6554_v11, %s6782_s25 }
0x152c   :  { %v6556_v8 = vpop.eup %6555 }
0x152d   :  { %4164 = vrot.lane.b32.xlu1 %v6556_v8, %s6782_s25 }
0x152e   :  { %v6558_v18 = vpop.eup %6557 }
0x152f   :  { %4068 = vrot.lane.b32.xlu0 %v6558_v18, %s6782_s25 }
0x158e   :  { %v3729_v30 = vpop.permute.xlu0 %3728 }
0x158f   :  { %v3731_v54 = vmul.f32 %v6544_v20, %v3729_v30  ;;  %v6661_v20 = vld [vmem:[%s8213_s4 + $0x10] sm:$0xff] }
0x1591   :  { %4169 = vrot.lane.b32.xlu0 %v3731_v54, %s6783_s26 }
0x1597   :  { %v3899_v51 = vpop.permute.xlu1 %3898 }
0x1598   :  { %v3901_v46 = vmul.f32 %v6546_v10, %v3899_v51 }
0x159a   :  { %4244 = vrot.lane.b32.xlu1 %v3901_v46, %s6783_s26 }
0x159f   :  { %v4165_v1 = vpop.permute.xlu1 %4164 }
0x15a0   :  { %v4167_v49 = vmul.f32 %v6548_v53, %v4165_v1 }
0x15a1   :  { %v4069_v38 = vpop.permute.xlu0 %4068 }
0x15a2   :  { %v4071_v60 = vmul.f32 %v6550_v62, %v4069_v38  ;;  %4584 = vrot.lane.b32.xlu1 %v4167_v49, %s6783_s26 }
0x15a4   :  { %4414 = vrot.lane.b32.xlu0 %v4071_v60, %s6783_s26 }
0x1603   :  { %v4170_v27 = vpop.permute.xlu0 %4169 }
0x1604   :  { %6206 = vmatmul.mubr.msk.f32.vlgmr.msra.gmra.mxu0 %vm317_vm2, %v4170_v27 }
0x1605   :  { %6220 = vmatpush3.msra.mxu0 %v7981_v9  ;;  %6227 = vmatprep.mubr.msk.f32.mxu0 %vm6781_vm0, %v6780_v0 }
0x1606   :  { %6221 = vmatprep.subr.mxu0 %v6780_v0 }
0x1607   :  { %6222 = vmatpush3.msra.mxu0 %v7990_v22 }
0x1608   :  { %6223 = vmatprep.subr.mxu0 %v6780_v0 }
0x1609   :  { %6224 = vmatpush3.msra.mxu0 %v7997_v17 }
0x160a   :  { %6225 = vmatprep.subr.mxu0 %v6780_v0 }
0x160b   :  { %6226 = vmatpush3.msra.mxu0 %v8004_v19 }
0x160c   :  { %v4245_v13 = vpop.permute.xlu1 %4244  ;;  %6241 = vmatprep.subr.mxu0 %v6780_v0 }
0x160d   :  { %6217 = vmatmul.mubr.msk.f32.vlgmr.msra.gmra.mxu1 %vm317_vm2, %v4245_v13  ;;  %6228 = vmatmul.mubr.msk.f32.vlgmr.msra.gmra.mxu0 %vm317_vm2, %v4245_v13 }
0x160e   :  { %6231 = vmatpush3.msra.mxu1 %v8013_v50  ;;  %6242 = vmatpush3.msra.mxu0 %v6653_v4 }
0x160f   :  { %6232 = vmatprep.subr.mxu1 %v6780_v0  ;;  %6243 = vmatprep.subr.mxu0 %v6780_v0 }
0x1610   :  { %6233 = vmatpush3.msra.mxu1 %v8024_v44  ;;  %6244 = vmatpush3.msra.mxu0 %v6655_v42 }
0x1611   :  { %6234 = vmatprep.subr.mxu1 %v6780_v0  ;;  %6245 = vmatprep.subr.mxu0 %v6780_v0 }
0x1612   :  { %6235 = vmatpush3.msra.mxu1 %v8035_v39  ;;  %6246 = vmatpush3.msra.mxu0 %v6657_v12 }
0x1613   :  { %6236 = vmatprep.subr.mxu1 %v6780_v0  ;;  %6247 = vmatprep.subr.mxu0 %v6780_v0 }
0x1614   :  { %6237 = vmatpush3.msra.mxu1 %v8046_v45  ;;  %6238 = vmatprep.mubr.msk.f32.mxu1 %vm6781_vm0, %v6780_v0  ;;  %v4585_v41 = vpop.permute.xlu1 %4584 }
0x1615   :  { %6248 = vmatpush3.msra.mxu0 %v6659_v61  ;;  %6249 = vmatprep.mubr.msk.f32.mxu0 %vm6781_vm0, %v6780_v0 }
0x1616   :  { %6252 = vmatprep.subr.mxu1 %v6780_v0  ;;  %v4415_v16 = vpop.permute.xlu0 %4414  ;;  %6263 = vmatprep.subr.mxu0 %v6780_v0 }
0x1617   :  { %6239 = vmatmul.mubr.msk.f32.vlgmr.msra.gmra.mxu1 %vm317_vm2, %v4415_v16  ;;  %6250 = vmatmul.mubr.msk.f32.vlgmr.msra.gmra.mxu0 %vm317_vm2, %v4415_v16 }
0x1618   :  { %6253 = vmatpush3.msra.mxu1 %v6660_v7  ;;  %6260 = vmatprep.mubr.msk.f32.mxu1 %vm6781_vm0, %v6780_v0 }
0x1619   :  { %6254 = vmatprep.subr.mxu1 %v6780_v0  ;;  %6264 = vmatpush3.msra.mxu0 %v7768_v33 }
0x161a   :  { %6255 = vmatpush3.msra.mxu1 %v6661_v20  ;;  %6265 = vmatprep.subr.mxu0 %v6780_v0 }
0x161b   :  { %6256 = vmatprep.subr.mxu1 %v6780_v0  ;;  %6266 = vmatpush3.msra.mxu0 %v7774_v26 }
0x161c   :  { %6257 = vmatpush3.msra.mxu1 %v6662_v37  ;;  %6267 = vmatprep.subr.mxu0 %v6780_v0 }
0x161d   :  { %6258 = vmatprep.subr.mxu1 %v6780_v0  ;;  %6268 = vmatpush3.msra.mxu0 %v7785_v29 }
0x161e   :  { %6259 = vmatpush3.msra.mxu1 %v6663_v52  ;;  %6269 = vmatprep.subr.mxu0 %v6780_v0 }
0x161f   :  { %6261 = vmatmul.mubr.msk.f32.vlgmr.msra.gmra.mxu1 %vm317_vm2, %v4585_v41  ;;  %6270 = vmatpush3.msra.mxu0 %v7796_v14 }
0x1620   :  { %6271 = vmatprep.mubr.msk.f32.mxu0 %vm6781_vm0, %v6780_v0  ;;  %6274 = vmatprep.subr.mxu1 %v6780_v0 }
0x1621   :  { %6275 = vmatpush3.msra.mxu1 %v7782_v35  ;;  %6285 = vmatprep.subr.mxu0 %v6780_v0 }
0x1622   :  { %6276 = vmatprep.subr.mxu1 %v6780_v0  ;;  %6282 = vmatprep.mubr.msk.f32.mxu1 %vm6781_vm0, %v6780_v0 }
0x1623   :  { %6277 = vmatpush3.msra.mxu1 %v7793_v15 }
0x1624   :  { %6278 = vmatprep.subr.mxu1 %v6780_v0 }
0x1625   :  { %6279 = vmatpush3.msra.mxu1 %v7804_v32 }
0x1626   :  { %6280 = vmatprep.subr.mxu1 %v6780_v0 }
0x1627   :  { %6281 = vmatpush3.msra.mxu1 %v7813_v34 }
0x1628   :  { %6296 = vmatprep.subr.mxu1 %v6780_v0 }
0x16c4   :  { %v4239_v56 = vpop.f32.mrf.mxu0 }
0x16c6   :  { %v6207_v10 = vpop.f32.mrf.mxu0 }
0x16cd   :  { %v4314_v21 = vpop.f32.mrf.mxu1  ;;  %v4409_v55 = vpop.f32.mrf.mxu0 }
0x16ce   :  { %v4315_v53 = vadd.f32 %v4314_v21, %v4239_v56 }
0x16cf   :  { %v6218_v59 = vpop.f32.mrf.mxu1  ;;  %v6229_v6 = vpop.f32.mrf.mxu0 }
0x16d0   :  { %v4318_v62 = vadd.f32 %v7817_v43, %v4315_v53 }
0x16d2   :  { %6559 = vtanh.f32 %v4318_v62  ;;  %v5383_v30 = vmul.f32 -1.442695, %v4318_v62 }
0x16d7   :  { %v4484_v57 = vpop.f32.mrf.mxu1  ;;  %v4579_v3 = vpop.f32.mrf.mxu0 }
0x16d8   :  { %v4485_v5 = vadd.f32 %v4484_v57, %v4409_v55 }
0x16d9   :  { %v6240_v47 = vpop.f32.mrf.mxu1  ;;  %v6251_v28 = vpop.f32.mrf.mxu0 }
0x16da   :  { %v4488_v23 = vadd.f32 %v8100_v36, %v4485_v5 }
0x16dc   :  { %6561 = vtanh.f32 %v4488_v23  ;;  %v5386_v54 = vmul.f32 -1.442695, %v4488_v23 }
0x16df   :  { %v6560_v24 = vpop.eup %6559  ;;  %v4654_v25 = vpop.f32.mrf.mxu1 }
0x16e0   :  { %v4655_v2 = vadd.f32 %v4654_v25, %v4579_v3  ;;  %4328 = vrot.lane.b32.xlu0 %v6560_v24, %s6782_s25 }
0x16e1   :  { %v6262_v31 = vpop.f32.mrf.mxu1 }
0x16e2   :  { %v4658_v11 = vadd.f32 %v6665_v48, %v4655_v2 }
0x16e4   :  { %6563 = vtanh.f32 %v4658_v11  ;;  %v5389_v46 = vmul.f32 -1.442695, %v4658_v11 }
0x16e5   :  { %6565 = vpow2.f32 %v5383_v30 }
0x16e6   :  { %6567 = vpow2.f32 %v5386_v54 }
0x16e7   :  { %6569 = vpow2.f32 %v5389_v46 }
0x16e9   :  { %v6562_v8 = vpop.eup %6561 }
0x16ea   :  { %4498 = vrot.lane.b32.xlu1 %v6562_v8, %s6782_s25 }
0x16f1   :  { %v6564_v18 = vpop.eup %6563 }
0x16f2   :  { %4668 = vrot.lane.b32.xlu0 %v6564_v18, %s6782_s25  ;;  %v6566_v51 = vpop.eup %6565 }
0x16f3   :  { %v4322_v1 = vadd.f32 1.0, %v6566_v51  ;;  %v6568_v49 = vpop.eup %6567 }
0x16f4   :  { %v4492_v38 = vadd.f32 1.0, %v6568_v49  ;;  %v6570_v60 = vpop.eup %6569 }
0x16f5   :  { %6571 = vrcp.f32 %v4322_v1  ;;  %v4662_v42 = vadd.f32 1.0, %v6570_v60 }
0x16f6   :  { %6573 = vrcp.f32 %v4492_v38 }
0x16f7   :  { %6575 = vrcp.f32 %v4662_v42 }
0x1702   :  { %v6572_v27 = vpop.eup %6571 }
0x1703   :  { %v6574_v12 = vpop.eup %6573  ;;  %v4326_v41 = vmul.f32 %v6572_v27, %v7957_v58 }
0x1704   :  { %v6576_v7 = vpop.eup %6575  ;;  %v4496_v10 = vmul.f32 %v6574_v12, %v7961_v40 }
0x1705   :  { %v4666_v59 = vmul.f32 %v6576_v7, %v7967_v63 }
0x1752   :  { %v4329_v13 = vpop.permute.xlu0 %4328 }
0x1753   :  { %v4331_v4 = vmul.f32 %v6572_v27, %v4329_v13 }
0x1755   :  { %4333 = vrot.lane.b32.xlu1 %v4331_v4, %s6783_s26 }
0x175c   :  { %v4499_v61 = vpop.permute.xlu1 %4498 }
0x175d   :  { %v4501_v16 = vmul.f32 %v6574_v12, %v4499_v61 }
0x175f   :  { %4503 = vrot.lane.b32.xlu0 %v4501_v16, %s6783_s26 }
0x1764   :  { %v4669_v20 = vpop.permute.xlu0 %4668 }
0x1765   :  { %v4671_v37 = vmul.f32 %v6576_v7, %v4669_v20 }
0x1767   :  { %4673 = vrot.lane.b32.xlu1 %v4671_v37, %s6783_s26 }
0x17c7   :  { %v4334_v52 = vpop.permute.xlu1 %4333 }
0x17c8   :  { %v8113_v56 = vadd.f32 %v4334_v52, %v4326_v41 }
0x17ca   :  { %6577 = vtanh.f32 %v8113_v56 }
0x17d1   :  { %v4504_v21 = vpop.permute.xlu0 %4503 }
0x17d2   :  { %v8117_v55 = vadd.f32 %v4504_v21, %v4496_v10  ;;  %v6666_v10 = vld [vmem:[#allocation8] ss:$0 sm:$0xff] }
0x17d4   :  { %6579 = vtanh.f32 %v8117_v55 }
0x17d7   :  { %v6578_v53 = vpop.eup %6577 }
0x17d8   :  { %4339 = vrot.lane.b32.xlu0 %v6578_v53, %s6782_s25 }
0x17d9   :  { %v4674_v6 = vpop.permute.xlu1 %4673 }
0x17da   :  { %v4676_v62 = vadd.f32 %v4674_v6, %v4666_v59 }
0x17dc   :  { %6581 = vtanh.f32 %v4676_v62 }
0x17e1   :  { %v6580_v58 = vpop.eup %6579 }
0x17e2   :  { %4509 = vrot.lane.b32.xlu1 %v6580_v58, %s6782_s25 }
0x17e9   :  { %v6582_v57 = vpop.eup %6581 }
0x17ea   :  { %4679 = vrot.lane.b32.xlu0 %v6582_v57, %s6782_s25 }
0x184a   :  { %v4340_v40 = vpop.permute.xlu0 %4339 }
0x184b   :  { %v4342_v3 = vmul.f32 %v6572_v27, %v4340_v40 }
0x184d   :  { %4684 = vrot.lane.b32.xlu1 %v4342_v3, %s6783_s26 }
0x1854   :  { %v4510_v5 = vpop.permute.xlu1 %4509 }
0x1855   :  { %v4512_v47 = vmul.f32 %v6574_v12, %v4510_v5 }
0x1857   :  { %4759 = vrot.lane.b32.xlu0 %v4512_v47, %s6783_s26  ;;  %v5206_v47 = vld [vmem:[%s8222_s13 + $0x18] sm:$0xff] }
0x185c   :  { %v4680_v28 = vpop.permute.xlu0 %4679 }
0x185d   :  { %v4682_v23 = vmul.f32 %v6576_v7, %v4680_v28  ;;  %v5205_v28 = vld [vmem:[%s8222_s13 + $0x10] sm:$0xff] }
0x185f   :  { %4929 = vrot.lane.b32.xlu1 %v4682_v23, %s6783_s26  ;;  %v5204_v23 = vld [vmem:[%s8222_s13 + $0x8] sm:$0xff] }
0x18bf   :  { %v4685_v63 = vpop.permute.xlu1 %4684 }
0x18c0   :  { %6272 = vmatmul.mubr.msk.f32.vlgmr.msra.gmra.mxu0 %vm317_vm2, %v4685_v63  ;;  %v5203_v63 = vld [vmem:[%s8222_s13] sm:$0xff] }
0x18c1   :  { %6286 = vmatpush3.msra.mxu0 %v7981_v9  ;;  %6293 = vmatprep.mubr.msk.f32.mxu0 %vm6781_vm0, %v6780_v0 }
0x18c2   :  { %6287 = vmatprep.subr.mxu0 %v6780_v0 }
0x18c3   :  { %6288 = vmatpush3.msra.mxu0 %v7990_v22 }
0x18c4   :  { %6289 = vmatprep.subr.mxu0 %v6780_v0 }
0x18c5   :  { %6290 = vmatpush3.msra.mxu0 %v7997_v17 }
0x18c6   :  { %6291 = vmatprep.subr.mxu0 %v6780_v0 }
0x18c7   :  { %6292 = vmatpush3.msra.mxu0 %v8004_v19 }
0x18c8   :  { %6307 = vmatprep.subr.mxu0 %v6780_v0 }
0x18c9   :  { %v4760_v24 = vpop.permute.xlu0 %4759 }
0x18ca   :  { %6283 = vmatmul.mubr.msk.f32.vlgmr.msra.gmra.mxu1 %vm317_vm2, %v4760_v24  ;;  %6294 = vmatmul.mubr.msk.f32.vlgmr.msra.gmra.mxu0 %vm317_vm2, %v4760_v24 }
0x18cb   :  { %6297 = vmatpush3.msra.mxu1 %v8013_v50  ;;  %6304 = vmatprep.mubr.msk.f32.mxu1 %vm6781_vm0, %v6780_v0 }
0x18cc   :  { %6298 = vmatprep.subr.mxu1 %v6780_v0  ;;  %6308 = vmatpush3.msra.mxu0 %v7768_v33 }
0x18cd   :  { %6299 = vmatpush3.msra.mxu1 %v8024_v44  ;;  %6309 = vmatprep.subr.mxu0 %v6780_v0 }
0x18ce   :  { %6300 = vmatprep.subr.mxu1 %v6780_v0  ;;  %6310 = vmatpush3.msra.mxu0 %v7774_v26 }
0x18cf   :  { %6301 = vmatpush3.msra.mxu1 %v8035_v39  ;;  %6311 = vmatprep.subr.mxu0 %v6780_v0 }
0x18d0   :  { %6302 = vmatprep.subr.mxu1 %v6780_v0  ;;  %6312 = vmatpush3.msra.mxu0 %v7785_v29 }
0x18d1   :  { %6303 = vmatpush3.msra.mxu1 %v8046_v45  ;;  %6313 = vmatprep.subr.mxu0 %v6780_v0  ;;  %v4930_v33 = vpop.permute.xlu1 %4929 }
0x18d2   :  { %6314 = vmatpush3.msra.mxu0 %v7796_v14  ;;  %6315 = vmatprep.mubr.msk.f32.mxu0 %vm6781_vm0, %v6780_v0 }
0x18d3   :  { %6305 = vmatmul.mubr.msk.f32.vlgmr.msra.gmra.mxu1 %vm317_vm2, %v4930_v33  ;;  %6318 = vmatprep.subr.mxu1 %v6780_v0 }
0x18d4   :  { %6319 = vmatpush3.msra.mxu1 %v7782_v35  ;;  %6326 = vmatprep.mubr.msk.f32.mxu1 %vm6781_vm0, %v6780_v0 }
0x18d5   :  { %6320 = vmatprep.subr.mxu1 %v6780_v0  ;;  %6329 = vmatprep.subr.mxu0 %v6780_v0 }
0x18d6   :  { %6321 = vmatpush3.msra.mxu1 %v7793_v15 }
0x18d7   :  { %6322 = vmatprep.subr.mxu1 %v6780_v0 }
0x18d8   :  { %6323 = vmatpush3.msra.mxu1 %v7804_v32 }
0x18d9   :  { %6324 = vmatprep.subr.mxu1 %v6780_v0 }
0x18da   :  { %6325 = vmatpush3.msra.mxu1 %v7813_v34 }
0x1980   :  { %v4754_v26 = vpop.f32.mrf.mxu0 }
0x1982   :  { %v6273_v29 = vpop.f32.mrf.mxu0 }
0x198a   :  { %v4829_v35 = vpop.f32.mrf.mxu1  ;;  %v4924_v14 = vpop.f32.mrf.mxu0 }
0x198b   :  { %v4830_v9 = vadd.f32 %v4829_v35, %v4754_v26  ;;  %v5399_v35 = vld [vmem:[#allocation10] ss:$0 sm:$0xff] }
0x198c   :  { %v6284_v22 = vpop.f32.mrf.mxu1  ;;  %v6295_v17 = vpop.f32.mrf.mxu0 }
0x198d   :  { %v4833_v19 = vadd.f32 %v7817_v43, %v4830_v9 }
0x198f   :  { %6583 = vtanh.f32 %v4833_v19  ;;  %v5392_v45 = vmul.f32 -1.442695, %v4833_v19 }
0x1993   :  { %v4999_v50 = vpop.f32.mrf.mxu1 }
0x1994   :  { %v5000_v15 = vadd.f32 %v4999_v50, %v4924_v14 }
0x1995   :  { %v6306_v44 = vpop.f32.mrf.mxu1 }
0x1996   :  { %v5003_v39 = vadd.f32 %v8100_v36, %v5000_v15 }
0x1998   :  { %6585 = vtanh.f32 %v5003_v39  ;;  %v5395_v25 = vmul.f32 -1.442695, %v5003_v39 }
0x1999   :  { %6587 = vpow2.f32 %v5392_v45 }
0x199a   :  { %6589 = vpow2.f32 %v5395_v25 }
0x199c   :  { %v6584_v32 = vpop.eup %6583 }
0x199d   :  { %4843 = vrot.lane.b32.xlu0 %v6584_v32, %s6782_s25 }
0x19a5   :  { %v6586_v34 = vpop.eup %6585 }
0x19a6   :  { %5013 = vrot.lane.b32.xlu1 %v6586_v34, %s6782_s25  ;;  %v6588_v2 = vpop.eup %6587 }
0x19a7   :  { %v4837_v31 = vadd.f32 1.0, %v6588_v2  ;;  %v6590_v43 = vpop.eup %6589 }
0x19a8   :  { %v5007_v48 = vadd.f32 1.0, %v6590_v43 }
0x19a9   :  { %6591 = vrcp.f32 %v4837_v31 }
0x19aa   :  { %6593 = vrcp.f32 %v5007_v48 }
0x19b6   :  { %v6592_v11 = vpop.eup %6591 }
0x19b7   :  { %v6594_v18 = vpop.eup %6593  ;;  %v4841_v51 = vmul.f32 %v6592_v11, %v8113_v56 }
0x19b8   :  { %v5011_v49 = vmul.f32 %v6594_v18, %v8117_v55 }
0x1a0f   :  { %v4844_v8 = vpop.permute.xlu0 %4843 }
0x1a10   :  { %v4846_v36 = vmul.f32 %v6592_v11, %v4844_v8 }
0x1a12   :  { %4848 = vrot.lane.b32.xlu0 %v4846_v36, %s6783_s26 }
0x1a18   :  { %v5014_v30 = vpop.permute.xlu1 %5013 }
0x1a19   :  { %v5016_v54 = vmul.f32 %v6594_v18, %v5014_v30 }
0x1a1b   :  { %5018 = vrot.lane.b32.xlu1 %v5016_v54, %s6783_s26 }
0x1a84   :  { %v4849_v46 = vpop.permute.xlu0 %4848 }
0x1a85   :  { %v4851_v1 = vadd.f32 %v4849_v46, %v4841_v51 }
0x1a87   :  { %6595 = vtanh.f32 %v4851_v1 }
0x1a8d   :  { %v5019_v38 = vpop.permute.xlu1 %5018 }
0x1a8e   :  { %v5021_v60 = vadd.f32 %v5019_v38, %v5011_v49 }
0x1a90   :  { %6597 = vtanh.f32 %v5021_v60 }
0x1a94   :  { %v6596_v27 = vpop.eup %6595 }
0x1a95   :  { %4854 = vrot.lane.b32.xlu0 %v6596_v27, %s6782_s25 }
0x1a9d   :  { %v6598_v13 = vpop.eup %6597 }
0x1a9e   :  { %5024 = vrot.lane.b32.xlu1 %v6598_v13, %s6782_s25 }
0x1b07   :  { %v4855_v4 = vpop.permute.xlu0 %4854 }
0x1b08   :  { %v4857_v42 = vmul.f32 %v6592_v11, %v4855_v4 }
0x1b0a   :  { %5029 = vrot.lane.b32.xlu0 %v4857_v42, %s6783_s26 }
0x1b10   :  { %v5025_v12 = vpop.permute.xlu1 %5024 }
0x1b11   :  { %v5027_v61 = vmul.f32 %v6594_v18, %v5025_v12 }
0x1b13   :  { %5104 = vrot.lane.b32.xlu1 %v5027_v61, %s6783_s26 }
0x1b7c   :  { %v5030_v16 = vpop.permute.xlu0 %5029 }
0x1b7d   :  { %6316 = vmatmul.mubr.msk.f32.vlgmr.msra.gmra.mxu0 %vm317_vm2, %v5030_v16 }
0x1b7e   :  { %6337 = vmatprep.mubr.msk.f32.mxu0 %vm6781_vm0, %v6780_v0  ;;  %6330 = vmatpush3.msra.mxu0 %v5206_v47 }
0x1b7f   :  { %6331 = vmatprep.subr.mxu0 %v6780_v0 }
0x1b80   :  { %6332 = vmatpush3.msra.mxu0 %v5205_v28 }
0x1b81   :  { %6333 = vmatprep.subr.mxu0 %v6780_v0 }
0x1b82   :  { %6334 = vmatpush3.msra.mxu0 %v5204_v23 }
0x1b83   :  { %6335 = vmatprep.subr.mxu0 %v6780_v0 }
0x1b84   :  { %6336 = vmatpush3.msra.mxu0 %v5203_v63 }
0x1b85   :  { %v5105_v7 = vpop.permute.xlu1 %5104 }
0x1b86   :  { %6327 = vmatmul.mubr.msk.f32.vlgmr.msra.gmra.mxu1 %vm317_vm2, %v5105_v7 }
0x1c3d   :  { %v5099_v20 = vpop.f32.mrf.mxu0 }
0x1c3f   :  { %v6317_v37 = vpop.f32.mrf.mxu0 }
0x1c46   :  { %v5174_v41 = vpop.f32.mrf.mxu1 }
0x1c47   :  { %v5175_v52 = vadd.f32 %v5174_v41, %v5099_v20 }
0x1c48   :  { %v6328_v56 = vpop.f32.mrf.mxu1 }
0x1c49   :  { %v5178_v21 = vadd.f32 %v6666_v10, %v5175_v52 }
0x1c4b   :  { %6599 = vtanh.f32 %v5178_v21  ;;  %v5398_v53 = vmul.f32 -1.442695, %v5178_v21 }
0x1c4d   :  { %6601 = vpow2.f32 %v5398_v53 }
0x1c58   :  { %v6600_v55 = vpop.eup %6599 }
0x1c59   :  { %5188 = vrot.lane.b32.xlu0 %v6600_v55, %s6782_s25 }
0x1c5a   :  { %v6602_v59 = vpop.eup %6601 }
0x1c5b   :  { %v5182_v6 = vadd.f32 1.0, %v6602_v59 }
0x1c5d   :  { %6603 = vrcp.f32 %v5182_v6 }
0x1c6a   :  { %v6604_v62 = vpop.eup %6603 }
0x1c6b   :  { %v5186_v40 = vmul.f32 %v6604_v62, %v4851_v1 }
0x1ccb   :  { %v5189_v58 = vpop.permute.xlu0 %5188 }
0x1ccc   :  { %v5191_v57 = vmul.f32 %v6604_v62, %v5189_v58 }
0x1cce   :  { %5193 = vrot.lane.b32.xlu1 %v5191_v57, %s6783_s26 }
0x1d40   :  { %v5194_v3 = vpop.permute.xlu1 %5193 }
0x1d41   :  { %v5196_v5 = vadd.f32 %v5194_v3, %v5186_v40 }
0x1d43   :  { %6605 = vtanh.f32 %v5196_v5 }
0x1d50   :  { %v6606_v24 = vpop.eup %6605 }
0x1d51   :  { %5199 = vrot.lane.b32.xlu0 %v6606_v24, %s6782_s25 }
0x1dc3   :  { %v5200_v33 = vpop.permute.xlu0 %5199 }
0x1dc4   :  { %v5202_v26 = vmul.f32 %v6604_v62, %v5200_v33 }
0x1dc6   :  { %5215 = vrot.lane.b32.xlu1 %v5202_v26, %s6783_s26 }
0x1e38   :  { %v5216_v29 = vpop.permute.xlu1 %5215 }
0x1e39   :  { %6338 = vmatmul.mubr.msk.f32.vlgmr.msra.gmra.mxu0 %vm317_vm2, %v5216_v29 }
0x1ef9   :  { %v5285_v14 = vpop.f32.mrf.mxu0 }
0x1efa   :  { %v5286_v9 = vadd.f32 %v5399_v35, %v5285_v14 }
0x1efb   :  { %v6339_v22 = vpop.f32.mrf.mxu0 }
0x1efc   :  { %v5401_v17 = vmul.f32 -1.442695, %v5286_v9 }
0x1efe   :  { %6607 = vpow2.f32 %v5401_v17 }
0x1f0b   :  { %v6608_v19 = vpop.eup %6607 }
0x1f0c   :  { %v5292_v50 = vadd.f32 1.0, %v6608_v19 }
0x1f0e   :  { %6609 = vrcp.f32 %v5292_v50 }
0x1f1b   :  { %v6610_v0 = vpop.eup %6609 }
0x1f1c   :  { %5295 = vst [vmem:[%s8224_s15] sm:$0xff] %v6610_v0 }
0x1f1d   :  { %5300 = vsyncpa [#allocation4], 1 }
0x1f1e   :  { %5301 = vsyncpa [#allocation6], 1 }
0x1f1f   :  { %5302 = vsyncpa [#allocation9], 1 }

</bundles_post_ra>
